<compile_context>
chip_gen: v5e
topology: v5e:2x2
jax: 0.10.0
libtpu: 0.0.40
codegen_flags: <defaults>
</compile_context>

<pallas_src>
import math
from functools import partial

import jax
import jax.numpy as jnp
from jax.experimental import pallas as pl
from jax.experimental.pallas import tpu as pltpu

NUM_BLOCKS = 5
PADDED_CLASSES = 128  # lane-dense head width; real logits sliced out in the wrapper


# ----------------------------- kernel helpers ------------------------------
def _gelu(x):
    # tanh-approximate GELU: the tanh issues on the EUP slot instead of a long
    # VALU erf polynomial (kernel is VALU-bound, not MXU-bound).
    # Small deviation vs PyTorch's exact-erf GELU (within ~1e-3).
    return 0.5 * x * (1.0 + jnp.tanh(0.7978845608028654 * (x + 0.044715 * x * x * x)))


def _layernorm(x, gamma, beta, cdt, eps=1e-5):
    # Reductions in f32, single pass (var = E[x^2] - mean^2); normalize / scale /
    # shift in the elementwise compute dtype (bf16 on v6e/v7x, f32 on v5e).
    xf = x.astype(jnp.float32)
    mean = jnp.mean(xf, axis=-1, keepdims=True)
    var = jnp.mean(xf * xf, axis=-1, keepdims=True) - mean * mean
    inv = jax.lax.rsqrt(var + eps)
    xn = (x.astype(cdt) - mean.astype(cdt)) * inv.astype(cdt)
    return xn * gamma.astype(cdt) + beta.astype(cdt)


def _linear(x, w_bf16, b_f32):
    # bf16 operands on the MXU, f32 accumulation; bias add in f32.
    return jnp.dot(x.astype(jnp.bfloat16), w_bf16,
                   preferred_element_type=jnp.float32) + b_f32


# --------------------------------- kernel ----------------------------------
def dyn_cifar10_kernel(
    x_ref,
    w_in_ref, b_in_ref,
    blk_fused_w, blk_fused_b,          # fused [main fc1 | shortcut | coeff fc1]
    blk_ln_g, blk_ln_b,
    blk_fc2_w, blk_fc2_b,
    blk_cln_g, blk_cln_b,
    blk_cf2_w, blk_cf2_b,
    w_fc1_ref, b_fc1_ref, w_fc2_ref, b_fc2_ref,
    out_ref,
    *, compute_dtype,
):
    H = blk_fc2_w.shape[-1]
    cdt = compute_dtype

    # fc_input: x tile is already bf16 -> straight to the MXU.
    h = _linear(x_ref[...], w_in_ref[...], b_in_ref[...])          # (B, H) f32

    # 5 dynamic residual blocks (statically unrolled)
    for i in range(NUM_BLOCKS):
        # one wide matmul produces: main fc1 | shortcut | CoefficientNetwork.fc1
        fused = _linear(h, blk_fused_w[i], blk_fused_b[i])          # (B, 3H) f32
        main = fused[:, 0 * H:1 * H]
        sc   = fused[:, 1 * H:2 * H]
        cpre = fused[:, 2 * H:3 * H]

        # --- CoefficientNetwork: gelu(fc1) -> LayerNorm -> dropout(id) -> sigmoid(fc2) ---
        c = _layernorm(_gelu(cpre), blk_cln_g[i], blk_cln_b[i], cdt)
        # TODO(synk): dropout is identity at inference; no stochastic mask applied.
        coeff = jax.nn.sigmoid(_linear(c, blk_cf2_w[i], blk_cf2_b[i]).astype(cdt))

        # gate the shortcut now so coeff/sc/fused are dead before the fc2 matmul
        gated = (coeff * sc.astype(cdt)).astype(jnp.float32)

        # --- main path ---
        out = _gelu(_layernorm(main, blk_ln_g[i], blk_ln_b[i], cdt))
        out = _linear(out, blk_fc2_w[i], blk_fc2_b[i])              # (B, H) f32

        # --- dynamic residual (accumulate in f32) ---
        h = out + gated

    # head (fc2 is zero-padded to PADDED_CLASSES columns -> lane-dense store)
    h = _gelu(_linear(h, w_fc1_ref[...], b_fc1_ref[...]).astype(cdt))
    out_ref[...] = _linear(h, w_fc2_ref[...], b_fc2_ref[...]).astype(out_ref.dtype)


# ------------------------------ param builder -------------------------------
def _xavier_normal(key, fan_in, fan_out):
    std = math.sqrt(2.0 / (fan_in + fan_out))
    return std * jax.random.normal(key, (fan_in, fan_out), jnp.float32)


def init_params(key, input_features, d_hidden, num_classes=10,
                padded_classes=PADDED_CLASSES):
    keys = iter(jax.random.split(key, 64))
    H = d_hidden

    def lin(fan_in, fan_out):
        return (_xavier_normal(next(keys), fan_in, fan_out),
                jnp.zeros((1, fan_out), jnp.float32))

    p = {}
    w, b = lin(input_features, H)
    p["w_in"], p["b_in"] = w.astype(jnp.bfloat16), b

    fused_w, fused_b = [], []
    fc2_w, fc2_b, cf2_w, cf2_b = [], [], [], []
    ln_g, ln_b, cln_g, cln_b = [], [], [], []
    for _ in range(NUM_BLOCKS):
        w_fc1, b_fc1 = lin(H, H)        # main-path fc1
        w_sc, b_sc = lin(H, H)          # shortcut
        w_cf1, b_cf1 = lin(H, H)        # CoefficientNetwork.fc1
        fused_w.append(jnp.concatenate([w_fc1, w_sc, w_cf1], axis=1))  # (H, 3H)
        fused_b.append(jnp.concatenate([b_fc1, b_sc, b_cf1], axis=1))  # (1, 3H)
        w2, b2 = lin(H, H); fc2_w.append(w2); fc2_b.append(b2)
        wc2, bc2 = lin(H, H); cf2_w.append(wc2); cf2_b.append(bc2)
        ln_g.append(jnp.ones((1, H), jnp.float32)); ln_b.append(jnp.zeros((1, H), jnp.float32))
        cln_g.append(jnp.ones((1, H), jnp.float32)); cln_b.append(jnp.zeros((1, H), jnp.float32))

    p["blk_fused_w"] = jnp.stack(fused_w).astype(jnp.bfloat16)
    p["blk_fused_b"] = jnp.stack(fused_b)
    p["blk_ln_g"] = jnp.stack(ln_g); p["blk_ln_b"] = jnp.stack(ln_b)
    p["blk_fc2_w"] = jnp.stack(fc2_w).astype(jnp.bfloat16); p["blk_fc2_b"] = jnp.stack(fc2_b)
    p["blk_cln_g"] = jnp.stack(cln_g); p["blk_cln_b"] = jnp.stack(cln_b)
    p["blk_cf2_w"] = jnp.stack(cf2_w).astype(jnp.bfloat16); p["blk_cf2_b"] = jnp.stack(cf2_b)

    w1, b1 = lin(H, H)
    p["w_fc1"], p["b_fc1"] = w1.astype(jnp.bfloat16), b1

    w2, b2 = lin(H, num_classes)
    w2 = jnp.pad(w2, ((0, 0), (0, padded_classes - num_classes)))  # zero columns
    b2 = jnp.pad(b2, ((0, 0), (0, padded_classes - num_classes)))
    p["w_fc2"], p["b_fc2"] = w2.astype(jnp.bfloat16), b2
    return p


# -------------------------------- wrapper -----------------------------------
PARAM_ORDER = (
    "w_in", "b_in",
    "blk_fused_w", "blk_fused_b",
    "blk_ln_g", "blk_ln_b",
    "blk_fc2_w", "blk_fc2_b",
    "blk_cln_g", "blk_cln_b",
    "blk_cf2_w", "blk_cf2_b",
    "w_fc1", "b_fc1", "w_fc2", "b_fc2",
)


def _round_up(n, m):
    return ((n + m - 1) // m) * m


def _elementwise_dtype():
    # bf16 VPU/EUP exists on v6e/v7x; v5e (and older) lack it -> keep f32 there.
    try:
        kind = jax.devices()[0].device_kind.lower()
    except Exception:
        return jnp.float32
    if any(g in kind for g in ("v2", "v3", "v4", "v5")):
        return jnp.float32
    return jnp.bfloat16


def _pick_tile_b(B):
    # Prefer large tiles (amortize the ~0.35us per-grid-step overhead) while
    # keeping >= 2 grid steps whenever the batch allows it, so the "parallel"
    # batch axis can be sharded over both TensorCores on v7x.
    for tile in (512, 256, 128, 64, 32, 16, 8):
        if B >= 2 * tile:
            return tile
    return _round_up(max(B, 1), 8)   # tiny batch: single padded tile


def _resident_spec(arr):
    # Whole-array VMEM block with a constant index_map: loaded once, never
    # re-DMA'd across batch grid steps (weights stay VMEM-resident).
    n = arr.ndim
    return pl.BlockSpec(arr.shape, lambda i, n=n: (0,) * n)


@partial(jax.jit, static_argnames=("num_classes",))
def dyn_cifar10_forward(x_nchw, params, num_classes=10):
    B = x_nchw.shape[0]
    # torch.flatten(x, 1) + bf16 feed: halves the only per-step HBM stream that
    # matters; the MXU consumes bf16 directly with f32 accumulation.
    x = x_nchw.reshape(B, -1).astype(jnp.bfloat16)
    F = x.shape[1]
    c_pad = params["w_fc2"].shape[-1]
    cdt = _elementwise_dtype()

    tile_b = _pick_tile_b(B)
    b_pad = _round_up(B, tile_b)
    if b_pad != B:
        x = jnp.pad(x, ((0, b_pad - B), (0, 0)))
    grid = (b_pad // tile_b,)

    weights = tuple(params[k] for k in PARAM_ORDER)
    in_specs = [pl.BlockSpec((tile_b, F), lambda i: (i, 0))]
    in_specs += [_resident_spec(w) for w in weights]
    out_spec = pl.BlockSpec((tile_b, c_pad), lambda i: (i, 0))

    out = pl.pallas_call(
        partial(dyn_cifar10_kernel, compute_dtype=cdt),
        out_shape=jax.ShapeDtypeStruct((b_pad, c_pad), jnp.float32),
        grid_spec=pltpu.PrefetchScalarGridSpec(
            num_scalar_prefetch=0,
            grid=grid,
            in_specs=in_specs,
            out_specs=out_spec,
        ),
        compiler_params=pltpu.CompilerParams(
            dimension_semantics=("parallel",),    # batch tiles -> both TCs on v7x
            vmem_limit_bytes=32 * 1024 * 1024,    # well under even v7x's 64 MiB
        ),
    )(x, *weights)
    return out[:B, :num_classes]


# ------------------------------ pure-JAX ref ---------------------------------
def _ref_forward(x_nchw, p, num_classes, compute_dtype):
    H = p["blk_fc2_w"].shape[-1]
    cdt = compute_dtype
    x = x_nchw.reshape(x_nchw.shape[0], -1).astype(jnp.bfloat16)

    def lin(a, w, b):
        return jnp.dot(a.astype(jnp.bfloat16), w, preferred_element_type=jnp.float32) + b

    h = lin(x, p["w_in"], p["b_in"])
    for i in range(NUM_BLOCKS):
        fused = lin(h, p["blk_fused_w"][i], p["blk_fused_b"][i])
        main, sc, cpre = fused[:, :H], fused[:, H:2 * H], fused[:, 2 * H:]
        c = _layernorm(_gelu(cpre), p["blk_cln_g"][i], p["blk_cln_b"][i], cdt)
        coeff = jax.nn.sigmoid(lin(c, p["blk_cf2_w"][i], p["blk_cf2_b"][i]).astype(cdt))
        gated = (coeff * sc.astype(cdt)).astype(jnp.float32)
        out = _gelu(_layernorm(main, p["blk_ln_g"][i], p["blk_ln_b"][i], cdt))
        out = lin(out, p["blk_fc2_w"][i], p["blk_fc2_b"][i])
        h = out + gated
    h = _gelu(lin(h, p["w_fc1"], p["b_fc1"]).astype(cdt))
    logits = lin(h, p["w_fc2"], p["b_fc2"])
    return logits[:, :num_classes]


# ---------------------------------- main -------------------------------------
if __name__ == "__main__":
    key = jax.random.PRNGKey(0)
    k_x, k_p = jax.random.split(key)

    # small shapes consistent with the module: NCHW image input, flattened inside
    B, C, HS, WS = 8, 3, 16, 16          # input_features = 3*16*16 = 768
    D_HIDDEN = 128
    NUM_CLASSES = 10

    x = jax.random.normal(k_x, (B, C, HS, WS), jnp.float32)
    params = init_params(k_p, input_features=C * HS * WS, d_hidden=D_HIDDEN,
                         num_classes=NUM_CLASSES)

    out = dyn_cifar10_forward(x, params, num_classes=NUM_CLASSES)
    out = jax.block_until_ready(out)

    cdt = _elementwise_dtype()
    ref = _ref_forward(x, params, NUM_CLASSES, cdt)
    tol = 2e-3 if cdt == jnp.float32 else 2e-2   # bf16 elementwise path on v6e/v7x
    assert out.shape == (B, NUM_CLASSES), out.shape
    assert jnp.allclose(out, ref, atol=tol, rtol=tol), \
        f"max abs err {jnp.max(jnp.abs(out - ref))}"

    print("KERNEL_OK")
</pallas_src>

<mosaic_0001>
module attributes {stable_mosaic.version = 11 : i64} {
  func.func @dyn_cifar10_kernel(%arg0: i32, %arg1: memref<8x768xbf16, #tpu.memory_space<vmem>>, %arg2: memref<768x128xbf16, #tpu.memory_space<vmem>>, %arg3: memref<1x128xf32, #tpu.memory_space<vmem>>, %arg4: memref<5x128x384xbf16, #tpu.memory_space<vmem>>, %arg5: memref<5x1x384xf32, #tpu.memory_space<vmem>>, %arg6: memref<5x1x128xf32, #tpu.memory_space<vmem>>, %arg7: memref<5x1x128xf32, #tpu.memory_space<vmem>>, %arg8: memref<5x128x128xbf16, #tpu.memory_space<vmem>>, %arg9: memref<5x1x128xf32, #tpu.memory_space<vmem>>, %arg10: memref<5x1x128xf32, #tpu.memory_space<vmem>>, %arg11: memref<5x1x128xf32, #tpu.memory_space<vmem>>, %arg12: memref<5x128x128xbf16, #tpu.memory_space<vmem>>, %arg13: memref<5x1x128xf32, #tpu.memory_space<vmem>>, %arg14: memref<128x128xbf16, #tpu.memory_space<vmem>>, %arg15: memref<1x128xf32, #tpu.memory_space<vmem>>, %arg16: memref<128x128xbf16, #tpu.memory_space<vmem>>, %arg17: memref<1x128xf32, #tpu.memory_space<vmem>>, %arg18: memref<8x128xf32, #tpu.memory_space<vmem>>) attributes {dimension_semantics = [#tpu.dimension_semantics<parallel>], iteration_bounds = array<i64: 1>, scalar_prefetch = 0 : i64, scratch_operands = 0 : i64, tpu.core_type = #tpu.core_type<tc>, window_params = [{transform_indices = @transform_0, window_bounds = array<i64: 8, 768>}, {pipeline_mode = #tpu.pipeline_mode<synchronous>, transform_indices = @transform_1, window_bounds = array<i64: 768, 128>}, {pipeline_mode = #tpu.pipeline_mode<synchronous>, transform_indices = @transform_2, window_bounds = array<i64: 1, 128>}, {pipeline_mode = #tpu.pipeline_mode<synchronous>, transform_indices = @transform_3, window_bounds = array<i64: 5, 128, 384>}, {pipeline_mode = #tpu.pipeline_mode<synchronous>, transform_indices = @transform_4, window_bounds = array<i64: 5, 1, 384>}, {pipeline_mode = #tpu.pipeline_mode<synchronous>, transform_indices = @transform_5, window_bounds = array<i64: 5, 1, 128>}, {pipeline_mode = #tpu.pipeline_mode<synchronous>, transform_indices = @transform_6, window_bounds = array<i64: 5, 1, 128>}, {pipeline_mode = #tpu.pipeline_mode<synchronous>, transform_indices = @transform_7, window_bounds = array<i64: 5, 128, 128>}, {pipeline_mode = #tpu.pipeline_mode<synchronous>, transform_indices = @transform_8, window_bounds = array<i64: 5, 1, 128>}, {pipeline_mode = #tpu.pipeline_mode<synchronous>, transform_indices = @transform_9, window_bounds = array<i64: 5, 1, 128>}, {pipeline_mode = #tpu.pipeline_mode<synchronous>, transform_indices = @transform_10, window_bounds = array<i64: 5, 1, 128>}, {pipeline_mode = #tpu.pipeline_mode<synchronous>, transform_indices = @transform_11, window_bounds = array<i64: 5, 128, 128>}, {pipeline_mode = #tpu.pipeline_mode<synchronous>, transform_indices = @transform_12, window_bounds = array<i64: 5, 1, 128>}, {pipeline_mode = #tpu.pipeline_mode<synchronous>, transform_indices = @transform_13, window_bounds = array<i64: 128, 128>}, {pipeline_mode = #tpu.pipeline_mode<synchronous>, transform_indices = @transform_14, window_bounds = array<i64: 1, 128>}, {pipeline_mode = #tpu.pipeline_mode<synchronous>, transform_indices = @transform_15, window_bounds = array<i64: 128, 128>}, {pipeline_mode = #tpu.pipeline_mode<synchronous>, transform_indices = @transform_16, window_bounds = array<i64: 1, 128>}, {transform_indices = @transform_17, window_bounds = array<i64: 8, 128>}]} {
    %c0 = arith.constant 0 : index
    %c0_0 = arith.constant 0 : index
    %0 = vector.load %arg1[%c0, %c0_0] : memref<8x768xbf16, #tpu.memory_space<vmem>>, vector<8x768xbf16>
    %c0_1 = arith.constant 0 : index
    %c0_2 = arith.constant 0 : index
    %1 = vector.load %arg2[%c0_1, %c0_2] : memref<768x128xbf16, #tpu.memory_space<vmem>>, vector<768x128xbf16>
    %c0_3 = arith.constant 0 : index
    %c0_4 = arith.constant 0 : index
    %2 = vector.load %arg3[%c0_3, %c0_4] : memref<1x128xf32, #tpu.memory_space<vmem>>, vector<1x128xf32>
    %cst = arith.constant dense<0.000000e+00> : vector<8x128xf32>
    %3 = tpu.matmul %0, %1, %cst {dimension_numbers = #tpu.dot_dimension_numbers<[1], [0], [0], [1], [0, 0, 1, 1], [], []>} : vector<8x768xbf16>, vector<768x128xbf16>, vector<8x128xf32> -> vector<8x128xf32>
    %4 = vector.broadcast %2 : vector<1x128xf32> to vector<8x128xf32>
    %5 = arith.addf %3, %4 : vector<8x128xf32>
    %c0_5 = arith.constant 0 : index
    %c0_6 = arith.constant 0 : index
    %c0_7 = arith.constant 0 : index
    %6 = vector.load %arg4[%c0_5, %c0_6, %c0_7] : memref<5x128x384xbf16, #tpu.memory_space<vmem>>, vector<1x128x384xbf16>
    %7 = vector.shape_cast %6 : vector<1x128x384xbf16> to vector<128x384xbf16>
    %c0_8 = arith.constant 0 : index
    %c0_9 = arith.constant 0 : index
    %c0_10 = arith.constant 0 : index
    %8 = vector.load %arg5[%c0_8, %c0_9, %c0_10] : memref<5x1x384xf32, #tpu.memory_space<vmem>>, vector<1x1x384xf32>
    %9 = vector.shape_cast %8 : vector<1x1x384xf32> to vector<1x384xf32>
    %10 = arith.truncf %5 : vector<8x128xf32> to vector<8x128xbf16>
    %cst_11 = arith.constant dense<0.000000e+00> : vector<8x384xf32>
    %11 = tpu.matmul %10, %7, %cst_11 {dimension_numbers = #tpu.dot_dimension_numbers<[1], [0], [0], [1], [0, 0, 1, 1], [], []>} : vector<8x128xbf16>, vector<128x384xbf16>, vector<8x384xf32> -> vector<8x384xf32>
    %12 = vector.broadcast %9 : vector<1x384xf32> to vector<8x384xf32>
    %13 = arith.addf %11, %12 : vector<8x384xf32>
    %14 = vector.extract_strided_slice %13 {offsets = [0, 0], sizes = [8, 128], strides = [1, 1]} : vector<8x384xf32> to vector<8x128xf32>
    %15 = vector.extract_strided_slice %13 {offsets = [0, 128], sizes = [8, 128], strides = [1, 1]} : vector<8x384xf32> to vector<8x128xf32>
    %16 = vector.extract_strided_slice %13 {offsets = [0, 256], sizes = [8, 128], strides = [1, 1]} : vector<8x384xf32> to vector<8x128xf32>
    %cst_12 = arith.constant 5.000000e-01 : f32
    %17 = vector.broadcast %cst_12 : f32 to vector<8x128xf32>
    %18 = arith.mulf %17, %16 : vector<8x128xf32>
    %cst_13 = arith.constant 4.471500e-02 : f32
    %19 = vector.broadcast %cst_13 : f32 to vector<8x128xf32>
    %20 = arith.mulf %19, %16 : vector<8x128xf32>
    %21 = arith.mulf %20, %16 : vector<8x128xf32>
    %22 = arith.mulf %21, %16 : vector<8x128xf32>
    %23 = arith.addf %16, %22 : vector<8x128xf32>
    %cst_14 = arith.constant 0.797884583 : f32
    %24 = vector.broadcast %cst_14 : f32 to vector<8x128xf32>
    %25 = arith.mulf %24, %23 : vector<8x128xf32>
    %26 = math.tanh %25 : vector<8x128xf32>
    %cst_15 = arith.constant 1.000000e+00 : f32
    %27 = vector.broadcast %cst_15 : f32 to vector<8x128xf32>
    %28 = arith.addf %27, %26 : vector<8x128xf32>
    %29 = arith.mulf %18, %28 : vector<8x128xf32>
    %c0_16 = arith.constant 0 : index
    %c0_17 = arith.constant 0 : index
    %c0_18 = arith.constant 0 : index
    %30 = vector.load %arg10[%c0_16, %c0_17, %c0_18] : memref<5x1x128xf32, #tpu.memory_space<vmem>>, vector<1x1x128xf32>
    %31 = vector.shape_cast %30 : vector<1x1x128xf32> to vector<1x128xf32>
    %c0_19 = arith.constant 0 : index
    %c0_20 = arith.constant 0 : index
    %c0_21 = arith.constant 0 : index
    %32 = vector.load %arg11[%c0_19, %c0_20, %c0_21] : memref<5x1x128xf32, #tpu.memory_space<vmem>>, vector<1x1x128xf32>
    %33 = vector.shape_cast %32 : vector<1x1x128xf32> to vector<1x128xf32>
    %cst_22 = arith.constant dense<0.000000e+00> : vector<8xf32>
    %34 = vector.multi_reduction <add>, %29, %cst_22 [1] : vector<8x128xf32> to vector<8xf32>
    %35 = vector.shape_cast %34 : vector<8xf32> to vector<8x1xf32>
    %cst_23 = arith.constant 1.280000e+02 : f32
    %36 = vector.broadcast %cst_23 : f32 to vector<8x1xf32>
    %37 = arith.divf %35, %36 : vector<8x1xf32>
    %38 = arith.mulf %29, %29 : vector<8x128xf32>
    %cst_24 = arith.constant dense<0.000000e+00> : vector<8xf32>
    %39 = vector.multi_reduction <add>, %38, %cst_24 [1] : vector<8x128xf32> to vector<8xf32>
    %40 = vector.shape_cast %39 : vector<8xf32> to vector<8x1xf32>
    %cst_25 = arith.constant 1.280000e+02 : f32
    %41 = vector.broadcast %cst_25 : f32 to vector<8x1xf32>
    %42 = arith.divf %40, %41 : vector<8x1xf32>
    %43 = arith.mulf %37, %37 : vector<8x1xf32>
    %44 = arith.subf %42, %43 : vector<8x1xf32>
    %cst_26 = arith.constant 9.99999974E-6 : f32
    %45 = vector.broadcast %cst_26 : f32 to vector<8x1xf32>
    %46 = arith.addf %44, %45 : vector<8x1xf32>
    %47 = math.rsqrt %46 : vector<8x1xf32>
    %48 = arith.truncf %29 : vector<8x128xf32> to vector<8x128xbf16>
    %49 = arith.truncf %37 : vector<8x1xf32> to vector<8x1xbf16>
    %50 = vector.broadcast %49 : vector<8x1xbf16> to vector<8x128xbf16>
    %51 = arith.subf %48, %50 : vector<8x128xbf16>
    %52 = arith.truncf %47 : vector<8x1xf32> to vector<8x1xbf16>
    %53 = vector.broadcast %52 : vector<8x1xbf16> to vector<8x128xbf16>
    %54 = arith.mulf %51, %53 : vector<8x128xbf16>
    %55 = arith.truncf %31 : vector<1x128xf32> to vector<1x128xbf16>
    %56 = vector.broadcast %55 : vector<1x128xbf16> to vector<8x128xbf16>
    %57 = arith.mulf %54, %56 : vector<8x128xbf16>
    %58 = arith.truncf %33 : vector<1x128xf32> to vector<1x128xbf16>
    %59 = vector.broadcast %58 : vector<1x128xbf16> to vector<8x128xbf16>
    %60 = arith.addf %57, %59 : vector<8x128xbf16>
    %c0_27 = arith.constant 0 : index
    %c0_28 = arith.constant 0 : index
    %c0_29 = arith.constant 0 : index
    %61 = vector.load %arg12[%c0_27, %c0_28, %c0_29] : memref<5x128x128xbf16, #tpu.memory_space<vmem>>, vector<1x128x128xbf16>
    %62 = vector.shape_cast %61 : vector<1x128x128xbf16> to vector<128x128xbf16>
    %c0_30 = arith.constant 0 : index
    %c0_31 = arith.constant 0 : index
    %c0_32 = arith.constant 0 : index
    %63 = vector.load %arg13[%c0_30, %c0_31, %c0_32] : memref<5x1x128xf32, #tpu.memory_space<vmem>>, vector<1x1x128xf32>
    %64 = vector.shape_cast %63 : vector<1x1x128xf32> to vector<1x128xf32>
    %cst_33 = arith.constant dense<0.000000e+00> : vector<8x128xf32>
    %65 = tpu.matmul %60, %62, %cst_33 {dimension_numbers = #tpu.dot_dimension_numbers<[1], [0], [0], [1], [0, 0, 1, 1], [], []>} : vector<8x128xbf16>, vector<128x128xbf16>, vector<8x128xf32> -> vector<8x128xf32>
    %66 = vector.broadcast %64 : vector<1x128xf32> to vector<8x128xf32>
    %67 = arith.addf %65, %66 : vector<8x128xf32>
    %68 = arith.truncf %67 : vector<8x128xf32> to vector<8x128xbf16>
    %69 = arith.negf %68 : vector<8x128xbf16>
    %70 = math.exp %69 : vector<8x128xbf16>
    %cst_34 = arith.constant 1.000000e+00 : bf16
    %71 = vector.broadcast %cst_34 : bf16 to vector<8x128xbf16>
    %72 = arith.addf %71, %70 : vector<8x128xbf16>
    %73 = arith.divf %71, %72 : vector<8x128xbf16>
    %74 = arith.truncf %15 : vector<8x128xf32> to vector<8x128xbf16>
    %75 = arith.mulf %73, %74 : vector<8x128xbf16>
    %76 = arith.extf %75 : vector<8x128xbf16> to vector<8x128xf32>
    %c0_35 = arith.constant 0 : index
    %c0_36 = arith.constant 0 : index
    %c0_37 = arith.constant 0 : index
    %77 = vector.load %arg6[%c0_35, %c0_36, %c0_37] : memref<5x1x128xf32, #tpu.memory_space<vmem>>, vector<1x1x128xf32>
    %78 = vector.shape_cast %77 : vector<1x1x128xf32> to vector<1x128xf32>
    %c0_38 = arith.constant 0 : index
    %c0_39 = arith.constant 0 : index
    %c0_40 = arith.constant 0 : index
    %79 = vector.load %arg7[%c0_38, %c0_39, %c0_40] : memref<5x1x128xf32, #tpu.memory_space<vmem>>, vector<1x1x128xf32>
    %80 = vector.shape_cast %79 : vector<1x1x128xf32> to vector<1x128xf32>
    %cst_41 = arith.constant dense<0.000000e+00> : vector<8xf32>
    %81 = vector.multi_reduction <add>, %14, %cst_41 [1] : vector<8x128xf32> to vector<8xf32>
    %82 = vector.shape_cast %81 : vector<8xf32> to vector<8x1xf32>
    %cst_42 = arith.constant 1.280000e+02 : f32
    %83 = vector.broadcast %cst_42 : f32 to vector<8x1xf32>
    %84 = arith.divf %82, %83 : vector<8x1xf32>
    %85 = arith.mulf %14, %14 : vector<8x128xf32>
    %cst_43 = arith.constant dense<0.000000e+00> : vector<8xf32>
    %86 = vector.multi_reduction <add>, %85, %cst_43 [1] : vector<8x128xf32> to vector<8xf32>
    %87 = vector.shape_cast %86 : vector<8xf32> to vector<8x1xf32>
    %cst_44 = arith.constant 1.280000e+02 : f32
    %88 = vector.broadcast %cst_44 : f32 to vector<8x1xf32>
    %89 = arith.divf %87, %88 : vector<8x1xf32>
    %90 = arith.mulf %84, %84 : vector<8x1xf32>
    %91 = arith.subf %89, %90 : vector<8x1xf32>
    %cst_45 = arith.constant 9.99999974E-6 : f32
    %92 = vector.broadcast %cst_45 : f32 to vector<8x1xf32>
    %93 = arith.addf %91, %92 : vector<8x1xf32>
    %94 = math.rsqrt %93 : vector<8x1xf32>
    %95 = arith.truncf %14 : vector<8x128xf32> to vector<8x128xbf16>
    %96 = arith.truncf %84 : vector<8x1xf32> to vector<8x1xbf16>
    %97 = vector.broadcast %96 : vector<8x1xbf16> to vector<8x128xbf16>
    %98 = arith.subf %95, %97 : vector<8x128xbf16>
    %99 = arith.truncf %94 : vector<8x1xf32> to vector<8x1xbf16>
    %100 = vector.broadcast %99 : vector<8x1xbf16> to vector<8x128xbf16>
    %101 = arith.mulf %98, %100 : vector<8x128xbf16>
    %102 = arith.truncf %78 : vector<1x128xf32> to vector<1x128xbf16>
    %103 = vector.broadcast %102 : vector<1x128xbf16> to vector<8x128xbf16>
    %104 = arith.mulf %101, %103 : vector<8x128xbf16>
    %105 = arith.truncf %80 : vector<1x128xf32> to vector<1x128xbf16>
    %106 = vector.broadcast %105 : vector<1x128xbf16> to vector<8x128xbf16>
    %107 = arith.addf %104, %106 : vector<8x128xbf16>
    %cst_46 = arith.constant 5.000000e-01 : bf16
    %108 = vector.broadcast %cst_46 : bf16 to vector<8x128xbf16>
    %109 = arith.mulf %108, %107 : vector<8x128xbf16>
    %cst_47 = arith.constant 4.467770e-02 : bf16
    %110 = vector.broadcast %cst_47 : bf16 to vector<8x128xbf16>
    %111 = arith.mulf %110, %107 : vector<8x128xbf16>
    %112 = arith.mulf %111, %107 : vector<8x128xbf16>
    %113 = arith.mulf %112, %107 : vector<8x128xbf16>
    %114 = arith.addf %107, %113 : vector<8x128xbf16>
    %cst_48 = arith.constant 7.968750e-01 : bf16
    %115 = vector.broadcast %cst_48 : bf16 to vector<8x128xbf16>
    %116 = arith.mulf %115, %114 : vector<8x128xbf16>
    %117 = math.tanh %116 : vector<8x128xbf16>
    %cst_49 = arith.constant 1.000000e+00 : bf16
    %118 = vector.broadcast %cst_49 : bf16 to vector<8x128xbf16>
    %119 = arith.addf %118, %117 : vector<8x128xbf16>
    %120 = arith.mulf %109, %119 : vector<8x128xbf16>
    %c0_50 = arith.constant 0 : index
    %c0_51 = arith.constant 0 : index
    %c0_52 = arith.constant 0 : index
    %121 = vector.load %arg8[%c0_50, %c0_51, %c0_52] : memref<5x128x128xbf16, #tpu.memory_space<vmem>>, vector<1x128x128xbf16>
    %122 = vector.shape_cast %121 : vector<1x128x128xbf16> to vector<128x128xbf16>
    %c0_53 = arith.constant 0 : index
    %c0_54 = arith.constant 0 : index
    %c0_55 = arith.constant 0 : index
    %123 = vector.load %arg9[%c0_53, %c0_54, %c0_55] : memref<5x1x128xf32, #tpu.memory_space<vmem>>, vector<1x1x128xf32>
    %124 = vector.shape_cast %123 : vector<1x1x128xf32> to vector<1x128xf32>
    %cst_56 = arith.constant dense<0.000000e+00> : vector<8x128xf32>
    %125 = tpu.matmul %120, %122, %cst_56 {dimension_numbers = #tpu.dot_dimension_numbers<[1], [0], [0], [1], [0, 0, 1, 1], [], []>} : vector<8x128xbf16>, vector<128x128xbf16>, vector<8x128xf32> -> vector<8x128xf32>
    %126 = vector.broadcast %124 : vector<1x128xf32> to vector<8x128xf32>
    %127 = arith.addf %125, %126 : vector<8x128xf32>
    %128 = arith.addf %127, %76 : vector<8x128xf32>
    %c1 = arith.constant 1 : index
    %c0_57 = arith.constant 0 : index
    %c0_58 = arith.constant 0 : index
    %129 = vector.load %arg4[%c1, %c0_57, %c0_58] : memref<5x128x384xbf16, #tpu.memory_space<vmem>>, vector<1x128x384xbf16>
    %130 = vector.shape_cast %129 : vector<1x128x384xbf16> to vector<128x384xbf16>
    %c1_59 = arith.constant 1 : index
    %c0_60 = arith.constant 0 : index
    %c0_61 = arith.constant 0 : index
    %131 = vector.load %arg5[%c1_59, %c0_60, %c0_61] : memref<5x1x384xf32, #tpu.memory_space<vmem>>, vector<1x1x384xf32>
    %132 = vector.shape_cast %131 : vector<1x1x384xf32> to vector<1x384xf32>
    %133 = arith.truncf %128 : vector<8x128xf32> to vector<8x128xbf16>
    %cst_62 = arith.constant dense<0.000000e+00> : vector<8x384xf32>
    %134 = tpu.matmul %133, %130, %cst_62 {dimension_numbers = #tpu.dot_dimension_numbers<[1], [0], [0], [1], [0, 0, 1, 1], [], []>} : vector<8x128xbf16>, vector<128x384xbf16>, vector<8x384xf32> -> vector<8x384xf32>
    %135 = vector.broadcast %132 : vector<1x384xf32> to vector<8x384xf32>
    %136 = arith.addf %134, %135 : vector<8x384xf32>
    %137 = vector.extract_strided_slice %136 {offsets = [0, 0], sizes = [8, 128], strides = [1, 1]} : vector<8x384xf32> to vector<8x128xf32>
    %138 = vector.extract_strided_slice %136 {offsets = [0, 128], sizes = [8, 128], strides = [1, 1]} : vector<8x384xf32> to vector<8x128xf32>
    %139 = vector.extract_strided_slice %136 {offsets = [0, 256], sizes = [8, 128], strides = [1, 1]} : vector<8x384xf32> to vector<8x128xf32>
    %cst_63 = arith.constant 5.000000e-01 : f32
    %140 = vector.broadcast %cst_63 : f32 to vector<8x128xf32>
    %141 = arith.mulf %140, %139 : vector<8x128xf32>
    %cst_64 = arith.constant 4.471500e-02 : f32
    %142 = vector.broadcast %cst_64 : f32 to vector<8x128xf32>
    %143 = arith.mulf %142, %139 : vector<8x128xf32>
    %144 = arith.mulf %143, %139 : vector<8x128xf32>
    %145 = arith.mulf %144, %139 : vector<8x128xf32>
    %146 = arith.addf %139, %145 : vector<8x128xf32>
    %cst_65 = arith.constant 0.797884583 : f32
    %147 = vector.broadcast %cst_65 : f32 to vector<8x128xf32>
    %148 = arith.mulf %147, %146 : vector<8x128xf32>
    %149 = math.tanh %148 : vector<8x128xf32>
    %cst_66 = arith.constant 1.000000e+00 : f32
    %150 = vector.broadcast %cst_66 : f32 to vector<8x128xf32>
    %151 = arith.addf %150, %149 : vector<8x128xf32>
    %152 = arith.mulf %141, %151 : vector<8x128xf32>
    %c1_67 = arith.constant 1 : index
    %c0_68 = arith.constant 0 : index
    %c0_69 = arith.constant 0 : index
    %153 = vector.load %arg10[%c1_67, %c0_68, %c0_69] : memref<5x1x128xf32, #tpu.memory_space<vmem>>, vector<1x1x128xf32>
    %154 = vector.shape_cast %153 : vector<1x1x128xf32> to vector<1x128xf32>
    %c1_70 = arith.constant 1 : index
    %c0_71 = arith.constant 0 : index
    %c0_72 = arith.constant 0 : index
    %155 = vector.load %arg11[%c1_70, %c0_71, %c0_72] : memref<5x1x128xf32, #tpu.memory_space<vmem>>, vector<1x1x128xf32>
    %156 = vector.shape_cast %155 : vector<1x1x128xf32> to vector<1x128xf32>
    %cst_73 = arith.constant dense<0.000000e+00> : vector<8xf32>
    %157 = vector.multi_reduction <add>, %152, %cst_73 [1] : vector<8x128xf32> to vector<8xf32>
    %158 = vector.shape_cast %157 : vector<8xf32> to vector<8x1xf32>
    %cst_74 = arith.constant 1.280000e+02 : f32
    %159 = vector.broadcast %cst_74 : f32 to vector<8x1xf32>
    %160 = arith.divf %158, %159 : vector<8x1xf32>
    %161 = arith.mulf %152, %152 : vector<8x128xf32>
    %cst_75 = arith.constant dense<0.000000e+00> : vector<8xf32>
    %162 = vector.multi_reduction <add>, %161, %cst_75 [1] : vector<8x128xf32> to vector<8xf32>
    %163 = vector.shape_cast %162 : vector<8xf32> to vector<8x1xf32>
    %cst_76 = arith.constant 1.280000e+02 : f32
    %164 = vector.broadcast %cst_76 : f32 to vector<8x1xf32>
    %165 = arith.divf %163, %164 : vector<8x1xf32>
    %166 = arith.mulf %160, %160 : vector<8x1xf32>
    %167 = arith.subf %165, %166 : vector<8x1xf32>
    %cst_77 = arith.constant 9.99999974E-6 : f32
    %168 = vector.broadcast %cst_77 : f32 to vector<8x1xf32>
    %169 = arith.addf %167, %168 : vector<8x1xf32>
    %170 = math.rsqrt %169 : vector<8x1xf32>
    %171 = arith.truncf %152 : vector<8x128xf32> to vector<8x128xbf16>
    %172 = arith.truncf %160 : vector<8x1xf32> to vector<8x1xbf16>
    %173 = vector.broadcast %172 : vector<8x1xbf16> to vector<8x128xbf16>
    %174 = arith.subf %171, %173 : vector<8x128xbf16>
    %175 = arith.truncf %170 : vector<8x1xf32> to vector<8x1xbf16>
    %176 = vector.broadcast %175 : vector<8x1xbf16> to vector<8x128xbf16>
    %177 = arith.mulf %174, %176 : vector<8x128xbf16>
    %178 = arith.truncf %154 : vector<1x128xf32> to vector<1x128xbf16>
    %179 = vector.broadcast %178 : vector<1x128xbf16> to vector<8x128xbf16>
    %180 = arith.mulf %177, %179 : vector<8x128xbf16>
    %181 = arith.truncf %156 : vector<1x128xf32> to vector<1x128xbf16>
    %182 = vector.broadcast %181 : vector<1x128xbf16> to vector<8x128xbf16>
    %183 = arith.addf %180, %182 : vector<8x128xbf16>
    %c1_78 = arith.constant 1 : index
    %c0_79 = arith.constant 0 : index
    %c0_80 = arith.constant 0 : index
    %184 = vector.load %arg12[%c1_78, %c0_79, %c0_80] : memref<5x128x128xbf16, #tpu.memory_space<vmem>>, vector<1x128x128xbf16>
    %185 = vector.shape_cast %184 : vector<1x128x128xbf16> to vector<128x128xbf16>
    %c1_81 = arith.constant 1 : index
    %c0_82 = arith.constant 0 : index
    %c0_83 = arith.constant 0 : index
    %186 = vector.load %arg13[%c1_81, %c0_82, %c0_83] : memref<5x1x128xf32, #tpu.memory_space<vmem>>, vector<1x1x128xf32>
    %187 = vector.shape_cast %186 : vector<1x1x128xf32> to vector<1x128xf32>
    %cst_84 = arith.constant dense<0.000000e+00> : vector<8x128xf32>
    %188 = tpu.matmul %183, %185, %cst_84 {dimension_numbers = #tpu.dot_dimension_numbers<[1], [0], [0], [1], [0, 0, 1, 1], [], []>} : vector<8x128xbf16>, vector<128x128xbf16>, vector<8x128xf32> -> vector<8x128xf32>
    %189 = vector.broadcast %187 : vector<1x128xf32> to vector<8x128xf32>
    %190 = arith.addf %188, %189 : vector<8x128xf32>
    %191 = arith.truncf %190 : vector<8x128xf32> to vector<8x128xbf16>
    %192 = arith.negf %191 : vector<8x128xbf16>
    %193 = math.exp %192 : vector<8x128xbf16>
    %cst_85 = arith.constant 1.000000e+00 : bf16
    %194 = vector.broadcast %cst_85 : bf16 to vector<8x128xbf16>
    %195 = arith.addf %194, %193 : vector<8x128xbf16>
    %196 = arith.divf %194, %195 : vector<8x128xbf16>
    %197 = arith.truncf %138 : vector<8x128xf32> to vector<8x128xbf16>
    %198 = arith.mulf %196, %197 : vector<8x128xbf16>
    %199 = arith.extf %198 : vector<8x128xbf16> to vector<8x128xf32>
    %c1_86 = arith.constant 1 : index
    %c0_87 = arith.constant 0 : index
    %c0_88 = arith.constant 0 : index
    %200 = vector.load %arg6[%c1_86, %c0_87, %c0_88] : memref<5x1x128xf32, #tpu.memory_space<vmem>>, vector<1x1x128xf32>
    %201 = vector.shape_cast %200 : vector<1x1x128xf32> to vector<1x128xf32>
    %c1_89 = arith.constant 1 : index
    %c0_90 = arith.constant 0 : index
    %c0_91 = arith.constant 0 : index
    %202 = vector.load %arg7[%c1_89, %c0_90, %c0_91] : memref<5x1x128xf32, #tpu.memory_space<vmem>>, vector<1x1x128xf32>
    %203 = vector.shape_cast %202 : vector<1x1x128xf32> to vector<1x128xf32>
    %cst_92 = arith.constant dense<0.000000e+00> : vector<8xf32>
    %204 = vector.multi_reduction <add>, %137, %cst_92 [1] : vector<8x128xf32> to vector<8xf32>
    %205 = vector.shape_cast %204 : vector<8xf32> to vector<8x1xf32>
    %cst_93 = arith.constant 1.280000e+02 : f32
    %206 = vector.broadcast %cst_93 : f32 to vector<8x1xf32>
    %207 = arith.divf %205, %206 : vector<8x1xf32>
    %208 = arith.mulf %137, %137 : vector<8x128xf32>
    %cst_94 = arith.constant dense<0.000000e+00> : vector<8xf32>
    %209 = vector.multi_reduction <add>, %208, %cst_94 [1] : vector<8x128xf32> to vector<8xf32>
    %210 = vector.shape_cast %209 : vector<8xf32> to vector<8x1xf32>
    %cst_95 = arith.constant 1.280000e+02 : f32
    %211 = vector.broadcast %cst_95 : f32 to vector<8x1xf32>
    %212 = arith.divf %210, %211 : vector<8x1xf32>
    %213 = arith.mulf %207, %207 : vector<8x1xf32>
    %214 = arith.subf %212, %213 : vector<8x1xf32>
    %cst_96 = arith.constant 9.99999974E-6 : f32
    %215 = vector.broadcast %cst_96 : f32 to vector<8x1xf32>
    %216 = arith.addf %214, %215 : vector<8x1xf32>
    %217 = math.rsqrt %216 : vector<8x1xf32>
    %218 = arith.truncf %137 : vector<8x128xf32> to vector<8x128xbf16>
    %219 = arith.truncf %207 : vector<8x1xf32> to vector<8x1xbf16>
    %220 = vector.broadcast %219 : vector<8x1xbf16> to vector<8x128xbf16>
    %221 = arith.subf %218, %220 : vector<8x128xbf16>
    %222 = arith.truncf %217 : vector<8x1xf32> to vector<8x1xbf16>
    %223 = vector.broadcast %222 : vector<8x1xbf16> to vector<8x128xbf16>
    %224 = arith.mulf %221, %223 : vector<8x128xbf16>
    %225 = arith.truncf %201 : vector<1x128xf32> to vector<1x128xbf16>
    %226 = vector.broadcast %225 : vector<1x128xbf16> to vector<8x128xbf16>
    %227 = arith.mulf %224, %226 : vector<8x128xbf16>
    %228 = arith.truncf %203 : vector<1x128xf32> to vector<1x128xbf16>
    %229 = vector.broadcast %228 : vector<1x128xbf16> to vector<8x128xbf16>
    %230 = arith.addf %227, %229 : vector<8x128xbf16>
    %cst_97 = arith.constant 5.000000e-01 : bf16
    %231 = vector.broadcast %cst_97 : bf16 to vector<8x128xbf16>
    %232 = arith.mulf %231, %230 : vector<8x128xbf16>
    %cst_98 = arith.constant 4.467770e-02 : bf16
    %233 = vector.broadcast %cst_98 : bf16 to vector<8x128xbf16>
    %234 = arith.mulf %233, %230 : vector<8x128xbf16>
    %235 = arith.mulf %234, %230 : vector<8x128xbf16>
    %236 = arith.mulf %235, %230 : vector<8x128xbf16>
    %237 = arith.addf %230, %236 : vector<8x128xbf16>
    %cst_99 = arith.constant 7.968750e-01 : bf16
    %238 = vector.broadcast %cst_99 : bf16 to vector<8x128xbf16>
    %239 = arith.mulf %238, %237 : vector<8x128xbf16>
    %240 = math.tanh %239 : vector<8x128xbf16>
    %cst_100 = arith.constant 1.000000e+00 : bf16
    %241 = vector.broadcast %cst_100 : bf16 to vector<8x128xbf16>
    %242 = arith.addf %241, %240 : vector<8x128xbf16>
    %243 = arith.mulf %232, %242 : vector<8x128xbf16>
    %c1_101 = arith.constant 1 : index
    %c0_102 = arith.constant 0 : index
    %c0_103 = arith.constant 0 : index
    %244 = vector.load %arg8[%c1_101, %c0_102, %c0_103] : memref<5x128x128xbf16, #tpu.memory_space<vmem>>, vector<1x128x128xbf16>
    %245 = vector.shape_cast %244 : vector<1x128x128xbf16> to vector<128x128xbf16>
    %c1_104 = arith.constant 1 : index
    %c0_105 = arith.constant 0 : index
    %c0_106 = arith.constant 0 : index
    %246 = vector.load %arg9[%c1_104, %c0_105, %c0_106] : memref<5x1x128xf32, #tpu.memory_space<vmem>>, vector<1x1x128xf32>
    %247 = vector.shape_cast %246 : vector<1x1x128xf32> to vector<1x128xf32>
    %cst_107 = arith.constant dense<0.000000e+00> : vector<8x128xf32>
    %248 = tpu.matmul %243, %245, %cst_107 {dimension_numbers = #tpu.dot_dimension_numbers<[1], [0], [0], [1], [0, 0, 1, 1], [], []>} : vector<8x128xbf16>, vector<128x128xbf16>, vector<8x128xf32> -> vector<8x128xf32>
    %249 = vector.broadcast %247 : vector<1x128xf32> to vector<8x128xf32>
    %250 = arith.addf %248, %249 : vector<8x128xf32>
    %251 = arith.addf %250, %199 : vector<8x128xf32>
    %c2 = arith.constant 2 : index
    %c0_108 = arith.constant 0 : index
    %c0_109 = arith.constant 0 : index
    %252 = vector.load %arg4[%c2, %c0_108, %c0_109] : memref<5x128x384xbf16, #tpu.memory_space<vmem>>, vector<1x128x384xbf16>
    %253 = vector.shape_cast %252 : vector<1x128x384xbf16> to vector<128x384xbf16>
    %c2_110 = arith.constant 2 : index
    %c0_111 = arith.constant 0 : index
    %c0_112 = arith.constant 0 : index
    %254 = vector.load %arg5[%c2_110, %c0_111, %c0_112] : memref<5x1x384xf32, #tpu.memory_space<vmem>>, vector<1x1x384xf32>
    %255 = vector.shape_cast %254 : vector<1x1x384xf32> to vector<1x384xf32>
    %256 = arith.truncf %251 : vector<8x128xf32> to vector<8x128xbf16>
    %cst_113 = arith.constant dense<0.000000e+00> : vector<8x384xf32>
    %257 = tpu.matmul %256, %253, %cst_113 {dimension_numbers = #tpu.dot_dimension_numbers<[1], [0], [0], [1], [0, 0, 1, 1], [], []>} : vector<8x128xbf16>, vector<128x384xbf16>, vector<8x384xf32> -> vector<8x384xf32>
    %258 = vector.broadcast %255 : vector<1x384xf32> to vector<8x384xf32>
    %259 = arith.addf %257, %258 : vector<8x384xf32>
    %260 = vector.extract_strided_slice %259 {offsets = [0, 0], sizes = [8, 128], strides = [1, 1]} : vector<8x384xf32> to vector<8x128xf32>
    %261 = vector.extract_strided_slice %259 {offsets = [0, 128], sizes = [8, 128], strides = [1, 1]} : vector<8x384xf32> to vector<8x128xf32>
    %262 = vector.extract_strided_slice %259 {offsets = [0, 256], sizes = [8, 128], strides = [1, 1]} : vector<8x384xf32> to vector<8x128xf32>
    %cst_114 = arith.constant 5.000000e-01 : f32
    %263 = vector.broadcast %cst_114 : f32 to vector<8x128xf32>
    %264 = arith.mulf %263, %262 : vector<8x128xf32>
    %cst_115 = arith.constant 4.471500e-02 : f32
    %265 = vector.broadcast %cst_115 : f32 to vector<8x128xf32>
    %266 = arith.mulf %265, %262 : vector<8x128xf32>
    %267 = arith.mulf %266, %262 : vector<8x128xf32>
    %268 = arith.mulf %267, %262 : vector<8x128xf32>
    %269 = arith.addf %262, %268 : vector<8x128xf32>
    %cst_116 = arith.constant 0.797884583 : f32
    %270 = vector.broadcast %cst_116 : f32 to vector<8x128xf32>
    %271 = arith.mulf %270, %269 : vector<8x128xf32>
    %272 = math.tanh %271 : vector<8x128xf32>
    %cst_117 = arith.constant 1.000000e+00 : f32
    %273 = vector.broadcast %cst_117 : f32 to vector<8x128xf32>
    %274 = arith.addf %273, %272 : vector<8x128xf32>
    %275 = arith.mulf %264, %274 : vector<8x128xf32>
    %c2_118 = arith.constant 2 : index
    %c0_119 = arith.constant 0 : index
    %c0_120 = arith.constant 0 : index
    %276 = vector.load %arg10[%c2_118, %c0_119, %c0_120] : memref<5x1x128xf32, #tpu.memory_space<vmem>>, vector<1x1x128xf32>
    %277 = vector.shape_cast %276 : vector<1x1x128xf32> to vector<1x128xf32>
    %c2_121 = arith.constant 2 : index
    %c0_122 = arith.constant 0 : index
    %c0_123 = arith.constant 0 : index
    %278 = vector.load %arg11[%c2_121, %c0_122, %c0_123] : memref<5x1x128xf32, #tpu.memory_space<vmem>>, vector<1x1x128xf32>
    %279 = vector.shape_cast %278 : vector<1x1x128xf32> to vector<1x128xf32>
    %cst_124 = arith.constant dense<0.000000e+00> : vector<8xf32>
    %280 = vector.multi_reduction <add>, %275, %cst_124 [1] : vector<8x128xf32> to vector<8xf32>
    %281 = vector.shape_cast %280 : vector<8xf32> to vector<8x1xf32>
    %cst_125 = arith.constant 1.280000e+02 : f32
    %282 = vector.broadcast %cst_125 : f32 to vector<8x1xf32>
    %283 = arith.divf %281, %282 : vector<8x1xf32>
    %284 = arith.mulf %275, %275 : vector<8x128xf32>
    %cst_126 = arith.constant dense<0.000000e+00> : vector<8xf32>
    %285 = vector.multi_reduction <add>, %284, %cst_126 [1] : vector<8x128xf32> to vector<8xf32>
    %286 = vector.shape_cast %285 : vector<8xf32> to vector<8x1xf32>
    %cst_127 = arith.constant 1.280000e+02 : f32
    %287 = vector.broadcast %cst_127 : f32 to vector<8x1xf32>
    %288 = arith.divf %286, %287 : vector<8x1xf32>
    %289 = arith.mulf %283, %283 : vector<8x1xf32>
    %290 = arith.subf %288, %289 : vector<8x1xf32>
    %cst_128 = arith.constant 9.99999974E-6 : f32
    %291 = vector.broadcast %cst_128 : f32 to vector<8x1xf32>
    %292 = arith.addf %290, %291 : vector<8x1xf32>
    %293 = math.rsqrt %292 : vector<8x1xf32>
    %294 = arith.truncf %275 : vector<8x128xf32> to vector<8x128xbf16>
    %295 = arith.truncf %283 : vector<8x1xf32> to vector<8x1xbf16>
    %296 = vector.broadcast %295 : vector<8x1xbf16> to vector<8x128xbf16>
    %297 = arith.subf %294, %296 : vector<8x128xbf16>
    %298 = arith.truncf %293 : vector<8x1xf32> to vector<8x1xbf16>
    %299 = vector.broadcast %298 : vector<8x1xbf16> to vector<8x128xbf16>
    %300 = arith.mulf %297, %299 : vector<8x128xbf16>
    %301 = arith.truncf %277 : vector<1x128xf32> to vector<1x128xbf16>
    %302 = vector.broadcast %301 : vector<1x128xbf16> to vector<8x128xbf16>
    %303 = arith.mulf %300, %302 : vector<8x128xbf16>
    %304 = arith.truncf %279 : vector<1x128xf32> to vector<1x128xbf16>
    %305 = vector.broadcast %304 : vector<1x128xbf16> to vector<8x128xbf16>
    %306 = arith.addf %303, %305 : vector<8x128xbf16>
    %c2_129 = arith.constant 2 : index
    %c0_130 = arith.constant 0 : index
    %c0_131 = arith.constant 0 : index
    %307 = vector.load %arg12[%c2_129, %c0_130, %c0_131] : memref<5x128x128xbf16, #tpu.memory_space<vmem>>, vector<1x128x128xbf16>
    %308 = vector.shape_cast %307 : vector<1x128x128xbf16> to vector<128x128xbf16>
    %c2_132 = arith.constant 2 : index
    %c0_133 = arith.constant 0 : index
    %c0_134 = arith.constant 0 : index
    %309 = vector.load %arg13[%c2_132, %c0_133, %c0_134] : memref<5x1x128xf32, #tpu.memory_space<vmem>>, vector<1x1x128xf32>
    %310 = vector.shape_cast %309 : vector<1x1x128xf32> to vector<1x128xf32>
    %cst_135 = arith.constant dense<0.000000e+00> : vector<8x128xf32>
    %311 = tpu.matmul %306, %308, %cst_135 {dimension_numbers = #tpu.dot_dimension_numbers<[1], [0], [0], [1], [0, 0, 1, 1], [], []>} : vector<8x128xbf16>, vector<128x128xbf16>, vector<8x128xf32> -> vector<8x128xf32>
    %312 = vector.broadcast %310 : vector<1x128xf32> to vector<8x128xf32>
    %313 = arith.addf %311, %312 : vector<8x128xf32>
    %314 = arith.truncf %313 : vector<8x128xf32> to vector<8x128xbf16>
    %315 = arith.negf %314 : vector<8x128xbf16>
    %316 = math.exp %315 : vector<8x128xbf16>
    %cst_136 = arith.constant 1.000000e+00 : bf16
    %317 = vector.broadcast %cst_136 : bf16 to vector<8x128xbf16>
    %318 = arith.addf %317, %316 : vector<8x128xbf16>
    %319 = arith.divf %317, %318 : vector<8x128xbf16>
    %320 = arith.truncf %261 : vector<8x128xf32> to vector<8x128xbf16>
    %321 = arith.mulf %319, %320 : vector<8x128xbf16>
    %322 = arith.extf %321 : vector<8x128xbf16> to vector<8x128xf32>
    %c2_137 = arith.constant 2 : index
    %c0_138 = arith.constant 0 : index
    %c0_139 = arith.constant 0 : index
    %323 = vector.load %arg6[%c2_137, %c0_138, %c0_139] : memref<5x1x128xf32, #tpu.memory_space<vmem>>, vector<1x1x128xf32>
    %324 = vector.shape_cast %323 : vector<1x1x128xf32> to vector<1x128xf32>
    %c2_140 = arith.constant 2 : index
    %c0_141 = arith.constant 0 : index
    %c0_142 = arith.constant 0 : index
    %325 = vector.load %arg7[%c2_140, %c0_141, %c0_142] : memref<5x1x128xf32, #tpu.memory_space<vmem>>, vector<1x1x128xf32>
    %326 = vector.shape_cast %325 : vector<1x1x128xf32> to vector<1x128xf32>
    %cst_143 = arith.constant dense<0.000000e+00> : vector<8xf32>
    %327 = vector.multi_reduction <add>, %260, %cst_143 [1] : vector<8x128xf32> to vector<8xf32>
    %328 = vector.shape_cast %327 : vector<8xf32> to vector<8x1xf32>
    %cst_144 = arith.constant 1.280000e+02 : f32
    %329 = vector.broadcast %cst_144 : f32 to vector<8x1xf32>
    %330 = arith.divf %328, %329 : vector<8x1xf32>
    %331 = arith.mulf %260, %260 : vector<8x128xf32>
    %cst_145 = arith.constant dense<0.000000e+00> : vector<8xf32>
    %332 = vector.multi_reduction <add>, %331, %cst_145 [1] : vector<8x128xf32> to vector<8xf32>
    %333 = vector.shape_cast %332 : vector<8xf32> to vector<8x1xf32>
    %cst_146 = arith.constant 1.280000e+02 : f32
    %334 = vector.broadcast %cst_146 : f32 to vector<8x1xf32>
    %335 = arith.divf %333, %334 : vector<8x1xf32>
    %336 = arith.mulf %330, %330 : vector<8x1xf32>
    %337 = arith.subf %335, %336 : vector<8x1xf32>
    %cst_147 = arith.constant 9.99999974E-6 : f32
    %338 = vector.broadcast %cst_147 : f32 to vector<8x1xf32>
    %339 = arith.addf %337, %338 : vector<8x1xf32>
    %340 = math.rsqrt %339 : vector<8x1xf32>
    %341 = arith.truncf %260 : vector<8x128xf32> to vector<8x128xbf16>
    %342 = arith.truncf %330 : vector<8x1xf32> to vector<8x1xbf16>
    %343 = vector.broadcast %342 : vector<8x1xbf16> to vector<8x128xbf16>
    %344 = arith.subf %341, %343 : vector<8x128xbf16>
    %345 = arith.truncf %340 : vector<8x1xf32> to vector<8x1xbf16>
    %346 = vector.broadcast %345 : vector<8x1xbf16> to vector<8x128xbf16>
    %347 = arith.mulf %344, %346 : vector<8x128xbf16>
    %348 = arith.truncf %324 : vector<1x128xf32> to vector<1x128xbf16>
    %349 = vector.broadcast %348 : vector<1x128xbf16> to vector<8x128xbf16>
    %350 = arith.mulf %347, %349 : vector<8x128xbf16>
    %351 = arith.truncf %326 : vector<1x128xf32> to vector<1x128xbf16>
    %352 = vector.broadcast %351 : vector<1x128xbf16> to vector<8x128xbf16>
    %353 = arith.addf %350, %352 : vector<8x128xbf16>
    %cst_148 = arith.constant 5.000000e-01 : bf16
    %354 = vector.broadcast %cst_148 : bf16 to vector<8x128xbf16>
    %355 = arith.mulf %354, %353 : vector<8x128xbf16>
    %cst_149 = arith.constant 4.467770e-02 : bf16
    %356 = vector.broadcast %cst_149 : bf16 to vector<8x128xbf16>
    %357 = arith.mulf %356, %353 : vector<8x128xbf16>
    %358 = arith.mulf %357, %353 : vector<8x128xbf16>
    %359 = arith.mulf %358, %353 : vector<8x128xbf16>
    %360 = arith.addf %353, %359 : vector<8x128xbf16>
    %cst_150 = arith.constant 7.968750e-01 : bf16
    %361 = vector.broadcast %cst_150 : bf16 to vector<8x128xbf16>
    %362 = arith.mulf %361, %360 : vector<8x128xbf16>
    %363 = math.tanh %362 : vector<8x128xbf16>
    %cst_151 = arith.constant 1.000000e+00 : bf16
    %364 = vector.broadcast %cst_151 : bf16 to vector<8x128xbf16>
    %365 = arith.addf %364, %363 : vector<8x128xbf16>
    %366 = arith.mulf %355, %365 : vector<8x128xbf16>
    %c2_152 = arith.constant 2 : index
    %c0_153 = arith.constant 0 : index
    %c0_154 = arith.constant 0 : index
    %367 = vector.load %arg8[%c2_152, %c0_153, %c0_154] : memref<5x128x128xbf16, #tpu.memory_space<vmem>>, vector<1x128x128xbf16>
    %368 = vector.shape_cast %367 : vector<1x128x128xbf16> to vector<128x128xbf16>
    %c2_155 = arith.constant 2 : index
    %c0_156 = arith.constant 0 : index
    %c0_157 = arith.constant 0 : index
    %369 = vector.load %arg9[%c2_155, %c0_156, %c0_157] : memref<5x1x128xf32, #tpu.memory_space<vmem>>, vector<1x1x128xf32>
    %370 = vector.shape_cast %369 : vector<1x1x128xf32> to vector<1x128xf32>
    %cst_158 = arith.constant dense<0.000000e+00> : vector<8x128xf32>
    %371 = tpu.matmul %366, %368, %cst_158 {dimension_numbers = #tpu.dot_dimension_numbers<[1], [0], [0], [1], [0, 0, 1, 1], [], []>} : vector<8x128xbf16>, vector<128x128xbf16>, vector<8x128xf32> -> vector<8x128xf32>
    %372 = vector.broadcast %370 : vector<1x128xf32> to vector<8x128xf32>
    %373 = arith.addf %371, %372 : vector<8x128xf32>
    %374 = arith.addf %373, %322 : vector<8x128xf32>
    %c3 = arith.constant 3 : index
    %c0_159 = arith.constant 0 : index
    %c0_160 = arith.constant 0 : index
    %375 = vector.load %arg4[%c3, %c0_159, %c0_160] : memref<5x128x384xbf16, #tpu.memory_space<vmem>>, vector<1x128x384xbf16>
    %376 = vector.shape_cast %375 : vector<1x128x384xbf16> to vector<128x384xbf16>
    %c3_161 = arith.constant 3 : index
    %c0_162 = arith.constant 0 : index
    %c0_163 = arith.constant 0 : index
    %377 = vector.load %arg5[%c3_161, %c0_162, %c0_163] : memref<5x1x384xf32, #tpu.memory_space<vmem>>, vector<1x1x384xf32>
    %378 = vector.shape_cast %377 : vector<1x1x384xf32> to vector<1x384xf32>
    %379 = arith.truncf %374 : vector<8x128xf32> to vector<8x128xbf16>
    %cst_164 = arith.constant dense<0.000000e+00> : vector<8x384xf32>
    %380 = tpu.matmul %379, %376, %cst_164 {dimension_numbers = #tpu.dot_dimension_numbers<[1], [0], [0], [1], [0, 0, 1, 1], [], []>} : vector<8x128xbf16>, vector<128x384xbf16>, vector<8x384xf32> -> vector<8x384xf32>
    %381 = vector.broadcast %378 : vector<1x384xf32> to vector<8x384xf32>
    %382 = arith.addf %380, %381 : vector<8x384xf32>
    %383 = vector.extract_strided_slice %382 {offsets = [0, 0], sizes = [8, 128], strides = [1, 1]} : vector<8x384xf32> to vector<8x128xf32>
    %384 = vector.extract_strided_slice %382 {offsets = [0, 128], sizes = [8, 128], strides = [1, 1]} : vector<8x384xf32> to vector<8x128xf32>
    %385 = vector.extract_strided_slice %382 {offsets = [0, 256], sizes = [8, 128], strides = [1, 1]} : vector<8x384xf32> to vector<8x128xf32>
    %cst_165 = arith.constant 5.000000e-01 : f32
    %386 = vector.broadcast %cst_165 : f32 to vector<8x128xf32>
    %387 = arith.mulf %386, %385 : vector<8x128xf32>
    %cst_166 = arith.constant 4.471500e-02 : f32
    %388 = vector.broadcast %cst_166 : f32 to vector<8x128xf32>
    %389 = arith.mulf %388, %385 : vector<8x128xf32>
    %390 = arith.mulf %389, %385 : vector<8x128xf32>
    %391 = arith.mulf %390, %385 : vector<8x128xf32>
    %392 = arith.addf %385, %391 : vector<8x128xf32>
    %cst_167 = arith.constant 0.797884583 : f32
    %393 = vector.broadcast %cst_167 : f32 to vector<8x128xf32>
    %394 = arith.mulf %393, %392 : vector<8x128xf32>
    %395 = math.tanh %394 : vector<8x128xf32>
    %cst_168 = arith.constant 1.000000e+00 : f32
    %396 = vector.broadcast %cst_168 : f32 to vector<8x128xf32>
    %397 = arith.addf %396, %395 : vector<8x128xf32>
    %398 = arith.mulf %387, %397 : vector<8x128xf32>
    %c3_169 = arith.constant 3 : index
    %c0_170 = arith.constant 0 : index
    %c0_171 = arith.constant 0 : index
    %399 = vector.load %arg10[%c3_169, %c0_170, %c0_171] : memref<5x1x128xf32, #tpu.memory_space<vmem>>, vector<1x1x128xf32>
    %400 = vector.shape_cast %399 : vector<1x1x128xf32> to vector<1x128xf32>
    %c3_172 = arith.constant 3 : index
    %c0_173 = arith.constant 0 : index
    %c0_174 = arith.constant 0 : index
    %401 = vector.load %arg11[%c3_172, %c0_173, %c0_174] : memref<5x1x128xf32, #tpu.memory_space<vmem>>, vector<1x1x128xf32>
    %402 = vector.shape_cast %401 : vector<1x1x128xf32> to vector<1x128xf32>
    %cst_175 = arith.constant dense<0.000000e+00> : vector<8xf32>
    %403 = vector.multi_reduction <add>, %398, %cst_175 [1] : vector<8x128xf32> to vector<8xf32>
    %404 = vector.shape_cast %403 : vector<8xf32> to vector<8x1xf32>
    %cst_176 = arith.constant 1.280000e+02 : f32
    %405 = vector.broadcast %cst_176 : f32 to vector<8x1xf32>
    %406 = arith.divf %404, %405 : vector<8x1xf32>
    %407 = arith.mulf %398, %398 : vector<8x128xf32>
    %cst_177 = arith.constant dense<0.000000e+00> : vector<8xf32>
    %408 = vector.multi_reduction <add>, %407, %cst_177 [1] : vector<8x128xf32> to vector<8xf32>
    %409 = vector.shape_cast %408 : vector<8xf32> to vector<8x1xf32>
    %cst_178 = arith.constant 1.280000e+02 : f32
    %410 = vector.broadcast %cst_178 : f32 to vector<8x1xf32>
    %411 = arith.divf %409, %410 : vector<8x1xf32>
    %412 = arith.mulf %406, %406 : vector<8x1xf32>
    %413 = arith.subf %411, %412 : vector<8x1xf32>
    %cst_179 = arith.constant 9.99999974E-6 : f32
    %414 = vector.broadcast %cst_179 : f32 to vector<8x1xf32>
    %415 = arith.addf %413, %414 : vector<8x1xf32>
    %416 = math.rsqrt %415 : vector<8x1xf32>
    %417 = arith.truncf %398 : vector<8x128xf32> to vector<8x128xbf16>
    %418 = arith.truncf %406 : vector<8x1xf32> to vector<8x1xbf16>
    %419 = vector.broadcast %418 : vector<8x1xbf16> to vector<8x128xbf16>
    %420 = arith.subf %417, %419 : vector<8x128xbf16>
    %421 = arith.truncf %416 : vector<8x1xf32> to vector<8x1xbf16>
    %422 = vector.broadcast %421 : vector<8x1xbf16> to vector<8x128xbf16>
    %423 = arith.mulf %420, %422 : vector<8x128xbf16>
    %424 = arith.truncf %400 : vector<1x128xf32> to vector<1x128xbf16>
    %425 = vector.broadcast %424 : vector<1x128xbf16> to vector<8x128xbf16>
    %426 = arith.mulf %423, %425 : vector<8x128xbf16>
    %427 = arith.truncf %402 : vector<1x128xf32> to vector<1x128xbf16>
    %428 = vector.broadcast %427 : vector<1x128xbf16> to vector<8x128xbf16>
    %429 = arith.addf %426, %428 : vector<8x128xbf16>
    %c3_180 = arith.constant 3 : index
    %c0_181 = arith.constant 0 : index
    %c0_182 = arith.constant 0 : index
    %430 = vector.load %arg12[%c3_180, %c0_181, %c0_182] : memref<5x128x128xbf16, #tpu.memory_space<vmem>>, vector<1x128x128xbf16>
    %431 = vector.shape_cast %430 : vector<1x128x128xbf16> to vector<128x128xbf16>
    %c3_183 = arith.constant 3 : index
    %c0_184 = arith.constant 0 : index
    %c0_185 = arith.constant 0 : index
    %432 = vector.load %arg13[%c3_183, %c0_184, %c0_185] : memref<5x1x128xf32, #tpu.memory_space<vmem>>, vector<1x1x128xf32>
    %433 = vector.shape_cast %432 : vector<1x1x128xf32> to vector<1x128xf32>
    %cst_186 = arith.constant dense<0.000000e+00> : vector<8x128xf32>
    %434 = tpu.matmul %429, %431, %cst_186 {dimension_numbers = #tpu.dot_dimension_numbers<[1], [0], [0], [1], [0, 0, 1, 1], [], []>} : vector<8x128xbf16>, vector<128x128xbf16>, vector<8x128xf32> -> vector<8x128xf32>
    %435 = vector.broadcast %433 : vector<1x128xf32> to vector<8x128xf32>
    %436 = arith.addf %434, %435 : vector<8x128xf32>
    %437 = arith.truncf %436 : vector<8x128xf32> to vector<8x128xbf16>
    %438 = arith.negf %437 : vector<8x128xbf16>
    %439 = math.exp %438 : vector<8x128xbf16>
    %cst_187 = arith.constant 1.000000e+00 : bf16
    %440 = vector.broadcast %cst_187 : bf16 to vector<8x128xbf16>
    %441 = arith.addf %440, %439 : vector<8x128xbf16>
    %442 = arith.divf %440, %441 : vector<8x128xbf16>
    %443 = arith.truncf %384 : vector<8x128xf32> to vector<8x128xbf16>
    %444 = arith.mulf %442, %443 : vector<8x128xbf16>
    %445 = arith.extf %444 : vector<8x128xbf16> to vector<8x128xf32>
    %c3_188 = arith.constant 3 : index
    %c0_189 = arith.constant 0 : index
    %c0_190 = arith.constant 0 : index
    %446 = vector.load %arg6[%c3_188, %c0_189, %c0_190] : memref<5x1x128xf32, #tpu.memory_space<vmem>>, vector<1x1x128xf32>
    %447 = vector.shape_cast %446 : vector<1x1x128xf32> to vector<1x128xf32>
    %c3_191 = arith.constant 3 : index
    %c0_192 = arith.constant 0 : index
    %c0_193 = arith.constant 0 : index
    %448 = vector.load %arg7[%c3_191, %c0_192, %c0_193] : memref<5x1x128xf32, #tpu.memory_space<vmem>>, vector<1x1x128xf32>
    %449 = vector.shape_cast %448 : vector<1x1x128xf32> to vector<1x128xf32>
    %cst_194 = arith.constant dense<0.000000e+00> : vector<8xf32>
    %450 = vector.multi_reduction <add>, %383, %cst_194 [1] : vector<8x128xf32> to vector<8xf32>
    %451 = vector.shape_cast %450 : vector<8xf32> to vector<8x1xf32>
    %cst_195 = arith.constant 1.280000e+02 : f32
    %452 = vector.broadcast %cst_195 : f32 to vector<8x1xf32>
    %453 = arith.divf %451, %452 : vector<8x1xf32>
    %454 = arith.mulf %383, %383 : vector<8x128xf32>
    %cst_196 = arith.constant dense<0.000000e+00> : vector<8xf32>
    %455 = vector.multi_reduction <add>, %454, %cst_196 [1] : vector<8x128xf32> to vector<8xf32>
    %456 = vector.shape_cast %455 : vector<8xf32> to vector<8x1xf32>
    %cst_197 = arith.constant 1.280000e+02 : f32
    %457 = vector.broadcast %cst_197 : f32 to vector<8x1xf32>
    %458 = arith.divf %456, %457 : vector<8x1xf32>
    %459 = arith.mulf %453, %453 : vector<8x1xf32>
    %460 = arith.subf %458, %459 : vector<8x1xf32>
    %cst_198 = arith.constant 9.99999974E-6 : f32
    %461 = vector.broadcast %cst_198 : f32 to vector<8x1xf32>
    %462 = arith.addf %460, %461 : vector<8x1xf32>
    %463 = math.rsqrt %462 : vector<8x1xf32>
    %464 = arith.truncf %383 : vector<8x128xf32> to vector<8x128xbf16>
    %465 = arith.truncf %453 : vector<8x1xf32> to vector<8x1xbf16>
    %466 = vector.broadcast %465 : vector<8x1xbf16> to vector<8x128xbf16>
    %467 = arith.subf %464, %466 : vector<8x128xbf16>
    %468 = arith.truncf %463 : vector<8x1xf32> to vector<8x1xbf16>
    %469 = vector.broadcast %468 : vector<8x1xbf16> to vector<8x128xbf16>
    %470 = arith.mulf %467, %469 : vector<8x128xbf16>
    %471 = arith.truncf %447 : vector<1x128xf32> to vector<1x128xbf16>
    %472 = vector.broadcast %471 : vector<1x128xbf16> to vector<8x128xbf16>
    %473 = arith.mulf %470, %472 : vector<8x128xbf16>
    %474 = arith.truncf %449 : vector<1x128xf32> to vector<1x128xbf16>
    %475 = vector.broadcast %474 : vector<1x128xbf16> to vector<8x128xbf16>
    %476 = arith.addf %473, %475 : vector<8x128xbf16>
    %cst_199 = arith.constant 5.000000e-01 : bf16
    %477 = vector.broadcast %cst_199 : bf16 to vector<8x128xbf16>
    %478 = arith.mulf %477, %476 : vector<8x128xbf16>
    %cst_200 = arith.constant 4.467770e-02 : bf16
    %479 = vector.broadcast %cst_200 : bf16 to vector<8x128xbf16>
    %480 = arith.mulf %479, %476 : vector<8x128xbf16>
    %481 = arith.mulf %480, %476 : vector<8x128xbf16>
    %482 = arith.mulf %481, %476 : vector<8x128xbf16>
    %483 = arith.addf %476, %482 : vector<8x128xbf16>
    %cst_201 = arith.constant 7.968750e-01 : bf16
    %484 = vector.broadcast %cst_201 : bf16 to vector<8x128xbf16>
    %485 = arith.mulf %484, %483 : vector<8x128xbf16>
    %486 = math.tanh %485 : vector<8x128xbf16>
    %cst_202 = arith.constant 1.000000e+00 : bf16
    %487 = vector.broadcast %cst_202 : bf16 to vector<8x128xbf16>
    %488 = arith.addf %487, %486 : vector<8x128xbf16>
    %489 = arith.mulf %478, %488 : vector<8x128xbf16>
    %c3_203 = arith.constant 3 : index
    %c0_204 = arith.constant 0 : index
    %c0_205 = arith.constant 0 : index
    %490 = vector.load %arg8[%c3_203, %c0_204, %c0_205] : memref<5x128x128xbf16, #tpu.memory_space<vmem>>, vector<1x128x128xbf16>
    %491 = vector.shape_cast %490 : vector<1x128x128xbf16> to vector<128x128xbf16>
    %c3_206 = arith.constant 3 : index
    %c0_207 = arith.constant 0 : index
    %c0_208 = arith.constant 0 : index
    %492 = vector.load %arg9[%c3_206, %c0_207, %c0_208] : memref<5x1x128xf32, #tpu.memory_space<vmem>>, vector<1x1x128xf32>
    %493 = vector.shape_cast %492 : vector<1x1x128xf32> to vector<1x128xf32>
    %cst_209 = arith.constant dense<0.000000e+00> : vector<8x128xf32>
    %494 = tpu.matmul %489, %491, %cst_209 {dimension_numbers = #tpu.dot_dimension_numbers<[1], [0], [0], [1], [0, 0, 1, 1], [], []>} : vector<8x128xbf16>, vector<128x128xbf16>, vector<8x128xf32> -> vector<8x128xf32>
    %495 = vector.broadcast %493 : vector<1x128xf32> to vector<8x128xf32>
    %496 = arith.addf %494, %495 : vector<8x128xf32>
    %497 = arith.addf %496, %445 : vector<8x128xf32>
    %c4 = arith.constant 4 : index
    %c0_210 = arith.constant 0 : index
    %c0_211 = arith.constant 0 : index
    %498 = vector.load %arg4[%c4, %c0_210, %c0_211] : memref<5x128x384xbf16, #tpu.memory_space<vmem>>, vector<1x128x384xbf16>
    %499 = vector.shape_cast %498 : vector<1x128x384xbf16> to vector<128x384xbf16>
    %c4_212 = arith.constant 4 : index
    %c0_213 = arith.constant 0 : index
    %c0_214 = arith.constant 0 : index
    %500 = vector.load %arg5[%c4_212, %c0_213, %c0_214] : memref<5x1x384xf32, #tpu.memory_space<vmem>>, vector<1x1x384xf32>
    %501 = vector.shape_cast %500 : vector<1x1x384xf32> to vector<1x384xf32>
    %502 = arith.truncf %497 : vector<8x128xf32> to vector<8x128xbf16>
    %cst_215 = arith.constant dense<0.000000e+00> : vector<8x384xf32>
    %503 = tpu.matmul %502, %499, %cst_215 {dimension_numbers = #tpu.dot_dimension_numbers<[1], [0], [0], [1], [0, 0, 1, 1], [], []>} : vector<8x128xbf16>, vector<128x384xbf16>, vector<8x384xf32> -> vector<8x384xf32>
    %504 = vector.broadcast %501 : vector<1x384xf32> to vector<8x384xf32>
    %505 = arith.addf %503, %504 : vector<8x384xf32>
    %506 = vector.extract_strided_slice %505 {offsets = [0, 0], sizes = [8, 128], strides = [1, 1]} : vector<8x384xf32> to vector<8x128xf32>
    %507 = vector.extract_strided_slice %505 {offsets = [0, 128], sizes = [8, 128], strides = [1, 1]} : vector<8x384xf32> to vector<8x128xf32>
    %508 = vector.extract_strided_slice %505 {offsets = [0, 256], sizes = [8, 128], strides = [1, 1]} : vector<8x384xf32> to vector<8x128xf32>
    %cst_216 = arith.constant 5.000000e-01 : f32
    %509 = vector.broadcast %cst_216 : f32 to vector<8x128xf32>
    %510 = arith.mulf %509, %508 : vector<8x128xf32>
    %cst_217 = arith.constant 4.471500e-02 : f32
    %511 = vector.broadcast %cst_217 : f32 to vector<8x128xf32>
    %512 = arith.mulf %511, %508 : vector<8x128xf32>
    %513 = arith.mulf %512, %508 : vector<8x128xf32>
    %514 = arith.mulf %513, %508 : vector<8x128xf32>
    %515 = arith.addf %508, %514 : vector<8x128xf32>
    %cst_218 = arith.constant 0.797884583 : f32
    %516 = vector.broadcast %cst_218 : f32 to vector<8x128xf32>
    %517 = arith.mulf %516, %515 : vector<8x128xf32>
    %518 = math.tanh %517 : vector<8x128xf32>
    %cst_219 = arith.constant 1.000000e+00 : f32
    %519 = vector.broadcast %cst_219 : f32 to vector<8x128xf32>
    %520 = arith.addf %519, %518 : vector<8x128xf32>
    %521 = arith.mulf %510, %520 : vector<8x128xf32>
    %c4_220 = arith.constant 4 : index
    %c0_221 = arith.constant 0 : index
    %c0_222 = arith.constant 0 : index
    %522 = vector.load %arg10[%c4_220, %c0_221, %c0_222] : memref<5x1x128xf32, #tpu.memory_space<vmem>>, vector<1x1x128xf32>
    %523 = vector.shape_cast %522 : vector<1x1x128xf32> to vector<1x128xf32>
    %c4_223 = arith.constant 4 : index
    %c0_224 = arith.constant 0 : index
    %c0_225 = arith.constant 0 : index
    %524 = vector.load %arg11[%c4_223, %c0_224, %c0_225] : memref<5x1x128xf32, #tpu.memory_space<vmem>>, vector<1x1x128xf32>
    %525 = vector.shape_cast %524 : vector<1x1x128xf32> to vector<1x128xf32>
    %cst_226 = arith.constant dense<0.000000e+00> : vector<8xf32>
    %526 = vector.multi_reduction <add>, %521, %cst_226 [1] : vector<8x128xf32> to vector<8xf32>
    %527 = vector.shape_cast %526 : vector<8xf32> to vector<8x1xf32>
    %cst_227 = arith.constant 1.280000e+02 : f32
    %528 = vector.broadcast %cst_227 : f32 to vector<8x1xf32>
    %529 = arith.divf %527, %528 : vector<8x1xf32>
    %530 = arith.mulf %521, %521 : vector<8x128xf32>
    %cst_228 = arith.constant dense<0.000000e+00> : vector<8xf32>
    %531 = vector.multi_reduction <add>, %530, %cst_228 [1] : vector<8x128xf32> to vector<8xf32>
    %532 = vector.shape_cast %531 : vector<8xf32> to vector<8x1xf32>
    %cst_229 = arith.constant 1.280000e+02 : f32
    %533 = vector.broadcast %cst_229 : f32 to vector<8x1xf32>
    %534 = arith.divf %532, %533 : vector<8x1xf32>
    %535 = arith.mulf %529, %529 : vector<8x1xf32>
    %536 = arith.subf %534, %535 : vector<8x1xf32>
    %cst_230 = arith.constant 9.99999974E-6 : f32
    %537 = vector.broadcast %cst_230 : f32 to vector<8x1xf32>
    %538 = arith.addf %536, %537 : vector<8x1xf32>
    %539 = math.rsqrt %538 : vector<8x1xf32>
    %540 = arith.truncf %521 : vector<8x128xf32> to vector<8x128xbf16>
    %541 = arith.truncf %529 : vector<8x1xf32> to vector<8x1xbf16>
    %542 = vector.broadcast %541 : vector<8x1xbf16> to vector<8x128xbf16>
    %543 = arith.subf %540, %542 : vector<8x128xbf16>
    %544 = arith.truncf %539 : vector<8x1xf32> to vector<8x1xbf16>
    %545 = vector.broadcast %544 : vector<8x1xbf16> to vector<8x128xbf16>
    %546 = arith.mulf %543, %545 : vector<8x128xbf16>
    %547 = arith.truncf %523 : vector<1x128xf32> to vector<1x128xbf16>
    %548 = vector.broadcast %547 : vector<1x128xbf16> to vector<8x128xbf16>
    %549 = arith.mulf %546, %548 : vector<8x128xbf16>
    %550 = arith.truncf %525 : vector<1x128xf32> to vector<1x128xbf16>
    %551 = vector.broadcast %550 : vector<1x128xbf16> to vector<8x128xbf16>
    %552 = arith.addf %549, %551 : vector<8x128xbf16>
    %c4_231 = arith.constant 4 : index
    %c0_232 = arith.constant 0 : index
    %c0_233 = arith.constant 0 : index
    %553 = vector.load %arg12[%c4_231, %c0_232, %c0_233] : memref<5x128x128xbf16, #tpu.memory_space<vmem>>, vector<1x128x128xbf16>
    %554 = vector.shape_cast %553 : vector<1x128x128xbf16> to vector<128x128xbf16>
    %c4_234 = arith.constant 4 : index
    %c0_235 = arith.constant 0 : index
    %c0_236 = arith.constant 0 : index
    %555 = vector.load %arg13[%c4_234, %c0_235, %c0_236] : memref<5x1x128xf32, #tpu.memory_space<vmem>>, vector<1x1x128xf32>
    %556 = vector.shape_cast %555 : vector<1x1x128xf32> to vector<1x128xf32>
    %cst_237 = arith.constant dense<0.000000e+00> : vector<8x128xf32>
    %557 = tpu.matmul %552, %554, %cst_237 {dimension_numbers = #tpu.dot_dimension_numbers<[1], [0], [0], [1], [0, 0, 1, 1], [], []>} : vector<8x128xbf16>, vector<128x128xbf16>, vector<8x128xf32> -> vector<8x128xf32>
    %558 = vector.broadcast %556 : vector<1x128xf32> to vector<8x128xf32>
    %559 = arith.addf %557, %558 : vector<8x128xf32>
    %560 = arith.truncf %559 : vector<8x128xf32> to vector<8x128xbf16>
    %561 = arith.negf %560 : vector<8x128xbf16>
    %562 = math.exp %561 : vector<8x128xbf16>
    %cst_238 = arith.constant 1.000000e+00 : bf16
    %563 = vector.broadcast %cst_238 : bf16 to vector<8x128xbf16>
    %564 = arith.addf %563, %562 : vector<8x128xbf16>
    %565 = arith.divf %563, %564 : vector<8x128xbf16>
    %566 = arith.truncf %507 : vector<8x128xf32> to vector<8x128xbf16>
    %567 = arith.mulf %565, %566 : vector<8x128xbf16>
    %568 = arith.extf %567 : vector<8x128xbf16> to vector<8x128xf32>
    %c4_239 = arith.constant 4 : index
    %c0_240 = arith.constant 0 : index
    %c0_241 = arith.constant 0 : index
    %569 = vector.load %arg6[%c4_239, %c0_240, %c0_241] : memref<5x1x128xf32, #tpu.memory_space<vmem>>, vector<1x1x128xf32>
    %570 = vector.shape_cast %569 : vector<1x1x128xf32> to vector<1x128xf32>
    %c4_242 = arith.constant 4 : index
    %c0_243 = arith.constant 0 : index
    %c0_244 = arith.constant 0 : index
    %571 = vector.load %arg7[%c4_242, %c0_243, %c0_244] : memref<5x1x128xf32, #tpu.memory_space<vmem>>, vector<1x1x128xf32>
    %572 = vector.shape_cast %571 : vector<1x1x128xf32> to vector<1x128xf32>
    %cst_245 = arith.constant dense<0.000000e+00> : vector<8xf32>
    %573 = vector.multi_reduction <add>, %506, %cst_245 [1] : vector<8x128xf32> to vector<8xf32>
    %574 = vector.shape_cast %573 : vector<8xf32> to vector<8x1xf32>
    %cst_246 = arith.constant 1.280000e+02 : f32
    %575 = vector.broadcast %cst_246 : f32 to vector<8x1xf32>
    %576 = arith.divf %574, %575 : vector<8x1xf32>
    %577 = arith.mulf %506, %506 : vector<8x128xf32>
    %cst_247 = arith.constant dense<0.000000e+00> : vector<8xf32>
    %578 = vector.multi_reduction <add>, %577, %cst_247 [1] : vector<8x128xf32> to vector<8xf32>
    %579 = vector.shape_cast %578 : vector<8xf32> to vector<8x1xf32>
    %cst_248 = arith.constant 1.280000e+02 : f32
    %580 = vector.broadcast %cst_248 : f32 to vector<8x1xf32>
    %581 = arith.divf %579, %580 : vector<8x1xf32>
    %582 = arith.mulf %576, %576 : vector<8x1xf32>
    %583 = arith.subf %581, %582 : vector<8x1xf32>
    %cst_249 = arith.constant 9.99999974E-6 : f32
    %584 = vector.broadcast %cst_249 : f32 to vector<8x1xf32>
    %585 = arith.addf %583, %584 : vector<8x1xf32>
    %586 = math.rsqrt %585 : vector<8x1xf32>
    %587 = arith.truncf %506 : vector<8x128xf32> to vector<8x128xbf16>
    %588 = arith.truncf %576 : vector<8x1xf32> to vector<8x1xbf16>
    %589 = vector.broadcast %588 : vector<8x1xbf16> to vector<8x128xbf16>
    %590 = arith.subf %587, %589 : vector<8x128xbf16>
    %591 = arith.truncf %586 : vector<8x1xf32> to vector<8x1xbf16>
    %592 = vector.broadcast %591 : vector<8x1xbf16> to vector<8x128xbf16>
    %593 = arith.mulf %590, %592 : vector<8x128xbf16>
    %594 = arith.truncf %570 : vector<1x128xf32> to vector<1x128xbf16>
    %595 = vector.broadcast %594 : vector<1x128xbf16> to vector<8x128xbf16>
    %596 = arith.mulf %593, %595 : vector<8x128xbf16>
    %597 = arith.truncf %572 : vector<1x128xf32> to vector<1x128xbf16>
    %598 = vector.broadcast %597 : vector<1x128xbf16> to vector<8x128xbf16>
    %599 = arith.addf %596, %598 : vector<8x128xbf16>
    %cst_250 = arith.constant 5.000000e-01 : bf16
    %600 = vector.broadcast %cst_250 : bf16 to vector<8x128xbf16>
    %601 = arith.mulf %600, %599 : vector<8x128xbf16>
    %cst_251 = arith.constant 4.467770e-02 : bf16
    %602 = vector.broadcast %cst_251 : bf16 to vector<8x128xbf16>
    %603 = arith.mulf %602, %599 : vector<8x128xbf16>
    %604 = arith.mulf %603, %599 : vector<8x128xbf16>
    %605 = arith.mulf %604, %599 : vector<8x128xbf16>
    %606 = arith.addf %599, %605 : vector<8x128xbf16>
    %cst_252 = arith.constant 7.968750e-01 : bf16
    %607 = vector.broadcast %cst_252 : bf16 to vector<8x128xbf16>
    %608 = arith.mulf %607, %606 : vector<8x128xbf16>
    %609 = math.tanh %608 : vector<8x128xbf16>
    %cst_253 = arith.constant 1.000000e+00 : bf16
    %610 = vector.broadcast %cst_253 : bf16 to vector<8x128xbf16>
    %611 = arith.addf %610, %609 : vector<8x128xbf16>
    %612 = arith.mulf %601, %611 : vector<8x128xbf16>
    %c4_254 = arith.constant 4 : index
    %c0_255 = arith.constant 0 : index
    %c0_256 = arith.constant 0 : index
    %613 = vector.load %arg8[%c4_254, %c0_255, %c0_256] : memref<5x128x128xbf16, #tpu.memory_space<vmem>>, vector<1x128x128xbf16>
    %614 = vector.shape_cast %613 : vector<1x128x128xbf16> to vector<128x128xbf16>
    %c4_257 = arith.constant 4 : index
    %c0_258 = arith.constant 0 : index
    %c0_259 = arith.constant 0 : index
    %615 = vector.load %arg9[%c4_257, %c0_258, %c0_259] : memref<5x1x128xf32, #tpu.memory_space<vmem>>, vector<1x1x128xf32>
    %616 = vector.shape_cast %615 : vector<1x1x128xf32> to vector<1x128xf32>
    %cst_260 = arith.constant dense<0.000000e+00> : vector<8x128xf32>
    %617 = tpu.matmul %612, %614, %cst_260 {dimension_numbers = #tpu.dot_dimension_numbers<[1], [0], [0], [1], [0, 0, 1, 1], [], []>} : vector<8x128xbf16>, vector<128x128xbf16>, vector<8x128xf32> -> vector<8x128xf32>
    %618 = vector.broadcast %616 : vector<1x128xf32> to vector<8x128xf32>
    %619 = arith.addf %617, %618 : vector<8x128xf32>
    %620 = arith.addf %619, %568 : vector<8x128xf32>
    %c0_261 = arith.constant 0 : index
    %c0_262 = arith.constant 0 : index
    %621 = vector.load %arg14[%c0_261, %c0_262] : memref<128x128xbf16, #tpu.memory_space<vmem>>, vector<128x128xbf16>
    %c0_263 = arith.constant 0 : index
    %c0_264 = arith.constant 0 : index
    %622 = vector.load %arg15[%c0_263, %c0_264] : memref<1x128xf32, #tpu.memory_space<vmem>>, vector<1x128xf32>
    %623 = arith.truncf %620 : vector<8x128xf32> to vector<8x128xbf16>
    %cst_265 = arith.constant dense<0.000000e+00> : vector<8x128xf32>
    %624 = tpu.matmul %623, %621, %cst_265 {dimension_numbers = #tpu.dot_dimension_numbers<[1], [0], [0], [1], [0, 0, 1, 1], [], []>} : vector<8x128xbf16>, vector<128x128xbf16>, vector<8x128xf32> -> vector<8x128xf32>
    %625 = vector.broadcast %622 : vector<1x128xf32> to vector<8x128xf32>
    %626 = arith.addf %624, %625 : vector<8x128xf32>
    %627 = arith.truncf %626 : vector<8x128xf32> to vector<8x128xbf16>
    %cst_266 = arith.constant 5.000000e-01 : bf16
    %628 = vector.broadcast %cst_266 : bf16 to vector<8x128xbf16>
    %629 = arith.mulf %628, %627 : vector<8x128xbf16>
    %cst_267 = arith.constant 4.467770e-02 : bf16
    %630 = vector.broadcast %cst_267 : bf16 to vector<8x128xbf16>
    %631 = arith.mulf %630, %627 : vector<8x128xbf16>
    %632 = arith.mulf %631, %627 : vector<8x128xbf16>
    %633 = arith.mulf %632, %627 : vector<8x128xbf16>
    %634 = arith.addf %627, %633 : vector<8x128xbf16>
    %cst_268 = arith.constant 7.968750e-01 : bf16
    %635 = vector.broadcast %cst_268 : bf16 to vector<8x128xbf16>
    %636 = arith.mulf %635, %634 : vector<8x128xbf16>
    %637 = math.tanh %636 : vector<8x128xbf16>
    %cst_269 = arith.constant 1.000000e+00 : bf16
    %638 = vector.broadcast %cst_269 : bf16 to vector<8x128xbf16>
    %639 = arith.addf %638, %637 : vector<8x128xbf16>
    %640 = arith.mulf %629, %639 : vector<8x128xbf16>
    %c0_270 = arith.constant 0 : index
    %c0_271 = arith.constant 0 : index
    %641 = vector.load %arg16[%c0_270, %c0_271] : memref<128x128xbf16, #tpu.memory_space<vmem>>, vector<128x128xbf16>
    %c0_272 = arith.constant 0 : index
    %c0_273 = arith.constant 0 : index
    %642 = vector.load %arg17[%c0_272, %c0_273] : memref<1x128xf32, #tpu.memory_space<vmem>>, vector<1x128xf32>
    %cst_274 = arith.constant dense<0.000000e+00> : vector<8x128xf32>
    %643 = tpu.matmul %640, %641, %cst_274 {dimension_numbers = #tpu.dot_dimension_numbers<[1], [0], [0], [1], [0, 0, 1, 1], [], []>} : vector<8x128xbf16>, vector<128x128xbf16>, vector<8x128xf32> -> vector<8x128xf32>
    %644 = vector.broadcast %642 : vector<1x128xf32> to vector<8x128xf32>
    %645 = arith.addf %643, %644 : vector<8x128xf32>
    %c0_275 = arith.constant 0 : index
    %c0_276 = arith.constant 0 : index
    %646 = vector.load %arg18[%c0_275, %c0_276] : memref<8x128xf32, #tpu.memory_space<vmem>>, vector<8x128xf32>
    tpu.vector_store %arg18[%c0_275, %c0_276], %645 {strides = array<i32>} : memref<8x128xf32, #tpu.memory_space<vmem>>, vector<8x128xf32>,
    return
  }
  func.func @transform_0(%arg0: i32) -> (i32, i32) {
    %c0_i32 = arith.constant 0 : i32
    %c0_i32_0 = arith.constant 0 : i32
    return %arg0, %c0_i32 : i32, i32
  }
  func.func @transform_1(%arg0: i32) -> (i32, i32) {
    %c0_i32 = arith.constant 0 : i32
    %c0_i32_0 = arith.constant 0 : i32
    %c0_i32_1 = arith.constant 0 : i32
    return %c0_i32, %c0_i32_0 : i32, i32
  }
  func.func @transform_2(%arg0: i32) -> (i32, i32) {
    %c0_i32 = arith.constant 0 : i32
    %c0_i32_0 = arith.constant 0 : i32
    %c0_i32_1 = arith.constant 0 : i32
    return %c0_i32, %c0_i32_0 : i32, i32
  }
  func.func @transform_3(%arg0: i32) -> (i32, i32, i32) {
    %c0_i32 = arith.constant 0 : i32
    %c0_i32_0 = arith.constant 0 : i32
    %c0_i32_1 = arith.constant 0 : i32
    %c0_i32_2 = arith.constant 0 : i32
    return %c0_i32, %c0_i32_0, %c0_i32_1 : i32, i32, i32
  }
  func.func @transform_4(%arg0: i32) -> (i32, i32, i32) {
    %c0_i32 = arith.constant 0 : i32
    %c0_i32_0 = arith.constant 0 : i32
    %c0_i32_1 = arith.constant 0 : i32
    %c0_i32_2 = arith.constant 0 : i32
    return %c0_i32, %c0_i32_0, %c0_i32_1 : i32, i32, i32
  }
  func.func @transform_5(%arg0: i32) -> (i32, i32, i32) {
    %c0_i32 = arith.constant 0 : i32
    %c0_i32_0 = arith.constant 0 : i32
    %c0_i32_1 = arith.constant 0 : i32
    %c0_i32_2 = arith.constant 0 : i32
    return %c0_i32, %c0_i32_0, %c0_i32_1 : i32, i32, i32
  }
  func.func @transform_6(%arg0: i32) -> (i32, i32, i32) {
    %c0_i32 = arith.constant 0 : i32
    %c0_i32_0 = arith.constant 0 : i32
    %c0_i32_1 = arith.constant 0 : i32
    %c0_i32_2 = arith.constant 0 : i32
    return %c0_i32, %c0_i32_0, %c0_i32_1 : i32, i32, i32
  }
  func.func @transform_7(%arg0: i32) -> (i32, i32, i32) {
    %c0_i32 = arith.constant 0 : i32
    %c0_i32_0 = arith.constant 0 : i32
    %c0_i32_1 = arith.constant 0 : i32
    %c0_i32_2 = arith.constant 0 : i32
    return %c0_i32, %c0_i32_0, %c0_i32_1 : i32, i32, i32
  }
  func.func @transform_8(%arg0: i32) -> (i32, i32, i32) {
    %c0_i32 = arith.constant 0 : i32
    %c0_i32_0 = arith.constant 0 : i32
    %c0_i32_1 = arith.constant 0 : i32
    %c0_i32_2 = arith.constant 0 : i32
    return %c0_i32, %c0_i32_0, %c0_i32_1 : i32, i32, i32
  }
  func.func @transform_9(%arg0: i32) -> (i32, i32, i32) {
    %c0_i32 = arith.constant 0 : i32
    %c0_i32_0 = arith.constant 0 : i32
    %c0_i32_1 = arith.constant 0 : i32
    %c0_i32_2 = arith.constant 0 : i32
    return %c0_i32, %c0_i32_0, %c0_i32_1 : i32, i32, i32
  }
  func.func @transform_10(%arg0: i32) -> (i32, i32, i32) {
    %c0_i32 = arith.constant 0 : i32
    %c0_i32_0 = arith.constant 0 : i32
    %c0_i32_1 = arith.constant 0 : i32
    %c0_i32_2 = arith.constant 0 : i32
    return %c0_i32, %c0_i32_0, %c0_i32_1 : i32, i32, i32
  }
  func.func @transform_11(%arg0: i32) -> (i32, i32, i32) {
    %c0_i32 = arith.constant 0 : i32
    %c0_i32_0 = arith.constant 0 : i32
    %c0_i32_1 = arith.constant 0 : i32
    %c0_i32_2 = arith.constant 0 : i32
    return %c0_i32, %c0_i32_0, %c0_i32_1 : i32, i32, i32
  }
  func.func @transform_12(%arg0: i32) -> (i32, i32, i32) {
    %c0_i32 = arith.constant 0 : i32
    %c0_i32_0 = arith.constant 0 : i32
    %c0_i32_1 = arith.constant 0 : i32
    %c0_i32_2 = arith.constant 0 : i32
    return %c0_i32, %c0_i32_0, %c0_i32_1 : i32, i32, i32
  }
  func.func @transform_13(%arg0: i32) -> (i32, i32) {
    %c0_i32 = arith.constant 0 : i32
    %c0_i32_0 = arith.constant 0 : i32
    %c0_i32_1 = arith.constant 0 : i32
    return %c0_i32, %c0_i32_0 : i32, i32
  }
  func.func @transform_14(%arg0: i32) -> (i32, i32) {
    %c0_i32 = arith.constant 0 : i32
    %c0_i32_0 = arith.constant 0 : i32
    %c0_i32_1 = arith.constant 0 : i32
    return %c0_i32, %c0_i32_0 : i32, i32
  }
  func.func @transform_15(%arg0: i32) -> (i32, i32) {
    %c0_i32 = arith.constant 0 : i32
    %c0_i32_0 = arith.constant 0 : i32
    %c0_i32_1 = arith.constant 0 : i32
    return %c0_i32, %c0_i32_0 : i32, i32
  }
  func.func @transform_16(%arg0: i32) -> (i32, i32) {
    %c0_i32 = arith.constant 0 : i32
    %c0_i32_0 = arith.constant 0 : i32
    %c0_i32_1 = arith.constant 0 : i32
    return %c0_i32, %c0_i32_0 : i32, i32
  }
  func.func @transform_17(%arg0: i32) -> (i32, i32) {
    %c0_i32 = arith.constant 0 : i32
    %c0_i32_0 = arith.constant 0 : i32
    return %arg0, %c0_i32 : i32, i32
  }
}

</mosaic_0001>

<bundles_post_ra>
// kernel: dyn_cifar10_forward.1
= control target key start
LH: loop header
LB: loop body
LE: loop exit
PB: predicated region body
PF: predicated region fallthrough
CT: control target
= control target key end

     0   :  { %s5878_s0 = inlined_call_operand.vmem [shape: bf16[8,768], index: 0, kind: input, shape index: {}]   ;;  %s5879_s1 = inlined_call_operand.vmem [shape: bf16[768,128], index: 1, kind: input, shape index: {}]   ;;  %s5880_s2 = inlined_call_operand.vmem [shape: f32[1,128], index: 2, kind: input, shape index: {}]   ;;  %s5881_s3 = inlined_call_operand.hbm [shape: bf16[5,128,384], index: 3, kind: input, shape index: {}]   ;;  %s5882_s4 = inlined_call_operand.vmem [shape: f32[5,1,384], index: 4, kind: input, shape index: {}]   ;;  %s5883_s5 = inlined_call_operand.vmem [shape: f32[5,1,128], index: 5, kind: input, shape index: {}]   ;;  %s5884_s6 = inlined_call_operand.vmem [shape: f32[5,1,128], index: 6, kind: input, shape index: {}]   ;;  %s5885_s7 = inlined_call_operand.vmem [shape: bf16[5,128,128], index: 7, kind: input, shape index: {}]   ;;  %s5886_s8 = inlined_call_operand.hbm [shape: f32[5,1,128], index: 8, kind: input, shape index: {}]   ;;  %s5887_s9 = inlined_call_operand.hbm [shape: f32[5,1,128], index: 9, kind: input, shape index: {}]   ;;  %s5888_s10 = inlined_call_operand.hbm [shape: f32[5,1,128], index: 10, kind: input, shape index: {}]   ;;  %s5889_s11 = inlined_call_operand.hbm [shape: bf16[5,128,128], index: 11, kind: input, shape index: {}]   ;;  %s5890_s12 = inlined_call_operand.hbm [shape: f32[5,1,128], index: 12, kind: input, shape index: {}]   ;;  %s5891_s13 = inlined_call_operand.vmem [shape: bf16[128,128], index: 13, kind: input, shape index: {}]   ;;  %s5892_s14 = inlined_call_operand.vmem [shape: f32[1,128], index: 14, kind: input, shape index: {}]   ;;  %s5893_s15 = inlined_call_operand.hbm [shape: bf16[128,128], index: 15, kind: input, shape index: {}]   ;;  %s5894_s16 = inlined_call_operand.vmem [shape: f32[1,128], index: 16, kind: input, shape index: {}]   ;;  %s5895_s17 = inlined_call_operand.hbm [shape: f32[8,128], index: 17, kind: output, shape index: {}]  }
   0x1   :  { %5898 = sst [smem:[#allocation20_spill]] %s5878_s0 }
   0x2   :  { %5899 = sst [smem:[#allocation21_spill]] %s5879_s1 }
   0x3   :  { %22 = vsyncpa [#allocation3], 0 }
   0x4   :  { %23 = vsyncpa [#allocation6], 0 }
   0x5   :  { %24 = vsyncpa [#allocation9], 0 }
   0x6   :  { %25 = vsyncpa [#allocation12], 0  ;;  %s58_s26 = sshll.u32 %s5886_s8, 4  ;;  %s59_s26 = int_to_ptr.hbm [resolvable:$true] %s58_s26 }
   0x7   :  { %26 = vsyncpa [#allocation4], 0  ;;  %s5274_s27 = smov [#allocation5]   ;;  %s84_s30 = sshll.u32 %s5888_s10, 4  ;;  %s85_s30 = int_to_ptr.hbm [resolvable:$true] %s84_s30 }
   0x8   :  { %s60_s28 = sshll.u32 %s5274_s27, 4  ;;  %s5275_s18 = smov 16   ;;  %s61_s28 = int_to_ptr.vmem [resolvable:$true] %s60_s28 }
   0x9   :  { %s5276_s19 = smov 1   ;;  %s5277_s1 = smov [#allocation8]  }
   0xa   :  { %66 = dma.hbm_to_vmem [thread:$0]  %s59_s26, 80, %s61_s28, [#allocation6], %s5275_s18, %s5275_s18, %s5276_s19  }
   0xb   :  { %s86_s20 = sshll.u32 %s5277_s1, 4  ;;  %s110_s22 = sshll.u32 %s5890_s12, 4  ;;  %s87_s20 = int_to_ptr.vmem [resolvable:$true] %s86_s20  ;;  %s111_s22 = int_to_ptr.hbm [resolvable:$true] %s110_s22 }
   0xc   :  { %92 = dma.hbm_to_vmem [thread:$0]  %s85_s30, 80, %s87_s20, [#allocation9], %s5275_s18, %s5275_s18, %s5276_s19  }
   0xd   :  { %s37_s24 = sshll.u32 %s5881_s3, 4  ;;  %s5278_s25 = smov [#allocation11]   ;;  %s38_s24 = int_to_ptr.hbm [resolvable:$true] %s37_s24 }
   0xe   :  { %s112_s27 = sshll.u32 %s5278_s25, 4  ;;  %s5279_s26 = smov [#allocation2]   ;;  %s113_s27 = int_to_ptr.vmem [resolvable:$true] %s112_s27 }
   0xf   :  { %118 = dma.hbm_to_vmem [thread:$0]  %s111_s22, 80, %s113_s27, [#allocation12], %s5275_s18, %s5275_s18, %s5276_s19  }
  0x10   :  { %s39_s12 = sshll.u32 %s5279_s26, 4  ;;  %s5280_s28 = smov 192   ;;  %s40_s12 = int_to_ptr.vmem [resolvable:$true] %s39_s12 }
  0x11   :  { %s5281_s29 = smov 12   ;;  %s71_s1 = sshll.u32 %s5887_s9, 4  ;;  %s72_s1 = int_to_ptr.hbm [resolvable:$true] %s71_s1 }
  0x12   :  { %45 = dma.hbm_to_vmem [thread:$0]  %s38_s24, 15360, %s40_s12, [#allocation3], %s5280_s28, %s5280_s28, %s5281_s29  }
  0x13   :  { %s5282_s3 = smov [#allocation7]   ;;  %s97_s10 = sshll.u32 %s5889_s11, 4  ;;  %s98_s10 = int_to_ptr.hbm [resolvable:$true] %s97_s10 }
  0x14   :  { %s73_s20 = sshll.u32 %s5282_s3, 4  ;;  %s5283_s22 = smov [#allocation10]   ;;  %s74_s20 = int_to_ptr.vmem [resolvable:$true] %s73_s20 }
  0x15   :  { %79 = dma.hbm_to_vmem [thread:$0]  %s72_s1, 80, %s74_s20, [#allocation6], %s5275_s18, %s5275_s18, %s5276_s19  }
  0x16   :  { %s99_s23 = sshll.u32 %s5283_s22, 4  ;;  %s5284_s24 = smov 64   ;;  %s100_s23 = int_to_ptr.vmem [resolvable:$true] %s99_s23 }
  0x17   :  { %s5285_s25 = smov 4   ;;  %s127_s26 = sshll.u32 %s5893_s15, 4  ;;  %s128_s26 = int_to_ptr.hbm [resolvable:$true] %s127_s26 }
  0x18   :  { %105 = dma.hbm_to_vmem [thread:$0]  %s98_s10, 5120, %s100_s23, [#allocation9], %s5284_s24, %s5284_s24, %s5285_s25  }
  0x19   :  { %s5286_s12 = smov [#allocation13]  }
  0x1a   :  { %s129_s28 = sshll.u32 %s5286_s12, 4  ;;  %s130_s28 = int_to_ptr.vmem [resolvable:$true] %s129_s28 }
  0x1b   :  { %135 = dma.hbm_to_vmem [thread:$0]  %s128_s26, 1024, %s130_s28, [#allocation12], %s5284_s24, %s5284_s24, %s5285_s25  }
  0x1c   :  { %5264 = dma.done.wait [#allocation3], 15360  }
  0x1d   :  { %5265 = vsyncadd [#allocation3], 4294951936 }
  0x1e   :  { %5266 = dma.done.wait [#allocation6], 160  }
  0x1f   :  { %5267 = vsyncadd [#allocation6], 4294967136 }
  0x20   :  { %5268 = dma.done.wait [#allocation9], 5200  }
  0x21   :  { %5269 = vsyncadd [#allocation9], 4294962096 }
  0x22   :  { %5270 = dma.done.wait [#allocation12], 1104  }
  0x23   :  { %5271 = vsyncadd [#allocation12], 4294966192  ;;  %s5900_s19 = sld [smem:[#allocation21_spill]]  ;;  %v3851_v63 = vld [vmem:[#allocation2 + $0xa8] sm:$0xf]  ;;  %s5289_s30 = smov [#allocation14]  }
  0x24   :  { %s5901_s22 = sld [smem:[#allocation20_spill]]  ;;  %s3558_s1 = sshll.u32 %s5289_s30, 4  ;;  %s3559_s1 = int_to_ptr.vmem [resolvable:$true] %s3558_s1 }
  0x25   :  { %s3560_s21 = sshll.u32 %s5895_s17, 4  ;;  %s3561_s21 = int_to_ptr.hbm [resolvable:$true] %s3560_s21 }
  0x29   :  { %v4712_v0 = vld [vmem:[%s5900_s19 + $0x38] sm:$0xff]  ;;  %v4711_v2 = vld [vmem:[%s5900_s19 + $0x30] sm:$0xff]  ;;  %v4710_v8 = vld [vmem:[%s5900_s19 + $0x28] sm:$0xff] }
  0x2a   :  { %v4720_v1 = vld [vmem:[%s5900_s19 + $0x78] sm:$0xff]  ;;  %579 = vmatpush.bf16.msra.mxu0 %v4712_v0  ;;  %v4719_v3 = vld [vmem:[%s5900_s19 + $0x70] sm:$0xff]  ;;  %v4718_v9 = vld [vmem:[%s5900_s19 + $0x68] sm:$0xff] }
  0x2b   :  { %592 = vmatpush.bf16.msra.mxu1 %v4720_v1  ;;  %v4728_v4 = vld [vmem:[%s5900_s19 + $0xb8] sm:$0xff]  ;;  %v4727_v6 = vld [vmem:[%s5900_s19 + $0xb0] sm:$0xff]  ;;  %v4726_v10 = vld [vmem:[%s5900_s19 + $0xa8] sm:$0xff] }
  0x2c   :  { %v4736_v5 = vld [vmem:[%s5900_s19 + $0xf8] sm:$0xff]  ;;  %605 = vmatpush.bf16.msra.mxu2 %v4728_v4  ;;  %v4735_v7 = vld [vmem:[%s5900_s19 + $0xf0] sm:$0xff]  ;;  %v4734_v11 = vld [vmem:[%s5900_s19 + $0xe8] sm:$0xff] }
  0x2d   :  { %618 = vmatpush.bf16.msra.mxu3 %v4736_v5  ;;  %v4709_v12 = vld [vmem:[%s5900_s19 + $0x20] sm:$0xff]  ;;  %v4708_v16 = vld [vmem:[%s5900_s19 + $0x18] sm:$0xff]  ;;  %v4707_v19 = vld [vmem:[%s5900_s19 + $0x10] sm:$0xff] }
  0x2e   :  { %580 = vmatpush.bf16.msra.mxu0 %v4711_v2  ;;  %v4717_v13 = vld [vmem:[%s5900_s19 + $0x60] sm:$0xff]  ;;  %v4716_v17 = vld [vmem:[%s5900_s19 + $0x58] sm:$0xff]  ;;  %v4715_v20 = vld [vmem:[%s5900_s19 + $0x50] sm:$0xff] }
  0x2f   :  { %593 = vmatpush.bf16.msra.mxu1 %v4719_v3  ;;  %v4725_v14 = vld [vmem:[%s5900_s19 + $0xa0] sm:$0xff]  ;;  %v4724_v18 = vld [vmem:[%s5900_s19 + $0x98] sm:$0xff]  ;;  %v4723_v22 = vld [vmem:[%s5900_s19 + $0x90] sm:$0xff] }
  0x30   :  { %606 = vmatpush.bf16.msra.mxu2 %v4727_v6  ;;  %v4733_v15 = vld [vmem:[%s5900_s19 + $0xe0] sm:$0xff]  ;;  %v4732_v21 = vld [vmem:[%s5900_s19 + $0xd8] sm:$0xff]  ;;  %v4731_v23 = vld [vmem:[%s5900_s19 + $0xd0] sm:$0xff] }
  0x31   :  { %619 = vmatpush.bf16.msra.mxu3 %v4735_v7  ;;  %v4706_v24 = vld [vmem:[%s5900_s19 + $0x8] sm:$0xff]  ;;  %v167_v26 = vld [vmem:[%s5901_s22] sm:$0xff]  ;;  %v4744_v34 = vld [vmem:[%s5900_s19 + $0x138] sm:$0xff] }
  0x32   :  { %581 = vmatpush.bf16.msra.mxu0 %v4710_v8  ;;  %v4714_v25 = vld [vmem:[%s5900_s19 + $0x48] sm:$0xff]  ;;  %v273_v28 = vunpack.c.l.b16 %v167_v26  ;;  %v274_v30 = vunpack.c.h.b16 %v167_v26  ;;  %v4705_v32 = vld [vmem:[%s5900_s19] sm:$0xff]  ;;  %v4752_v35 = vld [vmem:[%s5900_s19 + $0x178] sm:$0xff] }
  0x33   :  { %594 = vmatpush.bf16.msra.mxu1 %v4718_v9  ;;  %v4722_v27 = vld [vmem:[%s5900_s19 + $0x88] sm:$0xff]  ;;  %v4713_v33 = vld [vmem:[%s5900_s19 + $0x40] sm:$0xff]  ;;  %v4743_v42 = vld [vmem:[%s5900_s19 + $0x130] sm:$0xff] }
  0x34   :  { %607 = vmatpush.bf16.msra.mxu2 %v4726_v10  ;;  %v4730_v29 = vld [vmem:[%s5900_s19 + $0xc8] sm:$0xff]  ;;  %v4721_v36 = vld [vmem:[%s5900_s19 + $0x80] sm:$0xff]  ;;  %v279_v38 = vpack.c.b16 %v273_v28, %v273_v28  ;;  %v280_v39 = vpack.c.b16 %v274_v30, %v274_v30  ;;  %v4751_v43 = vld [vmem:[%s5900_s19 + $0x170] sm:$0xff] }
  0x35   :  { %620 = vmatpush.bf16.msra.mxu3 %v4734_v11  ;;  %v168_v31 = vld [vmem:[%s5901_s22 + $0x8] sm:$0xff]  ;;  %v4729_v41 = vld [vmem:[%s5900_s19 + $0xc0] sm:$0xff]  ;;  %v4740_v50 = vld [vmem:[%s5900_s19 + $0x118] sm:$0xff] }
  0x36   :  { %582 = vmatpush.bf16.msra.mxu0 %v4709_v12  ;;  %v275_v37 = vunpack.c.l.b16 %v168_v31  ;;  %v276_v40 = vunpack.c.h.b16 %v168_v31  ;;  %v4742_v46 = vld [vmem:[%s5900_s19 + $0x128] sm:$0xff]  ;;  %v4741_v48 = vld [vmem:[%s5900_s19 + $0x120] sm:$0xff]  ;;  %v4748_v51 = vld [vmem:[%s5900_s19 + $0x158] sm:$0xff] }
  0x37   :  { %595 = vmatpush.bf16.msra.mxu1 %v4717_v13  ;;  %v4750_v47 = vld [vmem:[%s5900_s19 + $0x168] sm:$0xff]  ;;  %v4749_v49 = vld [vmem:[%s5900_s19 + $0x160] sm:$0xff]  ;;  %v4739_v52 = vld [vmem:[%s5900_s19 + $0x110] sm:$0xff] }
  0x38   :  { %608 = vmatpush.bf16.msra.mxu2 %v4725_v14  ;;  %v281_v44 = vpack.c.b16 %v275_v37, %v275_v37  ;;  %v282_v45 = vpack.c.b16 %v276_v40, %v276_v40  ;;  %v4747_v53 = vld [vmem:[%s5900_s19 + $0x150] sm:$0xff]  ;;  %v4738_v54 = vld [vmem:[%s5900_s19 + $0x108] sm:$0xff]  ;;  %v4737_v59 = vld [vmem:[%s5900_s19 + $0x100] sm:$0xff] }
  0x39   :  { %621 = vmatpush.bf16.msra.mxu3 %v4733_v15  ;;  %v4746_v55 = vld [vmem:[%s5900_s19 + $0x148] sm:$0xff]  ;;  %v169_v56 = vld [vmem:[%s5901_s22 + $0x10] sm:$0xff]  ;;  %v4745_v60 = vld [vmem:[%s5900_s19 + $0x140] sm:$0xff] }
  0x3a   :  { %583 = vmatpush.bf16.msra.mxu0 %v4708_v16  ;;  %v277_v57 = vunpack.c.l.b16 %v169_v56  ;;  %v278_v58 = vunpack.c.h.b16 %v169_v56  ;;  %v4775_v0 = vld [vmem:[#allocation2 + $0xb0] sm:$0xf0]  ;;  %v4774_v1 = vld [vmem:[#allocation2 + $0xac] sm:$0xf]  ;;  %v3853_v3 = vld [vmem:[#allocation2 + $0xb4] sm:$0xf0] }
  0x3b   :  { %596 = vmatpush.bf16.msra.mxu1 %v4716_v17  ;;  %v3852_v2 = vor.u32 %v4775_v0, %v3851_v63  ;;  %v3859_v4 = vld [vmem:[#allocation2 + $0xb0] sm:$0xf]  ;;  %v4776_v5 = vld [vmem:[#allocation2 + $0xb8] sm:$0xf0]  ;;  %v3856_v6 = vor.u32 %v4774_v1, %v3853_v3  ;;  %v4771_v10 = vld [vmem:[#allocation2 + $0x94] sm:$0xf] }
  0x3c   :  { %609 = vmatpush.bf16.msra.mxu2 %v4724_v18  ;;  %v283_v61 = vpack.c.b16 %v277_v57, %v277_v57  ;;  %v284_v62 = vpack.c.b16 %v278_v58, %v278_v58  ;;  %v3860_v7 = vor.u32 %v4776_v5, %v3859_v4  ;;  %v3839_v8 = vld [vmem:[#allocation2 + $0x90] sm:$0xf]  ;;  %v4772_v9 = vld [vmem:[#allocation2 + $0x98] sm:$0xf0]  ;;  %v3841_v12 = vld [vmem:[#allocation2 + $0x9c] sm:$0xf0] }
  0x3d   :  { %622 = vmatpush.bf16.msra.mxu3 %v4732_v21  ;;  %v3840_v11 = vor.u32 %v4772_v9, %v3839_v8  ;;  %v3847_v13 = vld [vmem:[#allocation2 + $0x98] sm:$0xf]  ;;  %v4773_v14 = vld [vmem:[#allocation2 + $0xa0] sm:$0xf0]  ;;  %v3844_v15 = vor.u32 %v4771_v10, %v3841_v12  ;;  %v3829_v21 = vld [vmem:[#allocation2 + $0x84] sm:$0xf0] }
  0x3e   :  { %584 = vmatpush.bf16.msra.mxu0 %v4707_v19  ;;  %v3848_v16 = vor.u32 %v4773_v14, %v3847_v13  ;;  %v3827_v17 = vld [vmem:[#allocation2 + $0x78] sm:$0xf]  ;;  %v4769_v18 = vld [vmem:[#allocation2 + $0x80] sm:$0xf0]  ;;  %v4768_v19 = vld [vmem:[#allocation2 + $0x7c] sm:$0xf] }
  0x3f   :  { %597 = vmatpush.bf16.msra.mxu1 %v4715_v20  ;;  %v3828_v20 = vor.u32 %v4769_v18, %v3827_v17  ;;  %v3815_v26 = vld [vmem:[#allocation2 + $0x60] sm:$0xf]  ;;  %v4765_v28 = vld [vmem:[#allocation2 + $0x64] sm:$0xf]  ;;  %v3823_v30 = vld [vmem:[#allocation2 + $0x68] sm:$0xf] }
  0x40   :  { %610 = vmatpush.bf16.msra.mxu2 %v4723_v22  ;;  %v3835_v22 = vld [vmem:[#allocation2 + $0x80] sm:$0xf]  ;;  %v4767_v31 = vld [vmem:[#allocation2 + $0x70] sm:$0xf0]  ;;  %v4762_v37 = vld [vmem:[#allocation2 + $0x4c] sm:$0xf] }
  0x41   :  { %623 = vmatpush.bf16.msra.mxu3 %v4731_v23  ;;  %v4770_v23 = vld [vmem:[#allocation2 + $0x88] sm:$0xf0]  ;;  %v4764_v40 = vld [vmem:[#allocation2 + $0x58] sm:$0xf0]  ;;  %v3781_v57 = vld [vmem:[#allocation2 + $0x24] sm:$0xf0] }
  0x42   :  { %585 = vmatpush.bf16.msra.mxu0 %v4706_v24  ;;  %v3832_v24 = vor.u32 %v4768_v19, %v3829_v21  ;;  %v3787_v58 = vld [vmem:[#allocation2 + $0x20] sm:$0xf]  ;;  %v4754_v63 = vld [vmem:[#allocation2 + $0x8] sm:$0xf0]  ;;  %v4753_v0 = vld [vmem:[#allocation2 + $0x4] sm:$0xf] }
  0x43   :  { %598 = vmatpush.bf16.msra.mxu1 %v4714_v25  ;;  %v3836_v25 = vor.u32 %v4770_v23, %v3835_v22  ;;  %v3775_v3 = vld [vmem:[#allocation2 + $0x8] sm:$0xf]  ;;  %v4755_v4 = vld [vmem:[#allocation2 + $0x10] sm:$0xf0]  ;;  %v4985_v13 = vld [vmem:[%s5880_s2] ss:$0 sm:$0xff] }
  0x44   :  { %611 = vmatpush.bf16.msra.mxu2 %v4722_v27  ;;  %v4766_v27 = vld [vmem:[#allocation2 + $0x68] sm:$0xf0]  ;;  %v3776_v8 = vor.u32 %v4755_v4, %v3775_v3  ;;  %v4781_v3 = vld [vmem:[#allocation10 + $0x20] sm:$0xff] }
  0x45   :  { %624 = vmatpush.bf16.msra.mxu3 %v4730_v29  ;;  %v3817_v29 = vld [vmem:[#allocation2 + $0x6c] sm:$0xf0] }
  0x46   :  { %586 = vmatpush.bf16.msra.mxu0 %v4705_v32  ;;  %v3816_v32 = vor.u32 %v4766_v27, %v3815_v26  ;;  %v5572_v27 = vld [vmem:[%s5882_s4] sm:$0x7] }
  0x47   :  { %599 = vmatpush.bf16.msra.mxu1 %v4713_v33  ;;  %v3820_v33 = vor.u32 %v4765_v28, %v3817_v29  ;;  %v694_v28 = vperm.slane %v5572_v27, 2 }
  0x48   :  { %612 = vmatpush.bf16.msra.mxu2 %v4721_v36  ;;  %v4763_v36 = vld [vmem:[#allocation2 + $0x50] sm:$0xf0] }
  0x49   :  { %587 = vmatmul.bf16.vlgmr.msra.gmra.mxu0 %v279_v38  ;;  %625 = vmatpush.bf16.msra.mxu3 %v4729_v41  ;;  %v3805_v38 = vld [vmem:[#allocation2 + $0x54] sm:$0xf0] }
  0x4a   :  { %631 = vmatpush.bf16.msrb.mxu0 %v4744_v34  ;;  %600 = vmatmul.bf16.vlgmr.msra.gmra.mxu1 %v280_v39  ;;  %v3824_v34 = vor.u32 %v4767_v31, %v3823_v30  ;;  %v3811_v39 = vld [vmem:[#allocation2 + $0x50] sm:$0xf]  ;;  %v692_v31 = vperm.slane %v5572_v27, 0 }
  0x4b   :  { %644 = vmatpush.bf16.msrb.mxu1 %v4752_v35  ;;  %613 = vmatmul.bf16.vlgmr.msra.gmra.mxu2 %v281_v44  ;;  %v3803_v35 = vld [vmem:[#allocation2 + $0x48] sm:$0xf]  ;;  %v3791_v44 = vld [vmem:[#allocation2 + $0x30] sm:$0xf] }
  0x4c   :  { %626 = vmatmul.bf16.vlgmr.msra.gmra.mxu3 %v282_v45  ;;  %826 = vmatpush.bf16.msrb.mxu2 %v3852_v2  ;;  %v3804_v41 = vor.u32 %v4763_v36, %v3803_v35  ;;  %v4760_v45 = vld [vmem:[#allocation2 + $0x38] sm:$0xf0]  ;;  %v3769_v2 = vld [vmem:[#allocation2 + $0xc] sm:$0xf0] }
  0x4d   :  { %839 = vmatpush.bf16.msrb.mxu3 %v3856_v6 }
  0x4e   :  { %632 = vmatpush.bf16.msrb.mxu0 %v4743_v42  ;;  %v3808_v42 = vor.u32 %v4762_v37, %v3805_v38 }
  0x4f   :  { %645 = vmatpush.bf16.msrb.mxu1 %v4751_v43  ;;  %v3812_v43 = vor.u32 %v4764_v40, %v3811_v39 }
  0x50   :  { %827 = vmatpush.bf16.msrb.mxu2 %v3840_v11 }
  0x51   :  { %840 = vmatpush.bf16.msrb.mxu3 %v3844_v15 }
  0x52   :  { %633 = vmatpush.bf16.msrb.mxu0 %v4742_v46  ;;  %v4759_v46 = vld [vmem:[#allocation2 + $0x34] sm:$0xf] }
  0x53   :  { %646 = vmatpush.bf16.msrb.mxu1 %v4750_v47  ;;  %v3793_v47 = vld [vmem:[#allocation2 + $0x3c] sm:$0xf0] }
  0x54   :  { %828 = vmatpush.bf16.msrb.mxu2 %v3828_v20 }
  0x55   :  { %841 = vmatpush.bf16.msrb.mxu3 %v3832_v24 }
  0x56   :  { %634 = vmatpush.bf16.msrb.mxu0 %v4741_v48  ;;  %v3799_v48 = vld [vmem:[#allocation2 + $0x38] sm:$0xf] }
  0x57   :  { %647 = vmatpush.bf16.msrb.mxu1 %v4749_v49  ;;  %v4761_v49 = vld [vmem:[#allocation2 + $0x40] sm:$0xf0] }
  0x58   :  { %829 = vmatpush.bf16.msrb.mxu2 %v3816_v32 }
  0x59   :  { %842 = vmatpush.bf16.msrb.mxu3 %v3820_v33 }
  0x5a   :  { %635 = vmatpush.bf16.msrb.mxu0 %v4740_v50  ;;  %v3792_v50 = vor.u32 %v4760_v45, %v3791_v44 }
  0x5b   :  { %648 = vmatpush.bf16.msrb.mxu1 %v4748_v51  ;;  %v3796_v51 = vor.u32 %v4759_v46, %v3793_v47 }
  0x5c   :  { %830 = vmatpush.bf16.msrb.mxu2 %v3804_v41 }
  0x5d   :  { %843 = vmatpush.bf16.msrb.mxu3 %v3808_v42 }
  0x5e   :  { %636 = vmatpush.bf16.msrb.mxu0 %v4739_v52  ;;  %v3800_v52 = vor.u32 %v4761_v49, %v3799_v48  ;;  %v5287_v49 = vmov 128.0  }
  0x5f   :  { %649 = vmatpush.bf16.msrb.mxu1 %v4747_v53  ;;  %v3779_v53 = vld [vmem:[#allocation2 + $0x18] sm:$0xf] }
  0x60   :  { %831 = vmatpush.bf16.msrb.mxu2 %v3792_v50 }
  0x61   :  { %844 = vmatpush.bf16.msrb.mxu3 %v3796_v51 }
  0x62   :  { %637 = vmatpush.bf16.msrb.mxu0 %v4738_v54  ;;  %v4757_v54 = vld [vmem:[#allocation2 + $0x20] sm:$0xf0] }
  0x63   :  { %650 = vmatpush.bf16.msrb.mxu1 %v4746_v55  ;;  %v4756_v55 = vld [vmem:[#allocation2 + $0x1c] sm:$0xf]  ;;  %v3780_v56 = vor.u32 %v4757_v54, %v3779_v53 }
  0x65   :  { %832 = vmatpush.bf16.msrb.mxu2 %v3780_v56 }
  0x66   :  { %638 = vmatpush.bf16.msrb.mxu0 %v4737_v59  ;;  %v4758_v59 = vld [vmem:[#allocation2 + $0x28] sm:$0xf0] }
  0x67   :  { %651 = vmatpush.bf16.msrb.mxu1 %v4745_v60  ;;  %v3784_v60 = vor.u32 %v4756_v55, %v3781_v57  ;;  %v4784_v57 = vld [vmem:[#allocation10 + $0x38] sm:$0xff] }
  0x69   :  { %639 = vmatmul.bf16.vlgmr.msrb.gmra.mxu0 %v283_v61  ;;  %v3788_v61 = vor.u32 %v4758_v59, %v3787_v58  ;;  %845 = vmatpush.bf16.msrb.mxu3 %v3784_v60  ;;  %v4783_v60 = vld [vmem:[#allocation10 + $0x30] sm:$0xff] }
  0x6a   :  { %652 = vmatmul.bf16.vlgmr.msrb.gmra.mxu1 %v284_v62  ;;  %852 = vmatpush.bf16.msra.mxu0 %v3860_v7  ;;  %v3767_v62 = vld [vmem:[#allocation2] sm:$0xf]  ;;  %v3772_v7 = vor.u32 %v4753_v0, %v3769_v2 }
  0x6b   :  { %v3768_v1 = vor.u32 %v4754_v63, %v3767_v62  ;;  %1000 = vmatpush.bf16.msra.mxu1 %v4784_v57  ;;  %v4782_v0 = vld [vmem:[#allocation10 + $0x28] sm:$0xff] }
  0x6d   :  { %833 = vmatpush.bf16.msrb.mxu2 %v3768_v1  ;;  %846 = vmatpush.bf16.msrb.mxu3 %v3772_v7 }
  0x6e   :  { %853 = vmatpush.bf16.msra.mxu0 %v3848_v16 }
  0x6f   :  { %1001 = vmatpush.bf16.msra.mxu1 %v4783_v60 }
  0x72   :  { %854 = vmatpush.bf16.msra.mxu0 %v3836_v25 }
  0x73   :  { %1002 = vmatpush.bf16.msra.mxu1 %v4782_v0  ;;  %v875_v0 = vld [vmem:[#allocation8] sm:$0x1] }
  0x76   :  { %855 = vmatpush.bf16.msra.mxu0 %v3824_v34 }
  0x77   :  { %1003 = vmatpush.bf16.msra.mxu1 %v4781_v3 }
  0x7a   :  { %856 = vmatpush.bf16.msra.mxu0 %v3812_v43 }
  0x7e   :  { %857 = vmatpush.bf16.msra.mxu0 %v3800_v52 }
  0x82   :  { %858 = vmatpush.bf16.msra.mxu0 %v3788_v61 }
  0x86   :  { %859 = vmatpush.bf16.msra.mxu0 %v3776_v8 }
  0xc6   :  { %v588_v5 = vpop.f32.mrf.mxu0 }
  0xc7   :  { %v601_v6 = vpop.f32.mrf.mxu1  ;;  %v589_v14 = vadd.f32 %v4985_v13, %v588_v5  ;;  %v4780_v5 = vld [vmem:[#allocation10 + $0x18] sm:$0xff] }
  0xc8   :  { %1004 = vmatpush.bf16.msra.mxu1 %v4780_v5 }
  0xc9   :  { %v602_v17 = vadd.f32 %v601_v6, %v589_v14 }
  0xce   :  { %v590_v9 = vpop.f32.mrf.mxu0  ;;  %v614_v11 = vpop.f32.mrf.mxu2 }
  0xcf   :  { %v603_v10 = vpop.f32.mrf.mxu1  ;;  %v627_v12 = vpop.f32.mrf.mxu3  ;;  %v615_v18 = vadd.f32 %v614_v11, %v602_v17 }
  0xd0   :  { %v4779_v10 = vld [vmem:[#allocation10 + $0x10] sm:$0xff] }
  0xd1   :  { %v628_v19 = vadd.f32 %v627_v12, %v615_v18  ;;  %v1037_v12 = vld [vmem:[%s5883_s5] sm:$0x1]  ;;  %1005 = vmatpush.bf16.msra.mxu1 %v4779_v10 }
  0xd6   :  { %v616_v15 = vpop.f32.mrf.mxu2 }
  0xd7   :  { %v629_v16 = vpop.f32.mrf.mxu3 }
  0xe6   :  { %v640_v20 = vpop.f32.mrf.mxu0 }
  0xe7   :  { %v653_v21 = vpop.f32.mrf.mxu1  ;;  %v641_v22 = vadd.f32 %v640_v20, %v628_v19  ;;  %v4778_v19 = vld [vmem:[#allocation10 + $0x8] sm:$0xff] }
  0xe8   :  { %1006 = vmatpush.bf16.msra.mxu1 %v4778_v19  ;;  %v4787_v19 = vld [vmem:[%s5885_s7 + $0x10] sm:$0xff] }
  0xe9   :  { %v654_v23 = vadd.f32 %v653_v21, %v641_v22  ;;  %v1070_v21 = vpack.c.bf16 %v1037_v12, %v1037_v12 }
  0xeb   :  { %v690_v24 = vpack.c.bf16 %v654_v23, %v654_v23 }
  0xed   :  { %834 = vmatmul.bf16.vlgmr.msrb.gmra.mxu2 %v690_v24  ;;  %847 = vmatmul.bf16.vlgmr.msrb.gmra.mxu3 %v690_v24 }
  0xee   :  { %860 = vmatmul.bf16.vlgmr.msra.gmra.mxu0 %v690_v24  ;;  %v642_v25 = vpop.f32.mrf.mxu0 }
  0xef   :  { %v655_v26 = vpop.f32.mrf.mxu1  ;;  %v1038_v25 = vld [vmem:[%s5884_s6] sm:$0x1] }
 0x16b   :  { %v861_v29 = vpop.f32.mrf.mxu0 }
 0x16c   :  { %v862_v30 = vadd.f32 %v861_v29, %v694_v28  ;;  %v4777_v28 = vld [vmem:[#allocation10] sm:$0xff] }
 0x16d   :  { %1007 = vmatpush.bf16.msra.mxu1 %v4777_v28 }
 0x16e   :  { %v866_v32 = vmul.f32 0.044715, %v862_v30  ;;  %v865_v45 = vmul.f32 0.5, %v862_v30 }
 0x170   :  { %v835_v33 = vpop.f32.mrf.mxu2  ;;  %v5576_v34 = vpop.f32.mrf.mxu3  ;;  %v867_v35 = vmul.f32 %v866_v32, %v862_v30  ;;  %v1079_v32 = vpack.c.bf16 %v1038_v25, %v1038_v25  ;;  %v4786_v25 = vld [vmem:[%s5885_s7 + $0x8] sm:$0xff] }
 0x171   :  { %v836_v36 = vadd.f32 %v835_v33, %v692_v31 }
 0x172   :  { %v868_v37 = vmul.f32 %v867_v35, %v862_v30 }
 0x173   :  { %v863_v38 = vpop.f32.mrf.mxu0  ;;  %1039 = vadd.xlane.f32.xlu0 %v836_v36  ;;  %v1042_v43 = vmul.f32 %v836_v36, %v836_v36  ;;  %v1059_v7 = vpack.c.bf16 %v836_v36, %v836_v36 }
 0x174   :  { %v869_v39 = vadd.f32 %v868_v37, %v862_v30  ;;  %v1072_v30 = vpack.i.b16 %v1070_v21, %v1070_v21 }
 0x175   :  { %v1061_v15 = vunpack.c.l.bf16 %v1059_v7 }
 0x176   :  { %v870_v40 = vmul.f32 0.7978846, %v869_v39  ;;  %v1074_v36 = vperm.slane %v1072_v30, 0 }
 0x178   :  { %v837_v41 = vpop.f32.mrf.mxu2  ;;  %v850_v42 = vpop.f32.mrf.mxu3  ;;  %4998 = vtanh.f32 %v870_v40  ;;  %v1081_v40 = vpack.i.b16 %v1079_v32, %v1079_v32  ;;  %v4785_v32 = vld [vmem:[%s5885_s7] sm:$0xff] }
 0x179   :  { %5000 = vrcp.f32 %v5287_v49  ;;  %v4791_v49 = vld [vmem:[%s5885_s7 + $0x30] sm:$0xff] }
 0x17b   :  { %1043 = vadd.xlane.f32.xlu0 %v1042_v43  ;;  %v4792_v43 = vld [vmem:[%s5885_s7 + $0x38] sm:$0xff] }
 0x17c   :  { %1183 = vmatpush.bf16.msra.mxu2 %v4792_v43 }
 0x17e   :  { %v4999_v44 = vpop.eup %4998 }
 0x17f   :  { %v872_v46 = vadd.f32 1.0, %v4999_v44  ;;  %v5001_v50 = vpop.eup %5000 }
 0x180   :  { %v879_v51 = vmul.f32 128.0, %v5001_v50  ;;  %vm883_vm0 = vweird.f32 %v5001_v50  ;;  %1184 = vmatpush.bf16.msra.mxu2 %v4791_v49 }
 0x181   :  { %v5578_v47 = vmul.f32 %v872_v46, %v865_v45  ;;  %v1076_v45 = vunpack.c.l.bf16 %v1074_v36 }
 0x182   :  { %v880_v52 = vsub.f32 1.0, %v879_v51  ;;  %v874_v51 = vld [vmem:[#allocation7] sm:$0x1] }
 0x183   :  { %876 = vadd.xlane.f32.xlu1 %v5578_v47  ;;  %v886_v48 = vmul.f32 %v5578_v47, %v5578_v47  ;;  %v903_v42 = vpack.c.bf16 %v5578_v47, %v5578_v47 }
 0x184   :  { %v881_v53 = vmul.f32 %v5001_v50, %v880_v52  ;;  %v1083_v52 = vperm.slane %v1081_v40, 0 }
 0x186   :  { %v882_v54 = vadd.f32 %v5001_v50, %v881_v53 }
 0x188   :  { %v5583_v56 = vsel %vm883_vm0, %v5001_v50, %v882_v54  ;;  %v905_v54 = vunpack.c.l.bf16 %v903_v42 }
 0x18b   :  { %887 = vadd.xlane.f32.xlu1 %v886_v48 }
 0x1e6   :  { %v1040_v55 = vpop.xlane.xlu0 %1039 }
 0x1e7   :  { %v1041_v58 = vmul.f32 %v1040_v55, %v5583_v56 }
 0x1e9   :  { %v1046_v61 = vmul.f32 %v1041_v58, %v1041_v58  ;;  %v1060_v4 = vpack.c.bf16 %v1041_v58, %v1041_v58  ;;  %v914_v58 = vpack.c.bf16 %v874_v51, %v874_v51 }
 0x1eb   :  { %v1062_v11 = vunpack.c.l.bf16 %v1060_v4  ;;  %v916_v3 = vpack.i.b16 %v914_v58, %v914_v58  ;;  %v4789_v4 = vld [vmem:[%s5885_s7 + $0x20] sm:$0xff] }
 0x1ed   :  { %v1063_v20 = vsub.f32 %v1061_v15, %v1062_v11  ;;  %v918_v12 = vperm.slane %v916_v3, 0 }
 0x1ee   :  { %v1044_v59 = vpop.xlane.xlu0 %1043 }
 0x1ef   :  { %v1045_v62 = vmul.f32 %v1044_v59, %v5583_v56  ;;  %v1064_v29 = vpack.c.bf16 %v1063_v20, %v1063_v20  ;;  %v4790_v59 = vld [vmem:[%s5885_s7 + $0x28] sm:$0xff] }
 0x1f0   :  { %1185 = vmatpush.bf16.msra.mxu2 %v4790_v59  ;;  %v4012_v59 = vld [vmem:[#allocation2 + $0x168] sm:$0xf] }
 0x1f1   :  { %v1047_v63 = vsub.f32 %v1045_v62, %v1046_v61  ;;  %v1066_v35 = vunpack.c.l.bf16 %v1064_v29  ;;  %v1085_v61 = vunpack.c.l.bf16 %v1083_v52 }
 0x1f3   :  { %v1048_v1 = vadd.f32 1e-05, %v1047_v63 }
 0x1f4   :  { %1186 = vmatpush.bf16.msra.mxu2 %v4789_v4  ;;  %v4000_v4 = vld [vmem:[#allocation2 + $0x150] sm:$0xf] }
 0x1f5   :  { %5002 = vrsqrt.f32 %v1048_v1  ;;  %vm1055_vm2 = vweird.f32 %v1048_v1 }
 0x1f6   :  { %v877_v2 = vpop.xlane.xlu1 %876 }
 0x1f7   :  { %v885_v8 = vmul.f32 %v5583_v56, %v877_v2 }
 0x1f9   :  { %v890_v16 = vmul.f32 %v885_v8, %v885_v8  ;;  %v904_v38 = vpack.c.bf16 %v885_v8, %v885_v8  ;;  %v923_v8 = vpack.c.bf16 %v875_v0, %v875_v0  ;;  %v4020_v0 = vld [vmem:[#allocation2 + $0x170] sm:$0xf] }
 0x1fb   :  { %v5003_v6 = vpop.eup %5002  ;;  %v906_v48 = vunpack.c.l.bf16 %v904_v38 }
 0x1fc   :  { %v1050_v9 = vmul.f32 %v5003_v6, %v1048_v1  ;;  %vm1056_vm1 = vweird.f32 %v5003_v6 }
 0x1fd   :  { %vm1057_vm3 = vmor %vm1055_vm2, %vm1056_vm1  ;;  %v907_v57 = vsub.f32 %v905_v54, %v906_v48 }
 0x1fe   :  { %v1051_v13 = vmul.f32 %v5003_v6, %v1050_v9  ;;  %v888_v14 = vpop.xlane.xlu1 %887 }
 0x1ff   :  { %v889_v17 = vmul.f32 %v888_v14, %v5583_v56  ;;  %v908_v2 = vpack.c.bf16 %v907_v57, %v907_v57 }
 0x200   :  { %v1052_v18 = vmul.f32 0.5, %v1051_v13  ;;  %v4788_v13 = vld [vmem:[%s5885_s7 + $0x18] sm:$0xff] }
 0x201   :  { %v891_v22 = vsub.f32 %v889_v17, %v890_v16  ;;  %v910_v10 = vunpack.c.l.bf16 %v908_v2  ;;  %v925_v16 = vpack.i.b16 %v923_v8, %v923_v8  ;;  %1187 = vmatpush.bf16.msra.mxu2 %v4788_v13  ;;  %v4002_v8 = vld [vmem:[#allocation2 + $0x15c] sm:$0xf0]  ;;  %v3988_v13 = vld [vmem:[#allocation2 + $0x138] sm:$0xf] }
 0x202   :  { %v1053_v23 = vsub.f32 1.5, %v1052_v18  ;;  %v920_v18 = vunpack.c.l.bf16 %v918_v12 }
 0x203   :  { %v892_v24 = vadd.f32 1e-05, %v891_v22  ;;  %v927_v22 = vperm.slane %v925_v16, 0 }
 0x204   :  { %v1054_v26 = vmul.f32 %v5003_v6, %v1053_v23 }
 0x205   :  { %5004 = vrsqrt.f32 %v892_v24  ;;  %vm899_vm5 = vweird.f32 %v892_v24  ;;  %1188 = vmatpush.bf16.msra.mxu2 %v4787_v19  ;;  %v929_v29 = vunpack.c.l.bf16 %v927_v22  ;;  %v4810_v19 = vld [vmem:[#allocation2 + $0x148] sm:$0xf0] }
 0x206   :  { %v1058_v31 = vsel %vm1057_vm3, %v5003_v6, %v1054_v26 }
 0x207   :  { %v1065_v33 = vpack.c.bf16 %v1058_v31, %v1058_v31 }
 0x209   :  { %v1067_v37 = vunpack.c.l.bf16 %v1065_v33  ;;  %1189 = vmatpush.bf16.msra.mxu2 %v4786_v25  ;;  %v4805_v25 = vld [vmem:[#allocation2 + $0x124] sm:$0xf] }
 0x20b   :  { %v5005_v39 = vpop.eup %5004  ;;  %v1068_v41 = vmul.f32 %v1067_v37, %v1066_v35 }
 0x20c   :  { %v894_v44 = vmul.f32 %v5005_v39, %v892_v24  ;;  %vm900_vm4 = vweird.f32 %v5005_v39 }
 0x20d   :  { %v1069_v46 = vpack.c.bf16 %v1068_v41, %v1068_v41  ;;  %vm901_vm6 = vmor %vm899_vm5, %vm900_vm4  ;;  %1190 = vmatpush.bf16.msra.mxu2 %v4785_v32 }
 0x20e   :  { %v895_v50 = vmul.f32 %v5005_v39, %v894_v44 }
 0x20f   :  { %v1075_v53 = vunpack.c.l.bf16 %v1069_v46 }
 0x210   :  { %v896_v55 = vmul.f32 0.5, %v895_v50 }
 0x211   :  { %v1077_v47 = vmul.f32 %v1076_v45, %v1075_v53 }
 0x212   :  { %v897_v60 = vsub.f32 1.5, %v896_v55 }
 0x213   :  { %v1078_v62 = vpack.c.bf16 %v1077_v47, %v1077_v47 }
 0x214   :  { %v898_v63 = vmul.f32 %v5005_v39, %v897_v60  ;;  %v4815_v60 = vld [vmem:[#allocation2 + $0x170] sm:$0xf0] }
 0x215   :  { %v1084_v1 = vunpack.c.l.bf16 %v1078_v62  ;;  %v4013_v62 = vor.u32 %v4815_v60, %v4012_v59  ;;  %v3940_v60 = vld [vmem:[#allocation2 + $0xd8] sm:$0xf] }
 0x216   :  { %v902_v5 = vsel %vm901_vm6, %v5005_v39, %v898_v63  ;;  %v4014_v63 = vld [vmem:[#allocation2 + $0x174] sm:$0xf0] }
 0x217   :  { %v1086_v6 = vadd.f32 %v1085_v61, %v1084_v1  ;;  %v909_v7 = vpack.c.bf16 %v902_v5, %v902_v5  ;;  %v4814_v61 = vld [vmem:[#allocation2 + $0x16c] sm:$0xf]  ;;  %v4816_v1 = vld [vmem:[#allocation2 + $0x178] sm:$0xf0]  ;;  %1368 = vmatpush.bf16.msra.mxu3 %v4013_v62 }
 0x218   :  { %v4017_v2 = vor.u32 %v4814_v61, %v4014_v63  ;;  %v4021_v3 = vor.u32 %v4816_v1, %v4020_v0  ;;  %v4812_v5 = vld [vmem:[#allocation2 + $0x158] sm:$0xf0]  ;;  %v4797_v61 = vld [vmem:[#allocation2 + $0xe0] sm:$0xf0]  ;;  %v3942_v0 = vld [vmem:[#allocation2 + $0xe4] sm:$0xf0] }
 0x219   :  { %v1087_v9 = vpack.c.bf16 %v1086_v6, %v1086_v6  ;;  %v911_v11 = vunpack.c.l.bf16 %v909_v7  ;;  %v4811_v6 = vld [vmem:[#allocation2 + $0x154] sm:$0xf]  ;;  %v4001_v7 = vor.u32 %v4812_v5, %v4000_v4  ;;  %v4796_v62 = vld [vmem:[#allocation2 + $0xdc] sm:$0xf]  ;;  %v3941_v63 = vor.u32 %v4797_v61, %v3940_v60  ;;  %v3948_v1 = vld [vmem:[#allocation2 + $0xe0] sm:$0xf] }
 0x21a   :  { %1381 = vmatpush.bf16.msrb.mxu0 %v4017_v2  ;;  %1394 = vmatpush.bf16.msrb.mxu1 %v4021_v3  ;;  %v4798_v2 = vld [vmem:[#allocation2 + $0xe8] sm:$0xf0]  ;;  %v3945_v3 = vor.u32 %v4796_v62, %v3942_v0  ;;  %v3928_v5 = vld [vmem:[#allocation2 + $0xc0] sm:$0xf] }
 0x21b   :  { %v1088_v14 = vunpack.c.l.bf16 %v1087_v9  ;;  %v912_v15 = vmul.f32 %v911_v11, %v910_v10  ;;  %v4008_v9 = vld [vmem:[#allocation2 + $0x158] sm:$0xf]  ;;  %v4813_v10 = vld [vmem:[#allocation2 + $0x160] sm:$0xf0]  ;;  %v4005_v11 = vor.u32 %v4811_v6, %v4002_v8  ;;  %1369 = vmatpush.bf16.msra.mxu3 %v4001_v7  ;;  %v3949_v4 = vor.u32 %v4798_v2, %v3948_v1  ;;  %v4794_v6 = vld [vmem:[#allocation2 + $0xc8] sm:$0xf0] }
 0x21c   :  { %v4009_v12 = vor.u32 %v4813_v10, %v4008_v9  ;;  %v4793_v7 = vld [vmem:[#allocation2 + $0xc4] sm:$0xf]  ;;  %v3929_v8 = vor.u32 %v4794_v6, %v3928_v5  ;;  %v3930_v9 = vld [vmem:[#allocation2 + $0xcc] sm:$0xf0]  ;;  %v3936_v10 = vld [vmem:[#allocation2 + $0xc8] sm:$0xf] }
 0x21d   :  { %v913_v17 = vpack.c.bf16 %v912_v15, %v912_v15  ;;  %v1091_v20 = vmul.f32 0.044677734, %v1088_v14  ;;  %v1089_v49 = vmul.f32 0.5, %v1088_v14  ;;  %v4808_v15 = vld [vmem:[#allocation2 + $0x13c] sm:$0xf]  ;;  %v4824_v2 = vld [vmem:[#allocation10 + $0x78] sm:$0xff] }
 0x21e   :  { %1382 = vmatpush.bf16.msrb.mxu0 %v4005_v11  ;;  %1395 = vmatpush.bf16.msrb.mxu1 %v4009_v12  ;;  %v4795_v11 = vld [vmem:[#allocation2 + $0xd0] sm:$0xf0]  ;;  %v3933_v12 = vor.u32 %v4793_v7, %v3930_v9  ;;  %v4822_v6 = vld [vmem:[#allocation10 + $0x68] sm:$0xff] }
 0x21f   :  { %v919_v21 = vunpack.c.l.bf16 %v913_v17  ;;  %v1092_v23 = vpack.c.bf16 %v1091_v20, %v1091_v20  ;;  %v1090_v52 = vpack.c.bf16 %v1089_v49, %v1089_v49  ;;  %v3990_v17 = vld [vmem:[#allocation2 + $0x144] sm:$0xf0]  ;;  %v4986_v20 = vld [vmem:[#allocation11] ss:$0 sm:$0xff]  ;;  %1539 = vmatpush.bf16.msrb.mxu2 %v4824_v2 }
 0x220   :  { %v4830_v2 = vld [vmem:[%s5885_s7 + $0x68] sm:$0xff] }
 0x221   :  { %v921_v24 = vmul.f32 %v920_v18, %v919_v21  ;;  %v1093_v26 = vunpack.c.l.bf16 %v1092_v23  ;;  %v1111_v55 = vunpack.c.l.bf16 %v1090_v52  ;;  %v3996_v18 = vld [vmem:[#allocation2 + $0x140] sm:$0xf]  ;;  %v3993_v21 = vor.u32 %v4808_v15, %v3990_v17  ;;  %v4801_v52 = vld [vmem:[#allocation2 + $0x100] sm:$0xf0] }
 0x222   :  { %v3997_v22 = vor.u32 %v4810_v19, %v3996_v18  ;;  %v3976_v23 = vld [vmem:[#allocation2 + $0x120] sm:$0xf] }
 0x223   :  { %v922_v28 = vpack.c.bf16 %v921_v24, %v921_v24  ;;  %v1094_v30 = vmul.f32 %v1093_v26, %v1088_v14  ;;  %v4806_v24 = vld [vmem:[#allocation2 + $0x128] sm:$0xf0]  ;;  %1383 = vmatpush.bf16.msrb.mxu0 %v3993_v21  ;;  %v693_v21 = vperm.slane %v5572_v27, 1  ;;  %v4987_v27 = vld [vmem:[#allocation5] ss:$0 sm:$0xff] }
 0x224   :  { %1396 = vmatpush.bf16.msrb.mxu1 %v3997_v22  ;;  %v3977_v26 = vor.u32 %v4806_v24, %v3976_v23  ;;  %v5288_v22 = vmov 1065369472  }
 0x225   :  { %v928_v31 = vunpack.c.l.bf16 %v922_v28  ;;  %v1095_v33 = vpack.c.bf16 %v1094_v30, %v1094_v30  ;;  %v3978_v28 = vld [vmem:[#allocation2 + $0x12c] sm:$0xf0]  ;;  %v4807_v30 = vld [vmem:[#allocation2 + $0x130] sm:$0xf0]  ;;  %v5622_v23 = vunpack.c.h.bf16 %v5288_v22  ;;  %v849_v24 = vadd.f32 %v5576_v34, %v693_v21 }
 0x227   :  { %v930_v35 = vadd.f32 %v929_v29, %v928_v31  ;;  %v1096_v36 = vunpack.c.l.bf16 %v1095_v33  ;;  %v3984_v29 = vld [vmem:[#allocation2 + $0x128] sm:$0xf]  ;;  %v3981_v31 = vor.u32 %v4805_v25, %v3978_v28  ;;  %v5625_v25 = vunpack.c.l.bf16 %v5288_v22 }
 0x228   :  { %v3985_v32 = vor.u32 %v4807_v30, %v3984_v29  ;;  %v3964_v33 = vld [vmem:[#allocation2 + $0x108] sm:$0xf]  ;;  %v1031_v30 = vpack.c.bf16 %v849_v24, %v849_v24 }
 0x229   :  { %v931_v37 = vpack.c.bf16 %v930_v35, %v930_v35  ;;  %v1097_v38 = vmul.f32 %v1096_v36, %v1088_v14  ;;  %v4803_v35 = vld [vmem:[#allocation2 + $0x110] sm:$0xf0]  ;;  %v4802_v36 = vld [vmem:[#allocation2 + $0x10c] sm:$0xf]  ;;  %1384 = vmatpush.bf16.msrb.mxu0 %v3981_v31 }
 0x22a   :  { %1397 = vmatpush.bf16.msrb.mxu1 %v3985_v32 }
 0x22b   :  { %1008 = vmatmul.bf16.vlgmr.msra.gmra.mxu1 %v931_v37  ;;  %v1098_v39 = vpack.c.bf16 %v1097_v38, %v1097_v38  ;;  %v3966_v38 = vld [vmem:[#allocation2 + $0x114] sm:$0xf0] }
 0x22d   :  { %v1099_v40 = vunpack.c.l.bf16 %v1098_v39  ;;  %v3972_v39 = vld [vmem:[#allocation2 + $0x110] sm:$0xf] }
 0x22f   :  { %v1100_v41 = vadd.f32 %v1099_v40, %v1088_v14  ;;  %v4809_v14 = vld [vmem:[#allocation2 + $0x140] sm:$0xf0]  ;;  %v4804_v40 = vld [vmem:[#allocation2 + $0x118] sm:$0xf0] }
 0x230   :  { %v3989_v16 = vor.u32 %v4809_v14, %v3988_v13  ;;  %v3937_v13 = vor.u32 %v4795_v11, %v3936_v10  ;;  %v4821_v10 = vld [vmem:[#allocation10 + $0x60] sm:$0xff] }
 0x231   :  { %v1101_v42 = vpack.c.bf16 %v1100_v41, %v1100_v41 }
 0x232   :  { %1370 = vmatpush.bf16.msra.mxu3 %v3989_v16 }
 0x233   :  { %v1102_v43 = vunpack.c.l.bf16 %v1101_v42  ;;  %v3965_v42 = vor.u32 %v4803_v35, %v3964_v33  ;;  %v1033_v33 = vunpack.c.l.bf16 %v1031_v30 }
 0x235   :  { %v1103_v44 = vmul.f32 0.796875, %v1102_v43  ;;  %v3969_v43 = vor.u32 %v4802_v36, %v3966_v38 }
 0x236   :  { %1371 = vmatpush.bf16.msra.mxu3 %v3977_v26 }
 0x237   :  { %v1104_v45 = vpack.c.bf16 %v1103_v44, %v1103_v44  ;;  %v3973_v44 = vor.u32 %v4804_v40, %v3972_v39  ;;  %1385 = vmatpush.bf16.msrb.mxu0 %v3969_v43  ;;  %v5632_v43 = vld [vmem:[%s5882_s4 + $0x3] sm:$0x7] }
 0x239   :  { %v1105_v46 = vunpack.c.l.bf16 %v1104_v45  ;;  %v3952_v45 = vld [vmem:[#allocation2 + $0xf0] sm:$0xf]  ;;  %1398 = vmatpush.bf16.msrb.mxu1 %v3973_v44  ;;  %v1236_v44 = vperm.slane %v5632_v43, 2 }
 0x23a   :  { %1372 = vmatpush.bf16.msra.mxu3 %v3965_v42 }
 0x23b   :  { %5006 = vtanh.f32 %v1105_v46  ;;  %v4800_v46 = vld [vmem:[#allocation2 + $0xf8] sm:$0xf0] }
 0x241   :  { %v5007_v48 = vpop.eup %5006 }
 0x242   :  { %v1107_v50 = vpack.c.bf16 %v5007_v48, %v5007_v48  ;;  %v4799_v48 = vld [vmem:[#allocation2 + $0xf4] sm:$0xf] }
 0x244   :  { %v1108_v51 = vunpack.c.l.bf16 %v1107_v50  ;;  %v3954_v50 = vld [vmem:[#allocation2 + $0xfc] sm:$0xf0] }
 0x246   :  { %v1109_v53 = vadd.f32 1.0, %v1108_v51  ;;  %v3960_v51 = vld [vmem:[#allocation2 + $0xf8] sm:$0xf] }
 0x248   :  { %v1110_v54 = vpack.c.bf16 %v1109_v53, %v1109_v53 }
 0x24a   :  { %v1112_v47 = vunpack.c.l.bf16 %v1110_v54  ;;  %v3953_v54 = vor.u32 %v4800_v46, %v3952_v45 }
 0x24c   :  { %v1113_v57 = vmul.f32 %v1112_v47, %v1111_v55  ;;  %v3957_v55 = vor.u32 %v4799_v48, %v3954_v50  ;;  %v3961_v47 = vor.u32 %v4801_v52, %v3960_v51  ;;  %1373 = vmatpush.bf16.msra.mxu3 %v3953_v54 }
 0x24e   :  { %v1114_v58 = vpack.c.bf16 %v1113_v57, %v1113_v57  ;;  %1386 = vmatpush.bf16.msrb.mxu0 %v3957_v55  ;;  %1399 = vmatpush.bf16.msrb.mxu1 %v3961_v47 }
 0x250   :  { %1191 = vmatmul.bf16.vlgmr.msra.gmra.mxu2 %v1114_v58  ;;  %1374 = vmatpush.bf16.msra.mxu3 %v3941_v63 }
 0x252   :  { %1387 = vmatpush.bf16.msrb.mxu0 %v3945_v3  ;;  %1400 = vmatpush.bf16.msrb.mxu1 %v3949_v4  ;;  %v4823_v4 = vld [vmem:[#allocation10 + $0x70] sm:$0xff] }
 0x253   :  { %1540 = vmatpush.bf16.msrb.mxu2 %v4823_v4 }
 0x254   :  { %1375 = vmatpush.bf16.msra.mxu3 %v3929_v8 }
 0x256   :  { %1388 = vmatpush.bf16.msrb.mxu0 %v3933_v12  ;;  %1401 = vmatpush.bf16.msrb.mxu1 %v3937_v13  ;;  %v4820_v13 = vld [vmem:[#allocation10 + $0x58] sm:$0xff] }
 0x257   :  { %1541 = vmatpush.bf16.msrb.mxu2 %v4822_v6 }
 0x25b   :  { %1542 = vmatpush.bf16.msrb.mxu2 %v4821_v10 }
 0x25f   :  { %1543 = vmatpush.bf16.msrb.mxu2 %v4820_v13 }
 0x2a8   :  { %v1009_v37 = vpop.f32.mrf.mxu1 }
 0x2a9   :  { %v1010_v41 = vadd.f32 %v4986_v20, %v1009_v37 }
 0x2ab   :  { %v1013_v49 = vpack.c.bf16 %v1010_v41, %v1010_v41 }
 0x2ad   :  { %v1014_v53 = vxor.u32 2147516416, %v1013_v49  ;;  %v1234_v49 = vperm.slane %v5632_v43, 0 }
 0x2af   :  { %v1015_v57 = vunpack.c.l.bf16 %v1014_v53 }
 0x2b0   :  { %v1011_v58 = vpop.f32.mrf.mxu1 }
 0x2b1   :  { %v1016_v59 = vmul.f32 1.442695, %v1015_v57 }
 0x2b3   :  { %5008 = vpow2.f32 %v1016_v59 }
 0x2b9   :  { %v5009_v14 = vpop.eup %5008 }
 0x2ba   :  { %v1018_v15 = vpack.c.bf16 %v5009_v14, %v5009_v14 }
 0x2bc   :  { %v1019_v16 = vunpack.c.l.bf16 %v1018_v15 }
 0x2be   :  { %v1020_v17 = vadd.f32 1.0, %v1019_v16 }
 0x2c0   :  { %v1021_v18 = vpack.c.bf16 %v1020_v17, %v1020_v17  ;;  %v4819_v17 = vld [vmem:[#allocation10 + $0x50] sm:$0xff] }
 0x2c1   :  { %1544 = vmatpush.bf16.msrb.mxu2 %v4819_v17 }
 0x2c2   :  { %v1024_v19 = vunpack.c.h.bf16 %v1021_v18  ;;  %v1025_v20 = vunpack.c.l.bf16 %v1021_v18 }
 0x2c4   :  { %5010 = vrcp.f32 %v1024_v19 }
 0x2c5   :  { %5012 = vrcp.f32 %v1025_v20 }
 0x2ca   :  { %v5011_v26 = vpop.eup %5010 }
 0x2cb   :  { %v5013_v28 = vpop.eup %5012  ;;  %v1027_v29 = vmul.f32 %v5011_v26, %v5622_v23  ;;  %v4818_v26 = vld [vmem:[#allocation10 + $0x48] sm:$0xff] }
 0x2cc   :  { %v1029_v31 = vmul.f32 %v5013_v28, %v5625_v25  ;;  %1545 = vmatpush.bf16.msrb.mxu2 %v4818_v26 }
 0x2ce   :  { %v1030_v32 = vpack.c.bf16 %v1027_v29, %v1029_v31  ;;  %v4054_v31 = vld [vmem:[%s5883_s5 + $0x1] sm:$0x1] }
 0x2d0   :  { %v1032_v35 = vunpack.c.l.bf16 %v1030_v32 }
 0x2d2   :  { %v1034_v36 = vmul.f32 %v1033_v33, %v1032_v35  ;;  %v4817_v33 = vld [vmem:[#allocation10 + $0x40] sm:$0xff] }
 0x2d3   :  { %v1192_v37 = vpop.f32.mrf.mxu2  ;;  %1546 = vmatpush.bf16.msrb.mxu2 %v4817_v33 }
 0x2d4   :  { %v1035_v38 = vpack.c.bf16 %v1034_v36, %v1034_v36  ;;  %v1193_v39 = vadd.f32 %v4987_v27, %v1192_v37  ;;  %v1609_v37 = vpack.c.bf16 %v4054_v31, %v4054_v31 }
 0x2d6   :  { %v1036_v40 = vunpack.c.l.bf16 %v1035_v38 }
 0x2d8   :  { %v1196_v41 = vadd.f32 %v1193_v39, %v1036_v40  ;;  %v4055_v39 = vld [vmem:[%s5884_s6 + $0x1] sm:$0x1] }
 0x2da   :  { %v1232_v34 = vpack.c.bf16 %v1196_v41, %v1196_v41 }
 0x2db   :  { %v1194_v42 = vpop.f32.mrf.mxu2 }
 0x2dc   :  { %1376 = vmatmul.bf16.vlgmr.msra.gmra.mxu3 %v1232_v34  ;;  %1389 = vmatmul.bf16.vlgmr.msrb.gmra.mxu0 %v1232_v34 }
 0x2dd   :  { %1402 = vmatmul.bf16.vlgmr.msrb.gmra.mxu1 %v1232_v34 }
 0x359   :  { %v5635_v45 = vpop.f32.mrf.mxu0 }
 0x35a   :  { %v1403_v46 = vpop.f32.mrf.mxu1 }
 0x35b   :  { %v1404_v48 = vadd.f32 %v1403_v46, %v1236_v44  ;;  %v1611_v44 = vpack.i.b16 %v1609_v37, %v1609_v37 }
 0x35d   :  { %v1408_v50 = vmul.f32 0.044715, %v1404_v48  ;;  %v1407_v62 = vmul.f32 0.5, %v1404_v48 }
 0x35f   :  { %v1377_v51 = vpop.f32.mrf.mxu3  ;;  %v1409_v52 = vmul.f32 %v1408_v50, %v1404_v48 }
 0x360   :  { %v1378_v53 = vadd.f32 %v1377_v51, %v1234_v49  ;;  %v1618_v49 = vpack.c.bf16 %v4055_v39, %v4055_v39 }
 0x361   :  { %v1392_v54 = vpop.f32.mrf.mxu0  ;;  %v1410_v55 = vmul.f32 %v1409_v52, %v1404_v48 }
 0x362   :  { %v1405_v47 = vpop.f32.mrf.mxu1  ;;  %1578 = vadd.xlane.f32.xlu2 %v1378_v53  ;;  %v1581_v60 = vmul.f32 %v1378_v53, %v1378_v53  ;;  %v1598_v22 = vpack.c.bf16 %v1378_v53, %v1378_v53  ;;  %v4831_v54 = vld [vmem:[%s5885_s7 + $0x70] sm:$0xff] }
 0x363   :  { %v1411_v57 = vadd.f32 %v1410_v55, %v1404_v48  ;;  %v4832_v48 = vld [vmem:[%s5885_s7 + $0x78] sm:$0xff]  ;;  %v1417_v47 = vld [vmem:[#allocation7 + $0x1] sm:$0x1] }
 0x364   :  { %v1600_v35 = vunpack.c.l.bf16 %v1598_v22  ;;  %1724 = vmatpush.bf16.msrb.mxu3 %v4832_v48  ;;  %v4828_v22 = vld [vmem:[%s5885_s7 + $0x58] sm:$0xff] }
 0x365   :  { %v1412_v58 = vmul.f32 0.7978846, %v1411_v57 }
 0x367   :  { %v1379_v59 = vpop.f32.mrf.mxu3  ;;  %5014 = vtanh.f32 %v1412_v58  ;;  %v1613_v58 = vperm.slane %v1611_v44, 0 }
 0x368   :  { %1725 = vmatpush.bf16.msrb.mxu3 %v4831_v54 }
 0x369   :  { %v1615_v4 = vunpack.c.l.bf16 %v1613_v58 }
 0x36a   :  { %1582 = vadd.xlane.f32.xlu2 %v1581_v60 }
 0x36c   :  { %1726 = vmatpush.bf16.msrb.mxu3 %v4830_v2 }
 0x36d   :  { %v5015_v61 = vpop.eup %5014 }
 0x36e   :  { %v1414_v63 = vadd.f32 1.0, %v5015_v61  ;;  %v1620_v61 = vpack.i.b16 %v1618_v49, %v1618_v49 }
 0x370   :  { %v5638_v0 = vmul.f32 %v1414_v63, %v1407_v62  ;;  %v1622_v6 = vperm.slane %v1620_v61, 0 }
 0x372   :  { %1420 = vadd.xlane.f32.xlu0 %v5638_v0  ;;  %v1423_v1 = vmul.f32 %v5638_v0, %v5638_v0  ;;  %v1440_v46 = vpack.c.bf16 %v5638_v0, %v5638_v0  ;;  %v1624_v17 = vunpack.c.l.bf16 %v1622_v6 }
 0x374   :  { %1424 = vadd.xlane.f32.xlu1 %v1423_v1  ;;  %v1442_v60 = vunpack.c.l.bf16 %v1440_v46  ;;  %v1451_v1 = vpack.c.bf16 %v1417_v47, %v1417_v47 }
 0x3d5   :  { %v1579_v3 = vpop.xlane.xlu2 %1578 }
 0x3d6   :  { %v1580_v5 = vmul.f32 %v1579_v3, %v5583_v56 }
 0x3d8   :  { %v1585_v8 = vmul.f32 %v1580_v5, %v1580_v5  ;;  %v1599_v18 = vpack.c.bf16 %v1580_v5, %v1580_v5 }
 0x3da   :  { %v1601_v29 = vunpack.c.l.bf16 %v1599_v18 }
 0x3dc   :  { %v1602_v36 = vsub.f32 %v1600_v35, %v1601_v29 }
 0x3dd   :  { %v1583_v7 = vpop.xlane.xlu2 %1582 }
 0x3de   :  { %v1584_v9 = vmul.f32 %v1583_v7, %v5583_v56  ;;  %v1603_v42 = vpack.c.bf16 %v1602_v36, %v1602_v36 }
 0x3e0   :  { %v1586_v11 = vsub.f32 %v1584_v9, %v1585_v8  ;;  %v1605_v57 = vunpack.c.l.bf16 %v1603_v42  ;;  %v1419_v8 = vld [vmem:[#allocation8 + $0x1] sm:$0x1]  ;;  %v4825_v42 = vld [vmem:[%s5885_s7 + $0x40] sm:$0xff] }
 0x3e2   :  { %v1587_v12 = vadd.f32 1e-05, %v1586_v11  ;;  %v1453_v11 = vpack.i.b16 %v1451_v1, %v1451_v1 }
 0x3e4   :  { %5016 = vrsqrt.f32 %v1587_v12  ;;  %vm1594_vm8 = vweird.f32 %v1587_v12 }
 0x3e5   :  { %v1421_v14 = vpop.xlane.xlu0 %1420 }
 0x3e6   :  { %v1422_v15 = vmul.f32 %v1421_v14, %v5583_v56 }
 0x3e7   :  { %v1425_v16 = vpop.xlane.xlu1 %1424 }
 0x3e8   :  { %v1427_v19 = vmul.f32 %v1422_v15, %v1422_v15  ;;  %v1426_v20 = vmul.f32 %v1425_v16, %v5583_v56  ;;  %v1441_v40 = vpack.c.bf16 %v1422_v15, %v1422_v15  ;;  %v1460_v16 = vpack.c.bf16 %v1419_v8, %v1419_v8 }
 0x3ea   :  { %v5017_v21 = vpop.eup %5016  ;;  %v1428_v24 = vsub.f32 %v1426_v20, %v1427_v19  ;;  %v1443_v53 = vunpack.c.l.bf16 %v1441_v40 }
 0x3eb   :  { %v1589_v28 = vmul.f32 %v5017_v21, %v1587_v12  ;;  %vm1595_vm7 = vweird.f32 %v5017_v21  ;;  %v4829_v12 = vld [vmem:[%s5885_s7 + $0x60] sm:$0xff] }
 0x3ec   :  { %v1429_v30 = vadd.f32 1e-05, %v1428_v24  ;;  %vm1596_vm9 = vmor %vm1594_vm8, %vm1595_vm7  ;;  %v1444_v0 = vsub.f32 %v1442_v60, %v1443_v53  ;;  %1727 = vmatpush.bf16.msrb.mxu3 %v4829_v12 }
 0x3ed   :  { %v1590_v32 = vmul.f32 %v5017_v21, %v1589_v28  ;;  %v1462_v28 = vpack.i.b16 %v1460_v16, %v1460_v16 }
 0x3ee   :  { %5018 = vrsqrt.f32 %v1429_v30  ;;  %vm1436_vm11 = vweird.f32 %v1429_v30  ;;  %v1445_v10 = vpack.c.bf16 %v1444_v0, %v1444_v0 }
 0x3ef   :  { %v1591_v27 = vmul.f32 0.5, %v1590_v32  ;;  %v4827_v32 = vld [vmem:[%s5885_s7 + $0x50] sm:$0xff] }
 0x3f0   :  { %v1447_v19 = vunpack.c.l.bf16 %v1445_v10  ;;  %1728 = vmatpush.bf16.msrb.mxu3 %v4828_v22  ;;  %v4855_v10 = vld [vmem:[#allocation2 + $0x230] sm:$0xf0]  ;;  %v4181_v22 = vld [vmem:[#allocation2 + $0x21c] sm:$0xf0] }
 0x3f1   :  { %v1592_v38 = vsub.f32 1.5, %v1591_v27  ;;  %v1464_v27 = vperm.slane %v1462_v28, 0 }
 0x3f3   :  { %v1593_v41 = vmul.f32 %v5017_v21, %v1592_v38  ;;  %v4826_v38 = vld [vmem:[%s5885_s7 + $0x48] sm:$0xff]  ;;  %v1466_v40 = vunpack.c.l.bf16 %v1464_v27  ;;  %v4175_v27 = vld [vmem:[#allocation2 + $0x200] sm:$0xf] }
 0x3f4   :  { %v5019_v34 = vpop.eup %5018  ;;  %1729 = vmatpush.bf16.msrb.mxu3 %v4827_v32  ;;  %v4848_v32 = vld [vmem:[#allocation2 + $0x1fc] sm:$0xf] }
 0x3f5   :  { %v1597_v50 = vsel %vm1596_vm9, %v5017_v21, %v1593_v41  ;;  %v1431_v51 = vmul.f32 %v5019_v34, %v1429_v30  ;;  %vm1437_vm10 = vweird.f32 %v5019_v34  ;;  %v1455_v21 = vperm.slane %v1453_v11, 0  ;;  %v4854_v11 = vld [vmem:[#allocation2 + $0x22c] sm:$0xf] }
 0x3f6   :  { %v1604_v52 = vpack.c.bf16 %v1597_v50, %v1597_v50  ;;  %vm1438_vm12 = vmor %vm1436_vm11, %vm1437_vm10 }
 0x3f7   :  { %v1432_v55 = vmul.f32 %v5019_v34, %v1431_v51  ;;  %v1457_v31 = vunpack.c.l.bf16 %v1455_v21 }
 0x3f8   :  { %v1606_v59 = vunpack.c.l.bf16 %v1604_v52  ;;  %1730 = vmatpush.bf16.msrb.mxu3 %v4826_v38 }
 0x3f9   :  { %v1433_v62 = vmul.f32 0.5, %v1432_v55 }
 0x3fa   :  { %v1607_v63 = vmul.f32 %v1606_v59, %v1605_v57 }
 0x3fb   :  { %v1434_v3 = vsub.f32 1.5, %v1433_v62 }
 0x3fc   :  { %v1608_v5 = vpack.c.bf16 %v1607_v63, %v1607_v63  ;;  %1731 = vmatpush.bf16.msrb.mxu3 %v4825_v42 }
 0x3fd   :  { %v1435_v7 = vmul.f32 %v5019_v34, %v1434_v3 }
 0x3fe   :  { %v1614_v9 = vunpack.c.l.bf16 %v1608_v5 }
 0x3ff   :  { %v1439_v13 = vsel %vm1438_vm12, %v5019_v34, %v1435_v7 }
 0x400   :  { %v1616_v14 = vmul.f32 %v1615_v4, %v1614_v9  ;;  %v1446_v15 = vpack.c.bf16 %v1439_v13, %v1439_v13  ;;  %v4191_v9 = vld [vmem:[#allocation2 + $0x228] sm:$0xf]  ;;  %v4193_v13 = vld [vmem:[#allocation2 + $0x234] sm:$0xf0] }
 0x401   :  { %v4192_v12 = vor.u32 %v4855_v10, %v4191_v9  ;;  %v4196_v16 = vor.u32 %v4854_v11, %v4193_v13  ;;  %v4837_v13 = vld [vmem:[#allocation2 + $0x1a0] sm:$0xf0] }
 0x402   :  { %v1617_v18 = vpack.c.bf16 %v1616_v14, %v1616_v14  ;;  %v1448_v20 = vunpack.c.l.bf16 %v1446_v15  ;;  %v4199_v14 = vld [vmem:[#allocation2 + $0x230] sm:$0xf]  ;;  %v4856_v15 = vld [vmem:[#allocation2 + $0x238] sm:$0xf0] }
 0x403   :  { %1909 = vmatpush.bf16.msra.mxu0 %v4192_v12  ;;  %1922 = vmatpush.bf16.msra.mxu1 %v4196_v16  ;;  %v4119_v12 = vld [vmem:[#allocation2 + $0x198] sm:$0xf]  ;;  %v4121_v16 = vld [vmem:[#allocation2 + $0x1a4] sm:$0xf0] }
 0x404   :  { %v1623_v24 = vunpack.c.l.bf16 %v1617_v18  ;;  %v1449_v26 = vmul.f32 %v1448_v20, %v1447_v19  ;;  %v4179_v18 = vld [vmem:[#allocation2 + $0x210] sm:$0xf]  ;;  %v4852_v19 = vld [vmem:[#allocation2 + $0x218] sm:$0xf0]  ;;  %v4851_v20 = vld [vmem:[#allocation2 + $0x214] sm:$0xf] }
 0x405   :  { %v4180_v21 = vor.u32 %v4852_v19, %v4179_v18  ;;  %v4184_v28 = vor.u32 %v4851_v20, %v4181_v22  ;;  %v4838_v18 = vld [vmem:[#allocation2 + $0x1a8] sm:$0xf0] }
 0x406   :  { %v1625_v29 = vadd.f32 %v1624_v17, %v1623_v24  ;;  %v1450_v30 = vpack.c.bf16 %v1449_v26, %v1449_v26  ;;  %v4200_v17 = vor.u32 %v4856_v15, %v4199_v14  ;;  %v4187_v24 = vld [vmem:[#allocation2 + $0x218] sm:$0xf]  ;;  %v4853_v26 = vld [vmem:[#allocation2 + $0x220] sm:$0xf0]  ;;  %v4836_v14 = vld [vmem:[#allocation2 + $0x19c] sm:$0xf]  ;;  %v4120_v15 = vor.u32 %v4837_v13, %v4119_v12 }
 0x407   :  { %1910 = vmatpush.bf16.msra.mxu0 %v4180_v21  ;;  %1923 = vmatpush.bf16.msra.mxu1 %v4184_v28  ;;  %v4124_v19 = vor.u32 %v4836_v14, %v4121_v16  ;;  %v4107_v21 = vld [vmem:[#allocation2 + $0x180] sm:$0xf]  ;;  %v4834_v22 = vld [vmem:[#allocation2 + $0x188] sm:$0xf0]  ;;  %v4109_v28 = vld [vmem:[#allocation2 + $0x18c] sm:$0xf0] }
 0x408   :  { %v1626_v33 = vpack.c.bf16 %v1625_v29, %v1625_v29  ;;  %v1456_v35 = vunpack.c.l.bf16 %v1450_v30  ;;  %1935 = vmatpush.bf16.msra.mxu2 %v4200_v17  ;;  %v4188_v29 = vor.u32 %v4853_v26, %v4187_v24  ;;  %v4167_v30 = vld [vmem:[#allocation2 + $0x1f8] sm:$0xf]  ;;  %v4127_v17 = vld [vmem:[#allocation2 + $0x1a0] sm:$0xf]  ;;  %v4833_v24 = vld [vmem:[#allocation2 + $0x184] sm:$0xf]  ;;  %v4108_v26 = vor.u32 %v4834_v22, %v4107_v21 }
 0x409   :  { %v4128_v20 = vor.u32 %v4838_v18, %v4127_v17 }
 0x40a   :  { %v1627_v36 = vunpack.c.l.bf16 %v1626_v33  ;;  %v1458_v37 = vmul.f32 %v1457_v31, %v1456_v35  ;;  %v4849_v31 = vld [vmem:[#allocation2 + $0x200] sm:$0xf0]  ;;  %v4169_v35 = vld [vmem:[#allocation2 + $0x204] sm:$0xf0] }
 0x40b   :  { %v4168_v33 = vor.u32 %v4849_v31, %v4167_v30  ;;  %v4172_v38 = vor.u32 %v4848_v32, %v4169_v35  ;;  %v4835_v30 = vld [vmem:[#allocation2 + $0x190] sm:$0xf0]  ;;  %v4112_v31 = vor.u32 %v4833_v24, %v4109_v28 }
 0x40c   :  { %v1459_v39 = vpack.c.bf16 %v1458_v37, %v1458_v37  ;;  %v1630_v41 = vmul.f32 0.044677734, %v1627_v36  ;;  %v1628_v63 = vmul.f32 0.5, %v1627_v36  ;;  %1936 = vmatpush.bf16.msra.mxu2 %v4188_v29  ;;  %v4988_v37 = vld [vmem:[#allocation11 + $0x1] ss:$0 sm:$0xff]  ;;  %v4115_v29 = vld [vmem:[#allocation2 + $0x188] sm:$0xf] }
 0x40d   :  { %1911 = vmatpush.bf16.msra.mxu0 %v4168_v33  ;;  %1924 = vmatpush.bf16.msra.mxu1 %v4172_v38  ;;  %v4116_v32 = vor.u32 %v4835_v30, %v4115_v29  ;;  %v4863_v29 = vld [vmem:[#allocation10 + $0xb0] sm:$0xff] }
 0x40e   :  { %v1465_v34 = vunpack.c.l.bf16 %v1459_v39  ;;  %v1631_v44 = vpack.c.bf16 %v1630_v41, %v1630_v41  ;;  %v1629_v2 = vpack.c.bf16 %v1628_v63, %v1628_v63  ;;  %v4846_v41 = vld [vmem:[#allocation2 + $0x1e8] sm:$0xf0]  ;;  %v4840_v63 = vld [vmem:[#allocation2 + $0x1b8] sm:$0xf0] }
 0x410   :  { %v1467_v46 = vadd.f32 %v1466_v40, %v1465_v34  ;;  %v1632_v48 = vunpack.c.l.bf16 %v1631_v44  ;;  %v1650_v5 = vunpack.c.l.bf16 %v1629_v2  ;;  %v4155_v40 = vld [vmem:[#allocation2 + $0x1e0] sm:$0xf]  ;;  %v4845_v34 = vld [vmem:[#allocation2 + $0x1e4] sm:$0xf]  ;;  %v4157_v44 = vld [vmem:[#allocation2 + $0x1ec] sm:$0xf0] }
 0x411   :  { %v4156_v42 = vor.u32 %v4846_v41, %v4155_v40  ;;  %v4133_v2 = vld [vmem:[#allocation2 + $0x1bc] sm:$0xf0]  ;;  %v1235_v40 = vperm.slane %v5632_v43, 1 }
 0x412   :  { %v1468_v49 = vpack.c.bf16 %v1467_v46, %v1467_v46  ;;  %v1633_v50 = vmul.f32 %v1632_v48, %v1627_v36  ;;  %v4163_v46 = vld [vmem:[#allocation2 + $0x1e8] sm:$0xf]  ;;  %v4847_v48 = vld [vmem:[#allocation2 + $0x1f0] sm:$0xf0] }
 0x413   :  { %1912 = vmatpush.bf16.msra.mxu0 %v4156_v42  ;;  %v1391_v41 = vadd.f32 %v5635_v45, %v1235_v40  ;;  %v5686_v45 = vld [vmem:[%s5882_s4 + $0x6] sm:$0x7] }
 0x414   :  { %1547 = vmatmul.bf16.vlgmr.msrb.gmra.mxu2 %v1468_v49  ;;  %v1634_v51 = vpack.c.bf16 %v1633_v50, %v1633_v50  ;;  %v4160_v49 = vor.u32 %v4845_v34, %v4157_v44  ;;  %v4164_v50 = vor.u32 %v4847_v48, %v4163_v46 }
 0x415   :  { %v1568_v46 = vpack.c.bf16 %v1391_v41, %v1391_v41 }
 0x416   :  { %v1635_v52 = vunpack.c.l.bf16 %v1634_v51  ;;  %v4143_v51 = vld [vmem:[#allocation2 + $0x1c8] sm:$0xf]  ;;  %1925 = vmatpush.bf16.msra.mxu1 %v4160_v49 }
 0x418   :  { %v1636_v53 = vmul.f32 %v1635_v52, %v1627_v36  ;;  %v4843_v52 = vld [vmem:[#allocation2 + $0x1d0] sm:$0xf0] }
 0x41a   :  { %v1637_v54 = vpack.c.bf16 %v1636_v53, %v1636_v53  ;;  %v4842_v53 = vld [vmem:[#allocation2 + $0x1cc] sm:$0xf] }
 0x41c   :  { %v1638_v55 = vunpack.c.l.bf16 %v1637_v54 }
 0x41e   :  { %v1639_v47 = vadd.f32 %v1638_v55, %v1627_v36  ;;  %v4850_v36 = vld [vmem:[#allocation2 + $0x208] sm:$0xf0]  ;;  %v4145_v55 = vld [vmem:[#allocation2 + $0x1d4] sm:$0xf0] }
 0x41f   :  { %v4176_v39 = vor.u32 %v4850_v36, %v4175_v27 }
 0x420   :  { %v1640_v57 = vpack.c.bf16 %v1639_v47, %v1639_v47  ;;  %v4151_v47 = vld [vmem:[#allocation2 + $0x1d0] sm:$0xf] }
 0x421   :  { %1937 = vmatpush.bf16.msra.mxu2 %v4176_v39 }
 0x422   :  { %v1641_v58 = vunpack.c.l.bf16 %v1640_v57  ;;  %v4844_v57 = vld [vmem:[#allocation2 + $0x1d8] sm:$0xf0] }
 0x424   :  { %v1642_v59 = vmul.f32 0.796875, %v1641_v58 }
 0x425   :  { %1938 = vmatpush.bf16.msra.mxu2 %v4164_v50  ;;  %v1570_v50 = vunpack.c.l.bf16 %v1568_v46 }
 0x426   :  { %v1643_v60 = vpack.c.bf16 %v1642_v59, %v1642_v59  ;;  %v4144_v59 = vor.u32 %v4843_v52, %v4143_v51  ;;  %v4989_v52 = vld [vmem:[#allocation5 + $0x1] ss:$0 sm:$0xff] }
 0x428   :  { %v1644_v61 = vunpack.c.l.bf16 %v1643_v60  ;;  %v4148_v60 = vor.u32 %v4842_v53, %v4145_v55  ;;  %1913 = vmatpush.bf16.msra.mxu0 %v4144_v59 }
 0x42a   :  { %5020 = vtanh.f32 %v1644_v61  ;;  %v4152_v61 = vor.u32 %v4844_v57, %v4151_v47  ;;  %1926 = vmatpush.bf16.msra.mxu1 %v4148_v60  ;;  %v1775_v60 = vperm.slane %v5686_v45, 0 }
 0x42c   :  { %1939 = vmatpush.bf16.msra.mxu2 %v4152_v61 }
 0x430   :  { %v5021_v62 = vpop.eup %5020 }
 0x431   :  { %v1646_v0 = vpack.c.bf16 %v5021_v62, %v5021_v62  ;;  %v4131_v62 = vld [vmem:[#allocation2 + $0x1b0] sm:$0xf] }
 0x433   :  { %v1647_v1 = vunpack.c.l.bf16 %v1646_v0  ;;  %v4839_v0 = vld [vmem:[#allocation2 + $0x1b4] sm:$0xf] }
 0x435   :  { %v1648_v3 = vadd.f32 1.0, %v1647_v1 }
 0x437   :  { %v1649_v4 = vpack.c.bf16 %v1648_v3, %v1648_v3  ;;  %v4139_v3 = vld [vmem:[#allocation2 + $0x1b8] sm:$0xf] }
 0x439   :  { %v1651_v6 = vunpack.c.l.bf16 %v1649_v4  ;;  %v4841_v4 = vld [vmem:[#allocation2 + $0x1c0] sm:$0xf0] }
 0x43b   :  { %v1652_v7 = vmul.f32 %v1651_v6, %v1650_v5  ;;  %v4132_v6 = vor.u32 %v4840_v63, %v4131_v62 }
 0x43d   :  { %v1653_v8 = vpack.c.bf16 %v1652_v7, %v1652_v7  ;;  %v4136_v7 = vor.u32 %v4839_v0, %v4133_v2  ;;  %1914 = vmatpush.bf16.msra.mxu0 %v4132_v6 }
 0x43f   :  { %1732 = vmatmul.bf16.vlgmr.msrb.gmra.mxu3 %v1653_v8  ;;  %v4140_v8 = vor.u32 %v4841_v4, %v4139_v3  ;;  %1927 = vmatpush.bf16.msra.mxu1 %v4136_v7 }
 0x441   :  { %1940 = vmatpush.bf16.msra.mxu2 %v4140_v8  ;;  %1915 = vmatpush.bf16.msra.mxu0 %v4120_v15 }
 0x443   :  { %1928 = vmatpush.bf16.msra.mxu1 %v4124_v19 }
 0x445   :  { %1941 = vmatpush.bf16.msra.mxu2 %v4128_v20  ;;  %1916 = vmatpush.bf16.msra.mxu0 %v4108_v26  ;;  %v4864_v26 = vld [vmem:[#allocation10 + $0xb8] sm:$0xff] }
 0x446   :  { %2080 = vmatpush.bf16.msra.mxu3 %v4864_v26 }
 0x447   :  { %1929 = vmatpush.bf16.msra.mxu1 %v4112_v31 }
 0x449   :  { %1942 = vmatpush.bf16.msra.mxu2 %v4116_v32 }
 0x44a   :  { %2081 = vmatpush.bf16.msra.mxu3 %v4863_v29 }
 0x497   :  { %v1548_v54 = vpop.f32.mrf.mxu2 }
 0x498   :  { %v1549_v58 = vadd.f32 %v4988_v37, %v1548_v54 }
 0x49a   :  { %v1552_v1 = vpack.c.bf16 %v1549_v58, %v1549_v58 }
 0x49c   :  { %v1553_v5 = vxor.u32 2147516416, %v1552_v1  ;;  %v1777_v1 = vperm.slane %v5686_v45, 2 }
 0x49e   :  { %v1554_v9 = vunpack.c.l.bf16 %v1553_v5 }
 0x49f   :  { %v1550_v10 = vpop.f32.mrf.mxu2 }
 0x4a0   :  { %v1555_v11 = vmul.f32 1.442695, %v1554_v9 }
 0x4a2   :  { %5022 = vpow2.f32 %v1555_v11 }
 0x4a8   :  { %v5023_v33 = vpop.eup %5022 }
 0x4a9   :  { %v1557_v35 = vpack.c.bf16 %v5023_v33, %v5023_v33 }
 0x4ab   :  { %v1558_v27 = vunpack.c.l.bf16 %v1557_v35  ;;  %v4233_v35 = vld [vmem:[%s5883_s5 + $0x2] sm:$0x1] }
 0x4ac   :  { %v2150_v40 = vpack.c.bf16 %v4233_v35, %v4233_v35 }
 0x4ad   :  { %v1559_v36 = vadd.f32 1.0, %v1558_v27 }
 0x4af   :  { %v1560_v37 = vpack.c.bf16 %v1559_v36, %v1559_v36  ;;  %v4862_v36 = vld [vmem:[#allocation10 + $0xa8] sm:$0xff] }
 0x4b0   :  { %2082 = vmatpush.bf16.msra.mxu3 %v4862_v36 }
 0x4b1   :  { %v1561_v38 = vunpack.c.h.bf16 %v1560_v37  ;;  %v1562_v39 = vunpack.c.l.bf16 %v1560_v37 }
 0x4b3   :  { %5024 = vrcp.f32 %v1561_v38 }
 0x4b4   :  { %5026 = vrcp.f32 %v1562_v39 }
 0x4b9   :  { %v5025_v34 = vpop.eup %5024 }
 0x4ba   :  { %v5027_v42 = vpop.eup %5026  ;;  %v1564_v44 = vmul.f32 %v5025_v34, %v5622_v23  ;;  %v4861_v34 = vld [vmem:[#allocation10 + $0xa0] sm:$0xff] }
 0x4bb   :  { %v1566_v48 = vmul.f32 %v5027_v42, %v5625_v25  ;;  %v4234_v42 = vld [vmem:[%s5884_s6 + $0x2] sm:$0x1]  ;;  %2083 = vmatpush.bf16.msra.mxu3 %v4861_v34 }
 0x4bd   :  { %v1567_v49 = vpack.c.bf16 %v1564_v44, %v1566_v48  ;;  %v2152_v48 = vpack.i.b16 %v2150_v40, %v2150_v40 }
 0x4bf   :  { %v1569_v51 = vunpack.c.l.bf16 %v1567_v49 }
 0x4c1   :  { %v1571_v53 = vmul.f32 %v1570_v50, %v1569_v51  ;;  %v4860_v50 = vld [vmem:[#allocation10 + $0x98] sm:$0xff]  ;;  %v2159_v51 = vpack.c.bf16 %v4234_v42, %v4234_v42 }
 0x4c2   :  { %v1733_v54 = vpop.f32.mrf.mxu3  ;;  %2084 = vmatpush.bf16.msra.mxu3 %v4860_v50 }
 0x4c3   :  { %v1572_v55 = vpack.c.bf16 %v1571_v53, %v1571_v53  ;;  %v1734_v47 = vadd.f32 %v4989_v52, %v1733_v54  ;;  %v4872_v53 = vld [vmem:[%s5885_s7 + $0xb8] sm:$0xff] }
 0x4c4   :  { %2265 = vmatpush.bf16.msrb.mxu0 %v4872_v53 }
 0x4c5   :  { %v1573_v43 = vunpack.c.l.bf16 %v1572_v55  ;;  %v4859_v55 = vld [vmem:[#allocation10 + $0x90] sm:$0xff] }
 0x4c6   :  { %2085 = vmatpush.bf16.msra.mxu3 %v4859_v55 }
 0x4c7   :  { %v1737_v57 = vadd.f32 %v1734_v47, %v1573_v43  ;;  %v2154_v43 = vperm.slane %v2152_v48, 0 }
 0x4c9   :  { %v1773_v58 = vpack.c.bf16 %v1737_v57, %v1737_v57 }
 0x4ca   :  { %v1735_v59 = vpop.f32.mrf.mxu3 }
 0x4cb   :  { %1917 = vmatmul.bf16.vlgmr.msra.gmra.mxu0 %v1773_v58  ;;  %1930 = vmatmul.bf16.vlgmr.msra.gmra.mxu1 %v1773_v58  ;;  %v4871_v59 = vld [vmem:[%s5885_s7 + $0xb0] sm:$0xff] }
 0x4cc   :  { %1943 = vmatmul.bf16.vlgmr.msra.gmra.mxu2 %v1773_v58  ;;  %2266 = vmatpush.bf16.msrb.mxu0 %v4871_v59 }
 0x548   :  { %v1918_v61 = vpop.f32.mrf.mxu0  ;;  %v5689_v62 = vpop.f32.mrf.mxu1 }
 0x549   :  { %v1919_v63 = vadd.f32 %v1918_v61, %v1775_v60  ;;  %v2161_v61 = vpack.i.b16 %v2159_v51, %v2159_v51 }
 0x54b   :  { %2119 = vadd.xlane.f32.xlu2 %v1919_v63  ;;  %v2122_v0 = vmul.f32 %v1919_v63, %v1919_v63  ;;  %v2139_v31 = vpack.c.bf16 %v1919_v63, %v1919_v63 }
 0x54d   :  { %2123 = vadd.xlane.f32.xlu0 %v2122_v0  ;;  %v2141_v37 = vunpack.c.l.bf16 %v2139_v31 }
 0x54f   :  { %v1944_v2 = vpop.f32.mrf.mxu2 }
 0x550   :  { %v1945_v3 = vadd.f32 %v1944_v2, %v1777_v1  ;;  %v1920_v4 = vpop.f32.mrf.mxu0  ;;  %v1933_v5 = vpop.f32.mrf.mxu1  ;;  %v4858_v2 = vld [vmem:[#allocation10 + $0x88] sm:$0xff] }
 0x551   :  { %2086 = vmatpush.bf16.msra.mxu3 %v4858_v2 }
 0x552   :  { %v1949_v6 = vmul.f32 0.044715, %v1945_v3  ;;  %v1948_v13 = vmul.f32 0.5, %v1945_v3 }
 0x554   :  { %v1950_v7 = vmul.f32 %v1949_v6, %v1945_v3  ;;  %v2163_v6 = vperm.slane %v2161_v61, 0 }
 0x556   :  { %v1951_v8 = vmul.f32 %v1950_v7, %v1945_v3 }
 0x557   :  { %v1946_v9 = vpop.f32.mrf.mxu2 }
 0x558   :  { %v1952_v10 = vadd.f32 %v1951_v8, %v1945_v3  ;;  %v2156_v3 = vunpack.c.l.bf16 %v2154_v43  ;;  %v4857_v9 = vld [vmem:[#allocation10 + $0x80] sm:$0xff] }
 0x559   :  { %2087 = vmatpush.bf16.msra.mxu3 %v4857_v9 }
 0x55a   :  { %v1953_v11 = vmul.f32 0.7978846, %v1952_v10 }
 0x55c   :  { %5028 = vtanh.f32 %v1953_v11  ;;  %v2165_v11 = vunpack.c.l.bf16 %v2163_v6 }
 0x562   :  { %v5029_v12 = vpop.eup %5028 }
 0x563   :  { %v1955_v14 = vadd.f32 1.0, %v5029_v12 }
 0x565   :  { %v5692_v15 = vmul.f32 %v1955_v14, %v1948_v13 }
 0x567   :  { %1961 = vadd.xlane.f32.xlu1 %v5692_v15  ;;  %v1964_v16 = vmul.f32 %v5692_v15, %v5692_v15 }
 0x569   :  { %1965 = vadd.xlane.f32.xlu2 %v1964_v16 }
 0x5be   :  { %v2120_v17 = vpop.xlane.xlu2 %2119 }
 0x5bf   :  { %v2121_v18 = vmul.f32 %v2120_v17, %v5583_v56 }
 0x5c0   :  { %v2124_v19 = vpop.xlane.xlu0 %2123 }
 0x5c1   :  { %v2126_v20 = vmul.f32 %v2121_v18, %v2121_v18  ;;  %v2125_v21 = vmul.f32 %v2124_v19, %v5583_v56  ;;  %v2140_v28 = vpack.c.bf16 %v2121_v18, %v2121_v18  ;;  %v1981_v18 = vpack.c.bf16 %v5692_v15, %v5692_v15  ;;  %v4870_v19 = vld [vmem:[%s5885_s7 + $0xa8] sm:$0xff]  ;;  %v4868_v15 = vld [vmem:[%s5885_s7 + $0x98] sm:$0xff] }
 0x5c2   :  { %2267 = vmatpush.bf16.msrb.mxu0 %v4870_v19 }
 0x5c3   :  { %v2127_v22 = vsub.f32 %v2125_v21, %v2126_v20  ;;  %v2142_v33 = vunpack.c.l.bf16 %v2140_v28  ;;  %v1958_v28 = vld [vmem:[#allocation7 + $0x2] sm:$0x1] }
 0x5c5   :  { %v2128_v24 = vadd.f32 1e-05, %v2127_v22  ;;  %v2143_v39 = vsub.f32 %v2141_v37, %v2142_v33  ;;  %v1992_v33 = vpack.c.bf16 %v1958_v28, %v1958_v28  ;;  %v4370_v28 = vld [vmem:[#allocation2 + $0x2e8] sm:$0xf] }
 0x5c7   :  { %5030 = vrsqrt.f32 %v2128_v24  ;;  %vm2135_vm14 = vweird.f32 %v2128_v24  ;;  %v2144_v46 = vpack.c.bf16 %v2143_v39, %v2143_v39  ;;  %v1994_v40 = vpack.i.b16 %v1992_v33, %v1992_v33  ;;  %v4372_v33 = vld [vmem:[#allocation2 + $0x2f4] sm:$0xf0] }
 0x5c9   :  { %v2146_v47 = vunpack.c.l.bf16 %v2144_v46  ;;  %v1996_v51 = vperm.slane %v1994_v40, 0  ;;  %v4360_v40 = vld [vmem:[#allocation2 + $0x2dc] sm:$0xf0] }
 0x5cd   :  { %v5031_v30 = vpop.eup %5030 }
 0x5ce   :  { %v2130_v32 = vmul.f32 %v5031_v30, %v2128_v24  ;;  %vm2136_vm13 = vweird.f32 %v5031_v30  ;;  %v4869_v24 = vld [vmem:[%s5885_s7 + $0xa0] sm:$0xff] }
 0x5cf   :  { %vm2137_vm15 = vmor %vm2135_vm14, %vm2136_vm13  ;;  %2268 = vmatpush.bf16.msrb.mxu0 %v4869_v24 }
 0x5d0   :  { %v2131_v27 = vmul.f32 %v5031_v30, %v2130_v32 }
 0x5d2   :  { %v2132_v38 = vmul.f32 0.5, %v2131_v27 }
 0x5d3   :  { %2269 = vmatpush.bf16.msrb.mxu0 %v4868_v15  ;;  %v4378_v15 = vld [vmem:[#allocation2 + $0x2f0] sm:$0xf] }
 0x5d4   :  { %v2133_v41 = vsub.f32 1.5, %v2132_v38  ;;  %v1960_v38 = vld [vmem:[#allocation8 + $0x2] sm:$0x1] }
 0x5d5   :  { %v2001_v46 = vpack.c.bf16 %v1960_v38, %v1960_v38  ;;  %v4891_v38 = vld [vmem:[#allocation2 + $0x2d4] sm:$0xf] }
 0x5d6   :  { %v2134_v44 = vmul.f32 %v5031_v30, %v2133_v41  ;;  %v4867_v41 = vld [vmem:[%s5885_s7 + $0x90] sm:$0xff] }
 0x5d7   :  { %2270 = vmatpush.bf16.msrb.mxu0 %v4867_v41  ;;  %v2003_v55 = vpack.i.b16 %v2001_v46, %v2001_v46  ;;  %v4366_v41 = vld [vmem:[#allocation2 + $0x2d8] sm:$0xf] }
 0x5d8   :  { %v2138_v49 = vsel %vm2137_vm15, %v5031_v30, %v2134_v44  ;;  %v1983_v30 = vunpack.c.l.bf16 %v1981_v18  ;;  %v4346_v46 = vld [vmem:[#allocation2 + $0x2b8] sm:$0xf] }
 0x5d9   :  { %v2145_v52 = vpack.c.bf16 %v2138_v49, %v2138_v49  ;;  %v2005_v61 = vperm.slane %v2003_v55, 0 }
 0x5da   :  { %v1962_v54 = vpop.xlane.xlu1 %1961 }
 0x5db   :  { %v2147_v57 = vunpack.c.l.bf16 %v2145_v52  ;;  %v1963_v58 = vmul.f32 %v1962_v54, %v5583_v56  ;;  %v4866_v52 = vld [vmem:[%s5885_s7 + $0x88] sm:$0xff] }
 0x5dc   :  { %v1966_v60 = vpop.xlane.xlu2 %1965  ;;  %2271 = vmatpush.bf16.msrb.mxu0 %v4866_v52  ;;  %v4354_v52 = vld [vmem:[#allocation2 + $0x2c0] sm:$0xf] }
 0x5dd   :  { %v2148_v63 = vmul.f32 %v2147_v57, %v2146_v47  ;;  %v1968_v0 = vmul.f32 %v1963_v58, %v1963_v58  ;;  %v1967_v1 = vmul.f32 %v1966_v60, %v5583_v56  ;;  %v1982_v14 = vpack.c.bf16 %v1963_v58, %v1963_v58  ;;  %v4865_v58 = vld [vmem:[%s5885_s7 + $0x80] sm:$0xff] }
 0x5de   :  { %v1998_v57 = vunpack.c.l.bf16 %v1996_v51  ;;  %v4348_v51 = vld [vmem:[#allocation2 + $0x2c4] sm:$0xf0] }
 0x5df   :  { %v2149_v4 = vpack.c.bf16 %v2148_v63, %v2148_v63  ;;  %v1969_v5 = vsub.f32 %v1967_v1, %v1968_v0  ;;  %v1984_v22 = vunpack.c.l.bf16 %v1982_v14 }
 0x5e0   :  { %2272 = vmatpush.bf16.msrb.mxu0 %v4865_v58  ;;  %v4885_v58 = vld [vmem:[#allocation2 + $0x2a4] sm:$0xf] }
 0x5e1   :  { %v2155_v7 = vunpack.c.l.bf16 %v2149_v4  ;;  %v1970_v8 = vadd.f32 1e-05, %v1969_v5  ;;  %v1985_v32 = vsub.f32 %v1983_v30, %v1984_v22  ;;  %v4895_v30 = vld [vmem:[#allocation2 + $0x2f0] sm:$0xf0] }
 0x5e3   :  { %v2157_v10 = vmul.f32 %v2156_v3, %v2155_v7  ;;  %5032 = vrsqrt.f32 %v1970_v8  ;;  %vm1977_vm1 = vweird.f32 %v1970_v8  ;;  %v1986_v39 = vpack.c.bf16 %v1985_v32, %v1985_v32 }
 0x5e4   :  { %v2007_v3 = vunpack.c.l.bf16 %v2005_v61  ;;  %v4371_v32 = vor.u32 %v4895_v30, %v4370_v28  ;;  %v4342_v61 = vld [vmem:[#allocation2 + $0x2a8] sm:$0xf] }
 0x5e5   :  { %v2158_v12 = vpack.c.bf16 %v2157_v10, %v2157_v10  ;;  %v1988_v49 = vunpack.c.l.bf16 %v1986_v39 }
 0x5e6   :  { %2450 = vmatpush.bf16.msrb.mxu1 %v4371_v32  ;;  %v4298_v32 = vld [vmem:[#allocation2 + $0x258] sm:$0xf] }
 0x5e7   :  { %v2164_v13 = vunpack.c.l.bf16 %v2158_v12 }
 0x5e9   :  { %v5033_v16 = vpop.eup %5032  ;;  %v2166_v17 = vadd.f32 %v2165_v11, %v2164_v13 }
 0x5ea   :  { %v1972_v20 = vmul.f32 %v5033_v16, %v1970_v8  ;;  %vm1978_vm0 = vweird.f32 %v5033_v16 }
 0x5eb   :  { %v2167_v21 = vpack.c.bf16 %v2166_v17, %v2166_v17  ;;  %vm1979_vm2 = vmor %vm1977_vm1, %vm1978_vm0 }
 0x5ec   :  { %v1973_v26 = vmul.f32 %v5033_v16, %v1972_v20 }
 0x5ed   :  { %v2168_v29 = vunpack.c.l.bf16 %v2167_v21 }
 0x5ee   :  { %v1974_v31 = vmul.f32 0.5, %v1973_v26 }
 0x5ef   :  { %v2171_v35 = vmul.f32 0.044677734, %v2168_v29  ;;  %v2169_v14 = vmul.f32 0.5, %v2168_v29 }
 0x5f0   :  { %v1975_v27 = vsub.f32 1.5, %v1974_v31  ;;  %v4894_v31 = vld [vmem:[#allocation2 + $0x2ec] sm:$0xf] }
 0x5f1   :  { %v2172_v36 = vpack.c.bf16 %v2171_v35, %v2171_v35  ;;  %v2170_v18 = vpack.c.bf16 %v2169_v14, %v2169_v14  ;;  %v4896_v35 = vld [vmem:[#allocation2 + $0x2f8] sm:$0xf0] }
 0x5f2   :  { %v1976_v37 = vmul.f32 %v5033_v16, %v1975_v27  ;;  %v4375_v27 = vor.u32 %v4894_v31, %v4372_v33  ;;  %v4877_v33 = vld [vmem:[#allocation2 + $0x260] sm:$0xf0] }
 0x5f3   :  { %v2173_v34 = vunpack.c.l.bf16 %v2172_v36  ;;  %v2191_v21 = vunpack.c.l.bf16 %v2170_v18  ;;  %v4379_v36 = vor.u32 %v4896_v35, %v4378_v15  ;;  %v4879_v18 = vld [vmem:[#allocation2 + $0x274] sm:$0xf]  ;;  %v4876_v15 = vld [vmem:[#allocation2 + $0x25c] sm:$0xf]  ;;  %v4299_v35 = vor.u32 %v4877_v33, %v4298_v32 }
 0x5f4   :  { %v1980_v42 = vsel %vm1979_vm2, %v5033_v16, %v1976_v37  ;;  %2463 = vmatpush.bf16.msrb.mxu2 %v4375_v27  ;;  %v4892_v37 = vld [vmem:[#allocation2 + $0x2d8] sm:$0xf0]  ;;  %v4300_v27 = vld [vmem:[#allocation2 + $0x264] sm:$0xf0] }
 0x5f5   :  { %v1987_v44 = vpack.c.bf16 %v1980_v42, %v1980_v42  ;;  %v2174_v48 = vmul.f32 %v2173_v34, %v2168_v29  ;;  %2476 = vmatpush.bf16.msrb.mxu3 %v4379_v36  ;;  %v4893_v34 = vld [vmem:[#allocation2 + $0x2e0] sm:$0xf0]  ;;  %v4363_v42 = vor.u32 %v4891_v38, %v4360_v40  ;;  %v4306_v36 = vld [vmem:[#allocation2 + $0x260] sm:$0xf]  ;;  %v4874_v40 = vld [vmem:[#allocation2 + $0x248] sm:$0xf0] }
 0x5f7   :  { %v1989_v50 = vunpack.c.l.bf16 %v1987_v44  ;;  %v2175_v53 = vpack.c.bf16 %v2174_v48, %v2174_v48  ;;  %v4367_v44 = vor.u32 %v4893_v34, %v4366_v41  ;;  %v4889_v48 = vld [vmem:[#allocation2 + $0x2c0] sm:$0xf0] }
 0x5f8   :  { %2464 = vmatpush.bf16.msrb.mxu2 %v4363_v42  ;;  %v4873_v41 = vld [vmem:[#allocation2 + $0x244] sm:$0xf]  ;;  %v4288_v42 = vld [vmem:[#allocation2 + $0x24c] sm:$0xf0] }
 0x5f9   :  { %v1990_v54 = vmul.f32 %v1989_v50, %v1988_v49  ;;  %v2176_v47 = vunpack.c.l.bf16 %v2175_v53  ;;  %2477 = vmatpush.bf16.msrb.mxu3 %v4367_v44  ;;  %v4888_v49 = vld [vmem:[#allocation2 + $0x2bc] sm:$0xf]  ;;  %v4347_v50 = vor.u32 %v4889_v48, %v4346_v46  ;;  %v4890_v53 = vld [vmem:[#allocation2 + $0x2c8] sm:$0xf0]  ;;  %v4294_v44 = vld [vmem:[#allocation2 + $0x248] sm:$0xf]  ;;  %v4291_v48 = vor.u32 %v4873_v41, %v4288_v42 }
 0x5fa   :  { %v4355_v55 = vor.u32 %v4890_v53, %v4354_v52  ;;  %v4875_v46 = vld [vmem:[#allocation2 + $0x250] sm:$0xf0] }
 0x5fb   :  { %v1991_v43 = vpack.c.bf16 %v1990_v54, %v1990_v54  ;;  %v2177_v59 = vmul.f32 %v2176_v47, %v2168_v29  ;;  %v4351_v54 = vor.u32 %v4888_v49, %v4348_v51  ;;  %v4990_v47 = vld [vmem:[#allocation11 + $0x2] ss:$0 sm:$0xff]  ;;  %v4295_v49 = vor.u32 %v4875_v46, %v4294_v44  ;;  %v4903_v44 = vld [vmem:[#allocation10 + $0xf0] sm:$0xff] }
 0x5fd   :  { %v1997_v60 = vunpack.c.l.bf16 %v1991_v43  ;;  %v2178_v63 = vpack.c.bf16 %v2177_v59, %v2177_v59  ;;  %2465 = vmatpush.bf16.msrb.mxu2 %v4351_v54  ;;  %2478 = vmatpush.bf16.msrb.mxu3 %v4355_v55  ;;  %v4334_v43 = vld [vmem:[#allocation2 + $0x2a0] sm:$0xf] }
 0x5ff   :  { %v1999_v0 = vmul.f32 %v1998_v57, %v1997_v60  ;;  %v2179_v1 = vunpack.c.l.bf16 %v2178_v63  ;;  %v4886_v57 = vld [vmem:[#allocation2 + $0x2a8] sm:$0xf0]  ;;  %v4336_v60 = vld [vmem:[#allocation2 + $0x2ac] sm:$0xf0]  ;;  %v4887_v63 = vld [vmem:[#allocation2 + $0x2b0] sm:$0xf0] }
 0x600   :  { %v4335_v59 = vor.u32 %v4886_v57, %v4334_v43 }
 0x601   :  { %v2000_v2 = vpack.c.bf16 %v1999_v0, %v1999_v0  ;;  %v2180_v4 = vadd.f32 %v2179_v1, %v2168_v29  ;;  %v4358_v29 = vld [vmem:[#allocation2 + $0x2d0] sm:$0xf]  ;;  %v4339_v1 = vor.u32 %v4885_v58, %v4336_v60  ;;  %v1776_v58 = vperm.slane %v5686_v45, 1 }
 0x602   :  { %v4359_v39 = vor.u32 %v4892_v37, %v4358_v29  ;;  %v4878_v29 = vld [vmem:[#allocation2 + $0x268] sm:$0xf0]  ;;  %v4303_v37 = vor.u32 %v4876_v15, %v4300_v27 }
 0x603   :  { %v2006_v5 = vunpack.c.l.bf16 %v2000_v2  ;;  %v2181_v6 = vpack.c.bf16 %v2180_v4, %v2180_v4  ;;  %v4343_v2 = vor.u32 %v4887_v63, %v4342_v61  ;;  %2466 = vmatpush.bf16.msrb.mxu2 %v4339_v1  ;;  %v4322_v4 = vld [vmem:[#allocation2 + $0x288] sm:$0xf]  ;;  %v4307_v38 = vor.u32 %v4878_v29, %v4306_v36 }
 0x604   :  { %2451 = vmatpush.bf16.msrb.mxu1 %v4359_v39  ;;  %v4286_v39 = vld [vmem:[#allocation2 + $0x240] sm:$0xf] }
 0x605   :  { %v2008_v7 = vadd.f32 %v2007_v3, %v2006_v5  ;;  %v2182_v8 = vunpack.c.l.bf16 %v2181_v6  ;;  %2479 = vmatpush.bf16.msrb.mxu3 %v4343_v2  ;;  %v4883_v5 = vld [vmem:[#allocation2 + $0x290] sm:$0xf0]  ;;  %v4882_v6 = vld [vmem:[#allocation2 + $0x28c] sm:$0xf]  ;;  %v4287_v34 = vor.u32 %v4874_v40, %v4286_v39 }
 0x607   :  { %v2009_v9 = vpack.c.bf16 %v2008_v7, %v2008_v7  ;;  %v2183_v10 = vmul.f32 0.796875, %v2182_v8  ;;  %v4323_v8 = vor.u32 %v4883_v5, %v4322_v4 }
 0x608   :  { %2452 = vmatpush.bf16.msrb.mxu1 %v4347_v50 }
 0x609   :  { %2088 = vmatmul.bf16.vlgmr.msra.gmra.mxu3 %v2009_v9  ;;  %v2184_v11 = vpack.c.bf16 %v2183_v10, %v2183_v10  ;;  %v4324_v9 = vld [vmem:[#allocation2 + $0x294] sm:$0xf0]  ;;  %v4330_v10 = vld [vmem:[#allocation2 + $0x290] sm:$0xf] }
 0x60b   :  { %v2185_v12 = vunpack.c.l.bf16 %v2184_v11  ;;  %v4884_v11 = vld [vmem:[#allocation2 + $0x298] sm:$0xf0] }
 0x60c   :  { %2453 = vmatpush.bf16.msrb.mxu1 %v4335_v59  ;;  %v1932_v59 = vadd.f32 %v5689_v62, %v1776_v58  ;;  %v5740_v62 = vld [vmem:[%s5882_s4 + $0x9] sm:$0x7]  ;;  %v4901_v58 = vld [vmem:[#allocation10 + $0xe0] sm:$0xff] }
 0x60d   :  { %5034 = vtanh.f32 %v2185_v12  ;;  %v4327_v12 = vor.u32 %v4882_v6, %v4324_v9  ;;  %v4991_v6 = vld [vmem:[#allocation5 + $0x2] ss:$0 sm:$0xff] }
 0x60f   :  { %2467 = vmatpush.bf16.msrb.mxu2 %v4327_v12 }
 0x610   :  { %2454 = vmatpush.bf16.msrb.mxu1 %v4323_v8 }
 0x613   :  { %v5035_v13 = vpop.eup %5034 }
 0x614   :  { %v2187_v16 = vpack.c.bf16 %v5035_v13, %v5035_v13  ;;  %v4331_v13 = vor.u32 %v4884_v11, %v4330_v10  ;;  %v2316_v11 = vperm.slane %v5740_v62, 0 }
 0x616   :  { %v2188_v17 = vunpack.c.l.bf16 %v2187_v16  ;;  %2480 = vmatpush.bf16.msrb.mxu3 %v4331_v13  ;;  %v4310_v16 = vld [vmem:[#allocation2 + $0x270] sm:$0xf] }
 0x618   :  { %v2189_v19 = vadd.f32 1.0, %v2188_v17  ;;  %v4880_v17 = vld [vmem:[#allocation2 + $0x278] sm:$0xf0] }
 0x61a   :  { %v2190_v20 = vpack.c.bf16 %v2189_v19, %v2189_v19 }
 0x61c   :  { %v2192_v22 = vunpack.c.l.bf16 %v2190_v20  ;;  %v4311_v20 = vor.u32 %v4880_v17, %v4310_v16  ;;  %v2318_v16 = vperm.slane %v5740_v62, 2 }
 0x61e   :  { %v2193_v24 = vmul.f32 %v2192_v22, %v2191_v21  ;;  %v4312_v21 = vld [vmem:[#allocation2 + $0x27c] sm:$0xf0]  ;;  %v4318_v22 = vld [vmem:[#allocation2 + $0x278] sm:$0xf]  ;;  %2455 = vmatpush.bf16.msrb.mxu1 %v4311_v20 }
 0x61f   :  { %v4315_v28 = vor.u32 %v4879_v18, %v4312_v21 }
 0x620   :  { %v2194_v26 = vpack.c.bf16 %v2193_v24, %v2193_v24  ;;  %v4881_v24 = vld [vmem:[#allocation2 + $0x280] sm:$0xf0] }
 0x621   :  { %v4319_v30 = vor.u32 %v4881_v24, %v4318_v22  ;;  %2468 = vmatpush.bf16.msrb.mxu2 %v4315_v28 }
 0x622   :  { %2273 = vmatmul.bf16.vlgmr.msrb.gmra.mxu0 %v2194_v26  ;;  %2456 = vmatpush.bf16.msrb.mxu1 %v4299_v35 }
 0x623   :  { %2481 = vmatpush.bf16.msrb.mxu3 %v4319_v30 }
 0x625   :  { %2469 = vmatpush.bf16.msrb.mxu2 %v4303_v37 }
 0x626   :  { %2457 = vmatpush.bf16.msrb.mxu1 %v4287_v34  ;;  %v4904_v34 = vld [vmem:[#allocation10 + $0xf8] sm:$0xff] }
 0x627   :  { %2482 = vmatpush.bf16.msrb.mxu3 %v4307_v38  ;;  %2621 = vmatpush.bf16.msra.mxu0 %v4904_v34 }
 0x629   :  { %2470 = vmatpush.bf16.msrb.mxu2 %v4291_v48 }
 0x62b   :  { %2483 = vmatpush.bf16.msrb.mxu3 %v4295_v49  ;;  %2622 = vmatpush.bf16.msra.mxu0 %v4903_v44 }
 0x68c   :  { %v2089_v0 = vpop.f32.mrf.mxu3 }
 0x68d   :  { %v2090_v3 = vadd.f32 %v4990_v47, %v2089_v0  ;;  %v2109_v0 = vpack.c.bf16 %v1932_v59, %v1932_v59  ;;  %v4413_v59 = vld [vmem:[%s5884_s6 + $0x3] sm:$0x1] }
 0x68f   :  { %v2093_v7 = vpack.c.bf16 %v2090_v3, %v2090_v3  ;;  %v2111_v3 = vunpack.c.l.bf16 %v2109_v0 }
 0x691   :  { %v2094_v14 = vxor.u32 2147516416, %v2093_v7 }
 0x693   :  { %v2095_v19 = vunpack.c.l.bf16 %v2094_v14 }
 0x694   :  { %v2091_v26 = vpop.f32.mrf.mxu3 }
 0x695   :  { %v2096_v31 = vmul.f32 1.442695, %v2095_v19 }
 0x697   :  { %5036 = vpow2.f32 %v2096_v31 }
 0x69d   :  { %v5037_v50 = vpop.eup %5036 }
 0x69e   :  { %v2098_v51 = vpack.c.bf16 %v5037_v50, %v5037_v50 }
 0x69f   :  { %v2274_v52 = vpop.f32.mrf.mxu0 }
 0x6a0   :  { %v2099_v53 = vunpack.c.l.bf16 %v2098_v51  ;;  %v2275_v9 = vadd.f32 %v4991_v6, %v2274_v52  ;;  %v4412_v51 = vld [vmem:[%s5883_s5 + $0x3] sm:$0x1] }
 0x6a1   :  { %v4899_v6 = vld [vmem:[#allocation10 + $0xd0] sm:$0xff] }
 0x6a2   :  { %v2100_v54 = vadd.f32 1.0, %v2099_v53  ;;  %v4902_v53 = vld [vmem:[#allocation10 + $0xe8] sm:$0xff] }
 0x6a3   :  { %2623 = vmatpush.bf16.msra.mxu0 %v4902_v53 }
 0x6a4   :  { %v2101_v55 = vpack.c.bf16 %v2100_v54, %v2100_v54 }
 0x6a6   :  { %v2102_v47 = vunpack.c.h.bf16 %v2101_v55  ;;  %v2103_v43 = vunpack.c.l.bf16 %v2101_v55 }
 0x6a7   :  { %v2276_v57 = vpop.f32.mrf.mxu0  ;;  %2624 = vmatpush.bf16.msra.mxu0 %v4901_v58 }
 0x6a8   :  { %5038 = vrcp.f32 %v2102_v47 }
 0x6a9   :  { %5040 = vrcp.f32 %v2103_v43  ;;  %v2691_v43 = vpack.c.bf16 %v4412_v51, %v4412_v51 }
 0x6ae   :  { %v5039_v60 = vpop.eup %5038 }
 0x6af   :  { %v5041_v61 = vpop.eup %5040  ;;  %v2105_v63 = vmul.f32 %v5039_v60, %v5622_v23 }
 0x6b0   :  { %v2107_v1 = vmul.f32 %v5041_v61, %v5625_v25 }
 0x6b2   :  { %v2108_v2 = vpack.c.bf16 %v2105_v63, %v2107_v1  ;;  %v2693_v63 = vpack.i.b16 %v2691_v43, %v2691_v43  ;;  %v4900_v1 = vld [vmem:[#allocation10 + $0xd8] sm:$0xff] }
 0x6b3   :  { %2625 = vmatpush.bf16.msra.mxu0 %v4900_v1 }
 0x6b4   :  { %v2110_v4 = vunpack.c.l.bf16 %v2108_v2  ;;  %v2700_v2 = vpack.c.bf16 %v4413_v59, %v4413_v59 }
 0x6b6   :  { %v2112_v5 = vmul.f32 %v2111_v3, %v2110_v4  ;;  %v4912_v4 = vld [vmem:[%s5885_s7 + $0xf8] sm:$0xff] }
 0x6b7   :  { %2806 = vmatpush.bf16.msra.mxu1 %v4912_v4  ;;  %2626 = vmatpush.bf16.msra.mxu0 %v4899_v6 }
 0x6b8   :  { %v2113_v7 = vpack.c.bf16 %v2112_v5, %v2112_v5 }
 0x6ba   :  { %v2114_v8 = vunpack.c.l.bf16 %v2113_v7 }
 0x6bc   :  { %v2278_v45 = vadd.f32 %v2275_v9, %v2114_v8  ;;  %v2695_v8 = vperm.slane %v2693_v63, 0 }
 0x6be   :  { %v2314_v10 = vpack.c.bf16 %v2278_v45, %v2278_v45 }
 0x6c0   :  { %2458 = vmatmul.bf16.vlgmr.msrb.gmra.mxu1 %v2314_v10  ;;  %2471 = vmatmul.bf16.vlgmr.msrb.gmra.mxu2 %v2314_v10 }
 0x6c1   :  { %2484 = vmatmul.bf16.vlgmr.msrb.gmra.mxu3 %v2314_v10  ;;  %v4911_v10 = vld [vmem:[%s5885_s7 + $0xf0] sm:$0xff] }
 0x6c2   :  { %2807 = vmatpush.bf16.msra.mxu1 %v4911_v10 }
 0x73d   :  { %v2459_v12 = vpop.f32.mrf.mxu1 }
 0x73e   :  { %v2460_v13 = vadd.f32 %v2459_v12, %v2316_v11  ;;  %v2702_v12 = vpack.i.b16 %v2700_v2, %v2700_v2 }
 0x740   :  { %2660 = vadd.xlane.f32.xlu0 %v2460_v13  ;;  %v2663_v14 = vmul.f32 %v2460_v13, %v2460_v13  ;;  %v2680_v48 = vpack.c.bf16 %v2460_v13, %v2460_v13 }
 0x742   :  { %2664 = vadd.xlane.f32.xlu1 %v2663_v14  ;;  %v2682_v54 = vunpack.c.l.bf16 %v2680_v48 }
 0x743   :  { %v5744_v17 = vpop.f32.mrf.mxu2 }
 0x744   :  { %v2485_v18 = vpop.f32.mrf.mxu3 }
 0x745   :  { %v2486_v19 = vadd.f32 %v2485_v18, %v2318_v16  ;;  %v2461_v20 = vpop.f32.mrf.mxu1  ;;  %v4898_v18 = vld [vmem:[#allocation10 + $0xc8] sm:$0xff] }
 0x746   :  { %2627 = vmatpush.bf16.msra.mxu0 %v4898_v18 }
 0x747   :  { %v2490_v21 = vmul.f32 0.044715, %v2486_v19  ;;  %v2489_v33 = vmul.f32 0.5, %v2486_v19 }
 0x749   :  { %v2491_v22 = vmul.f32 %v2490_v21, %v2486_v19 }
 0x74b   :  { %v2474_v24 = vpop.f32.mrf.mxu2  ;;  %v2492_v26 = vmul.f32 %v2491_v22, %v2486_v19  ;;  %v2704_v22 = vperm.slane %v2702_v12, 0 }
 0x74c   :  { %v2487_v28 = vpop.f32.mrf.mxu3 }
 0x74d   :  { %v2493_v30 = vadd.f32 %v2492_v26, %v2486_v19  ;;  %v2697_v19 = vunpack.c.l.bf16 %v2695_v8  ;;  %v4897_v28 = vld [vmem:[#allocation10 + $0xc0] sm:$0xff] }
 0x74e   :  { %2628 = vmatpush.bf16.msra.mxu0 %v4897_v28 }
 0x74f   :  { %v2494_v31 = vmul.f32 0.7978846, %v2493_v30 }
 0x751   :  { %5042 = vtanh.f32 %v2494_v31  ;;  %v2706_v31 = vunpack.c.l.bf16 %v2704_v22 }
 0x757   :  { %v5043_v32 = vpop.eup %5042 }
 0x758   :  { %v2496_v15 = vadd.f32 1.0, %v5043_v32 }
 0x75a   :  { %v5746_v35 = vmul.f32 %v2496_v15, %v2489_v33 }
 0x75c   :  { %2502 = vadd.xlane.f32.xlu2 %v5746_v35  ;;  %v2505_v27 = vmul.f32 %v5746_v35, %v5746_v35 }
 0x75e   :  { %2506 = vadd.xlane.f32.xlu0 %v2505_v27 }
 0x7b3   :  { %v2661_v36 = vpop.xlane.xlu0 %2660 }
 0x7b4   :  { %v2662_v29 = vmul.f32 %v2661_v36, %v5583_v56 }
 0x7b5   :  { %v2665_v37 = vpop.xlane.xlu1 %2664 }
 0x7b6   :  { %v2667_v38 = vmul.f32 %v2662_v29, %v2662_v29  ;;  %v2666_v39 = vmul.f32 %v2665_v37, %v5583_v56  ;;  %v2681_v42 = vpack.c.bf16 %v2662_v29, %v2662_v29  ;;  %v2522_v29 = vpack.c.bf16 %v5746_v35, %v5746_v35  ;;  %v4910_v37 = vld [vmem:[%s5885_s7 + $0xe8] sm:$0xff]  ;;  %v4908_v35 = vld [vmem:[%s5885_s7 + $0xd8] sm:$0xff] }
 0x7b7   :  { %2808 = vmatpush.bf16.msra.mxu1 %v4910_v37 }
 0x7b8   :  { %v2668_v40 = vsub.f32 %v2666_v39, %v2667_v38  ;;  %v2683_v50 = vunpack.c.l.bf16 %v2681_v42  ;;  %v2499_v42 = vld [vmem:[#allocation7 + $0x3] sm:$0x1] }
 0x7ba   :  { %v2669_v41 = vadd.f32 1e-05, %v2668_v40  ;;  %v2684_v47 = vsub.f32 %v2682_v54, %v2683_v50  ;;  %v2533_v50 = vpack.c.bf16 %v2499_v42, %v2499_v42  ;;  %v4549_v42 = vld [vmem:[#allocation2 + $0x3a8] sm:$0xf] }
 0x7bc   :  { %5044 = vrsqrt.f32 %v2669_v41  ;;  %vm2676_vm4 = vweird.f32 %v2669_v41  ;;  %v2685_v61 = vpack.c.bf16 %v2684_v47, %v2684_v47  ;;  %v2535_v43 = vpack.i.b16 %v2533_v50, %v2533_v50  ;;  %v4551_v50 = vld [vmem:[#allocation2 + $0x3b4] sm:$0xf0] }
 0x7be   :  { %v2687_v7 = vunpack.c.l.bf16 %v2685_v61  ;;  %v2537_v2 = vperm.slane %v2535_v43, 0  ;;  %v4539_v43 = vld [vmem:[#allocation2 + $0x39c] sm:$0xf0] }
 0x7c2   :  { %v5045_v46 = vpop.eup %5044 }
 0x7c3   :  { %v2671_v49 = vmul.f32 %v5045_v46, %v2669_v41  ;;  %vm2677_vm3 = vweird.f32 %v5045_v46  ;;  %v4909_v41 = vld [vmem:[%s5885_s7 + $0xe0] sm:$0xff] }
 0x7c4   :  { %vm2678_vm5 = vmor %vm2676_vm4, %vm2677_vm3  ;;  %2809 = vmatpush.bf16.msra.mxu1 %v4909_v41 }
 0x7c5   :  { %v2672_v52 = vmul.f32 %v5045_v46, %v2671_v49 }
 0x7c7   :  { %v2673_v55 = vmul.f32 0.5, %v2672_v52 }
 0x7c8   :  { %2810 = vmatpush.bf16.msra.mxu1 %v4908_v35  ;;  %v4557_v35 = vld [vmem:[#allocation2 + $0x3b0] sm:$0xf] }
 0x7c9   :  { %v2674_v57 = vsub.f32 1.5, %v2673_v55  ;;  %v2501_v55 = vld [vmem:[#allocation8 + $0x3] sm:$0x1] }
 0x7ca   :  { %v2542_v61 = vpack.c.bf16 %v2501_v55, %v2501_v55  ;;  %v4931_v55 = vld [vmem:[#allocation2 + $0x394] sm:$0xf] }
 0x7cb   :  { %v2675_v60 = vmul.f32 %v5045_v46, %v2674_v57  ;;  %v4907_v57 = vld [vmem:[%s5885_s7 + $0xd0] sm:$0xff] }
 0x7cc   :  { %2811 = vmatpush.bf16.msra.mxu1 %v4907_v57  ;;  %v2544_v6 = vpack.i.b16 %v2542_v61, %v2542_v61  ;;  %v4545_v57 = vld [vmem:[#allocation2 + $0x398] sm:$0xf] }
 0x7cd   :  { %v2679_v0 = vsel %vm2678_vm5, %v5045_v46, %v2675_v60  ;;  %v2524_v46 = vunpack.c.l.bf16 %v2522_v29  ;;  %v4525_v61 = vld [vmem:[#allocation2 + $0x378] sm:$0xf] }
 0x7ce   :  { %v2686_v3 = vpack.c.bf16 %v2679_v0, %v2679_v0  ;;  %v2546_v12 = vperm.slane %v2544_v6, 0  ;;  %v4992_v6 = vld [vmem:[#allocation11 + $0x3] ss:$0 sm:$0xff] }
 0x7cf   :  { %v2503_v5 = vpop.xlane.xlu2 %2502 }
 0x7d0   :  { %v2688_v9 = vunpack.c.l.bf16 %v2686_v3  ;;  %v2504_v45 = vmul.f32 %v2503_v5, %v5583_v56  ;;  %v4906_v3 = vld [vmem:[%s5885_s7 + $0xc8] sm:$0xff] }
 0x7d1   :  { %v2507_v11 = vpop.xlane.xlu0 %2506  ;;  %2812 = vmatpush.bf16.msra.mxu1 %v4906_v3  ;;  %v4533_v3 = vld [vmem:[#allocation2 + $0x380] sm:$0xf] }
 0x7d2   :  { %v2689_v13 = vmul.f32 %v2688_v9, %v2687_v7  ;;  %v2509_v14 = vmul.f32 %v2504_v45, %v2504_v45  ;;  %v2508_v16 = vmul.f32 %v2507_v11, %v5583_v56  ;;  %v2523_v15 = vpack.c.bf16 %v2504_v45, %v2504_v45  ;;  %v4905_v45 = vld [vmem:[%s5885_s7 + $0xc0] sm:$0xff] }
 0x7d3   :  { %v2539_v9 = vunpack.c.l.bf16 %v2537_v2  ;;  %v4527_v2 = vld [vmem:[#allocation2 + $0x384] sm:$0xf0] }
 0x7d4   :  { %v2690_v20 = vpack.c.bf16 %v2689_v13, %v2689_v13  ;;  %v2510_v21 = vsub.f32 %v2508_v16, %v2509_v14  ;;  %v2525_v40 = vunpack.c.l.bf16 %v2523_v15 }
 0x7d5   :  { %2813 = vmatpush.bf16.msra.mxu1 %v4905_v45  ;;  %v4925_v45 = vld [vmem:[#allocation2 + $0x364] sm:$0xf] }
 0x7d6   :  { %v2696_v24 = vunpack.c.l.bf16 %v2690_v20  ;;  %v2511_v26 = vadd.f32 1e-05, %v2510_v21  ;;  %v2526_v49 = vsub.f32 %v2524_v46, %v2525_v40  ;;  %v4935_v46 = vld [vmem:[#allocation2 + $0x3b0] sm:$0xf0] }
 0x7d8   :  { %v2698_v30 = vmul.f32 %v2697_v19, %v2696_v24  ;;  %5046 = vrsqrt.f32 %v2511_v26  ;;  %vm2518_vm7 = vweird.f32 %v2511_v26  ;;  %v2527_v47 = vpack.c.bf16 %v2526_v49, %v2526_v49 }
 0x7d9   :  { %v2548_v19 = vunpack.c.l.bf16 %v2546_v12  ;;  %v4550_v49 = vor.u32 %v4935_v46, %v4549_v42  ;;  %v4521_v12 = vld [vmem:[#allocation2 + $0x368] sm:$0xf] }
 0x7da   :  { %v2699_v32 = vpack.c.bf16 %v2698_v30, %v2698_v30  ;;  %v2529_v0 = vunpack.c.l.bf16 %v2527_v47 }
 0x7db   :  { %2991 = vmatpush.bf16.msra.mxu2 %v4550_v49  ;;  %v4477_v49 = vld [vmem:[#allocation2 + $0x318] sm:$0xf] }
 0x7dc   :  { %v2705_v33 = vunpack.c.l.bf16 %v2699_v32 }
 0x7de   :  { %v5047_v27 = vpop.eup %5046  ;;  %v2707_v36 = vadd.f32 %v2706_v31, %v2705_v33 }
 0x7df   :  { %v2513_v38 = vmul.f32 %v5047_v27, %v2511_v26  ;;  %vm2519_vm6 = vweird.f32 %v5047_v27 }
 0x7e0   :  { %v2708_v39 = vpack.c.bf16 %v2707_v36, %v2707_v36  ;;  %vm2520_vm8 = vmor %vm2518_vm7, %vm2519_vm6 }
 0x7e1   :  { %v2514_v34 = vmul.f32 %v5047_v27, %v2513_v38 }
 0x7e2   :  { %v2709_v44 = vunpack.c.l.bf16 %v2708_v39 }
 0x7e3   :  { %v2515_v48 = vmul.f32 0.5, %v2514_v34 }
 0x7e4   :  { %v2712_v51 = vmul.f32 0.044677734, %v2709_v44  ;;  %v2710_v15 = vmul.f32 0.5, %v2709_v44 }
 0x7e5   :  { %v2516_v52 = vsub.f32 1.5, %v2515_v48  ;;  %v4934_v48 = vld [vmem:[#allocation2 + $0x3ac] sm:$0xf] }
 0x7e6   :  { %v2713_v53 = vpack.c.bf16 %v2712_v51, %v2712_v51  ;;  %v2711_v29 = vpack.c.bf16 %v2710_v15, %v2710_v15  ;;  %v4936_v51 = vld [vmem:[#allocation2 + $0x3b8] sm:$0xf0] }
 0x7e7   :  { %v2517_v54 = vmul.f32 %v5047_v27, %v2516_v52  ;;  %v4554_v52 = vor.u32 %v4934_v48, %v4551_v50  ;;  %v4917_v50 = vld [vmem:[#allocation2 + $0x320] sm:$0xf0] }
 0x7e8   :  { %v2714_v58 = vunpack.c.l.bf16 %v2713_v53  ;;  %v2732_v39 = vunpack.c.l.bf16 %v2711_v29  ;;  %v4558_v53 = vor.u32 %v4936_v51, %v4557_v35  ;;  %v4919_v29 = vld [vmem:[#allocation2 + $0x334] sm:$0xf]  ;;  %v4916_v35 = vld [vmem:[#allocation2 + $0x31c] sm:$0xf]  ;;  %v4478_v51 = vor.u32 %v4917_v50, %v4477_v49 }
 0x7e9   :  { %v2521_v59 = vsel %vm2520_vm8, %v5047_v27, %v2517_v54  ;;  %3004 = vmatpush.bf16.msra.mxu3 %v4554_v52  ;;  %v4932_v54 = vld [vmem:[#allocation2 + $0x398] sm:$0xf0]  ;;  %v4479_v52 = vld [vmem:[#allocation2 + $0x324] sm:$0xf0] }
 0x7ea   :  { %v2528_v60 = vpack.c.bf16 %v2521_v59, %v2521_v59  ;;  %v2715_v63 = vmul.f32 %v2714_v58, %v2709_v44  ;;  %3017 = vmatpush.bf16.msrb.mxu0 %v4558_v53  ;;  %v4933_v58 = vld [vmem:[#allocation2 + $0x3a0] sm:$0xf0]  ;;  %v4542_v59 = vor.u32 %v4931_v55, %v4539_v43  ;;  %v4485_v53 = vld [vmem:[#allocation2 + $0x320] sm:$0xf]  ;;  %v4914_v43 = vld [vmem:[#allocation2 + $0x308] sm:$0xf0] }
 0x7ec   :  { %v2530_v1 = vunpack.c.l.bf16 %v2528_v60  ;;  %v2716_v4 = vpack.c.bf16 %v2715_v63, %v2715_v63  ;;  %v4546_v60 = vor.u32 %v4933_v58, %v4545_v57  ;;  %v4929_v63 = vld [vmem:[#allocation2 + $0x380] sm:$0xf0] }
 0x7ed   :  { %3005 = vmatpush.bf16.msra.mxu3 %v4542_v59  ;;  %v4913_v57 = vld [vmem:[#allocation2 + $0x304] sm:$0xf]  ;;  %v4467_v59 = vld [vmem:[#allocation2 + $0x30c] sm:$0xf0] }
 0x7ee   :  { %v2531_v5 = vmul.f32 %v2530_v1, %v2529_v0  ;;  %v2717_v7 = vunpack.c.l.bf16 %v2716_v4  ;;  %3018 = vmatpush.bf16.msrb.mxu0 %v4546_v60  ;;  %v4526_v0 = vor.u32 %v4929_v63, %v4525_v61  ;;  %v4928_v1 = vld [vmem:[#allocation2 + $0x37c] sm:$0xf]  ;;  %v4473_v60 = vld [vmem:[#allocation2 + $0x308] sm:$0xf]  ;;  %v4915_v61 = vld [vmem:[#allocation2 + $0x310] sm:$0xf0]  ;;  %v4470_v63 = vor.u32 %v4913_v57, %v4467_v59 }
 0x7ef   :  { %v4530_v4 = vor.u32 %v4928_v1, %v4527_v2  ;;  %v4942_v59 = vld [vmem:[#allocation10 + $0x128] sm:$0xff] }
 0x7f0   :  { %v2532_v8 = vpack.c.bf16 %v2531_v5, %v2531_v5  ;;  %v2718_v10 = vmul.f32 %v2717_v7, %v2709_v44  ;;  %v4930_v5 = vld [vmem:[#allocation2 + $0x388] sm:$0xf0] }
 0x7f1   :  { %v4534_v7 = vor.u32 %v4930_v5, %v4533_v3  ;;  %3006 = vmatpush.bf16.msra.mxu3 %v4530_v4 }
 0x7f2   :  { %v2538_v11 = vunpack.c.l.bf16 %v2532_v8  ;;  %v2719_v13 = vpack.c.bf16 %v2718_v10, %v2718_v10  ;;  %v4513_v8 = vld [vmem:[#allocation2 + $0x360] sm:$0xf] }
 0x7f3   :  { %3019 = vmatpush.bf16.msrb.mxu0 %v4534_v7 }
 0x7f4   :  { %v2540_v14 = vmul.f32 %v2539_v9, %v2538_v11  ;;  %v2720_v16 = vunpack.c.l.bf16 %v2719_v13  ;;  %v4926_v9 = vld [vmem:[#allocation2 + $0x368] sm:$0xf0]  ;;  %v4515_v11 = vld [vmem:[#allocation2 + $0x36c] sm:$0xf0]  ;;  %v4927_v13 = vld [vmem:[#allocation2 + $0x370] sm:$0xf0] }
 0x7f5   :  { %v4514_v10 = vor.u32 %v4926_v9, %v4513_v8  ;;  %v2317_v9 = vperm.slane %v5740_v62, 1 }
 0x7f6   :  { %v2541_v18 = vpack.c.bf16 %v2540_v14, %v2540_v14  ;;  %v2721_v20 = vadd.f32 %v2720_v16, %v2709_v44  ;;  %v4537_v44 = vld [vmem:[#allocation2 + $0x390] sm:$0xf]  ;;  %v4518_v16 = vor.u32 %v4925_v45, %v4515_v11 }
 0x7f7   :  { %v4538_v47 = vor.u32 %v4932_v54, %v4537_v44  ;;  %v4918_v44 = vld [vmem:[#allocation2 + $0x328] sm:$0xf0]  ;;  %v4482_v54 = vor.u32 %v4916_v35, %v4479_v52  ;;  %v2473_v45 = vadd.f32 %v5744_v17, %v2317_v9 }
 0x7f8   :  { %v2547_v21 = vunpack.c.l.bf16 %v2541_v18  ;;  %v2722_v22 = vpack.c.bf16 %v2721_v20, %v2721_v20  ;;  %v4522_v18 = vor.u32 %v4927_v13, %v4521_v12  ;;  %3007 = vmatpush.bf16.msra.mxu3 %v4518_v16  ;;  %v4501_v20 = vld [vmem:[#allocation2 + $0x348] sm:$0xf]  ;;  %v4486_v55 = vor.u32 %v4918_v44, %v4485_v53  ;;  %v5794_v17 = vld [vmem:[%s5882_s4 + $0xc] sm:$0x7] }
 0x7f9   :  { %2992 = vmatpush.bf16.msra.mxu2 %v4538_v47  ;;  %v4465_v47 = vld [vmem:[#allocation2 + $0x300] sm:$0xf]  ;;  %v4944_v53 = vld [vmem:[#allocation10 + $0x138] sm:$0xff] }
 0x7fa   :  { %v2549_v24 = vadd.f32 %v2548_v19, %v2547_v21  ;;  %v2723_v26 = vunpack.c.l.bf16 %v2722_v22  ;;  %v4923_v21 = vld [vmem:[#allocation2 + $0x350] sm:$0xf0]  ;;  %v4922_v22 = vld [vmem:[#allocation2 + $0x34c] sm:$0xf]  ;;  %3020 = vmatpush.bf16.msrb.mxu0 %v4522_v18  ;;  %v4466_v58 = vor.u32 %v4914_v43, %v4465_v47  ;;  %3162 = vmatpush.bf16.msrb.mxu1 %v4944_v53  ;;  %v4943_v47 = vld [vmem:[#allocation10 + $0x130] sm:$0xff] }
 0x7fc   :  { %v2550_v28 = vpack.c.bf16 %v2549_v24, %v2549_v24  ;;  %v2724_v30 = vmul.f32 0.796875, %v2723_v26  ;;  %v4502_v26 = vor.u32 %v4923_v21, %v4501_v20 }
 0x7fd   :  { %2993 = vmatpush.bf16.msra.mxu2 %v4526_v0  ;;  %v4474_v0 = vor.u32 %v4915_v61, %v4473_v60  ;;  %v4941_v61 = vld [vmem:[#allocation10 + $0x120] sm:$0xff] }
 0x7fe   :  { %2629 = vmatmul.bf16.vlgmr.msra.gmra.mxu0 %v2550_v28  ;;  %v2725_v31 = vpack.c.bf16 %v2724_v30, %v2724_v30  ;;  %v4503_v28 = vld [vmem:[#allocation2 + $0x354] sm:$0xf0]  ;;  %v4509_v30 = vld [vmem:[#allocation2 + $0x350] sm:$0xf]  ;;  %3163 = vmatpush.bf16.msrb.mxu1 %v4943_v47  ;;  %v4950_v47 = vld [vmem:[%s5885_s7 + $0x128] sm:$0xff] }
 0x800   :  { %v2726_v32 = vunpack.c.l.bf16 %v2725_v31  ;;  %v4924_v31 = vld [vmem:[#allocation2 + $0x358] sm:$0xf0] }
 0x801   :  { %2994 = vmatpush.bf16.msra.mxu2 %v4514_v10 }
 0x802   :  { %5048 = vtanh.f32 %v2726_v32  ;;  %v4506_v32 = vor.u32 %v4922_v22, %v4503_v28  ;;  %v4993_v22 = vld [vmem:[#allocation5 + $0x3] ss:$0 sm:$0xff]  ;;  %3164 = vmatpush.bf16.msrb.mxu1 %v4942_v59 }
 0x804   :  { %3008 = vmatpush.bf16.msra.mxu3 %v4506_v32 }
 0x805   :  { %2995 = vmatpush.bf16.msra.mxu2 %v4502_v26 }
 0x806   :  { %3165 = vmatpush.bf16.msrb.mxu1 %v4941_v61 }
 0x808   :  { %v5049_v33 = vpop.eup %5048 }
 0x809   :  { %v2728_v27 = vpack.c.bf16 %v5049_v33, %v5049_v33  ;;  %v4510_v33 = vor.u32 %v4924_v31, %v4509_v30  ;;  %v2859_v31 = vperm.slane %v5794_v17, 2 }
 0x80b   :  { %v2729_v36 = vunpack.c.l.bf16 %v2728_v27  ;;  %v4489_v27 = vld [vmem:[#allocation2 + $0x330] sm:$0xf]  ;;  %3021 = vmatpush.bf16.msrb.mxu0 %v4510_v33 }
 0x80d   :  { %v2730_v37 = vadd.f32 1.0, %v2729_v36  ;;  %v4920_v36 = vld [vmem:[#allocation2 + $0x338] sm:$0xf0] }
 0x80f   :  { %v2731_v38 = vpack.c.bf16 %v2730_v37, %v2730_v37 }
 0x811   :  { %v2733_v40 = vunpack.c.l.bf16 %v2731_v38  ;;  %v4490_v38 = vor.u32 %v4920_v36, %v4489_v27 }
 0x813   :  { %v2734_v41 = vmul.f32 %v2733_v40, %v2732_v39  ;;  %v4491_v39 = vld [vmem:[#allocation2 + $0x33c] sm:$0xf0]  ;;  %v4497_v40 = vld [vmem:[#allocation2 + $0x338] sm:$0xf]  ;;  %2996 = vmatpush.bf16.msra.mxu2 %v4490_v38 }
 0x814   :  { %v4494_v42 = vor.u32 %v4919_v29, %v4491_v39 }
 0x815   :  { %v2735_v34 = vpack.c.bf16 %v2734_v41, %v2734_v41  ;;  %v4921_v41 = vld [vmem:[#allocation2 + $0x340] sm:$0xf0] }
 0x816   :  { %v4498_v46 = vor.u32 %v4921_v41, %v4497_v40  ;;  %3009 = vmatpush.bf16.msra.mxu3 %v4494_v42 }
 0x817   :  { %2814 = vmatmul.bf16.vlgmr.msra.gmra.mxu1 %v2735_v34  ;;  %2997 = vmatpush.bf16.msra.mxu2 %v4478_v51 }
 0x818   :  { %3022 = vmatpush.bf16.msrb.mxu0 %v4498_v46 }
 0x81a   :  { %3010 = vmatpush.bf16.msra.mxu3 %v4482_v54 }
 0x81b   :  { %2998 = vmatpush.bf16.msra.mxu2 %v4466_v58 }
 0x81c   :  { %3023 = vmatpush.bf16.msrb.mxu0 %v4486_v55 }
 0x81e   :  { %3011 = vmatpush.bf16.msra.mxu3 %v4470_v63 }
 0x820   :  { %3024 = vmatpush.bf16.msrb.mxu0 %v4474_v0  ;;  %v4940_v0 = vld [vmem:[#allocation10 + $0x118] sm:$0xff] }
 0x821   :  { %3166 = vmatpush.bf16.msrb.mxu1 %v4940_v0 }
 0x87b   :  { %v2630_v14 = vpop.f32.mrf.mxu0 }
 0x87c   :  { %v2631_v19 = vadd.f32 %v4992_v6, %v2630_v14  ;;  %v2650_v14 = vpack.c.bf16 %v2473_v45, %v2473_v45 }
 0x87e   :  { %v2634_v24 = vpack.c.bf16 %v2631_v19, %v2631_v19  ;;  %v2652_v19 = vunpack.c.l.bf16 %v2650_v14  ;;  %v4938_v14 = vld [vmem:[#allocation10 + $0x108] sm:$0xff] }
 0x880   :  { %v2635_v15 = vxor.u32 2147516416, %v2634_v24 }
 0x882   :  { %v2636_v37 = vunpack.c.l.bf16 %v2635_v15  ;;  %v2857_v15 = vperm.slane %v5794_v17, 0 }
 0x883   :  { %v2632_v34 = vpop.f32.mrf.mxu0 }
 0x884   :  { %v2637_v48 = vmul.f32 1.442695, %v2636_v37 }
 0x886   :  { %5050 = vpow2.f32 %v2637_v48 }
 0x88c   :  { %v5051_v1 = vpop.eup %5050 }
 0x88d   :  { %v2639_v2 = vpack.c.bf16 %v5051_v1, %v5051_v1 }
 0x88f   :  { %v2640_v3 = vunpack.c.l.bf16 %v2639_v2 }
 0x891   :  { %v2641_v4 = vadd.f32 1.0, %v2640_v3 }
 0x893   :  { %v2642_v5 = vpack.c.bf16 %v2641_v4, %v2641_v4 }
 0x894   :  { %v2815_v6 = vpop.f32.mrf.mxu1 }
 0x895   :  { %v2643_v7 = vunpack.c.h.bf16 %v2642_v5  ;;  %v2644_v8 = vunpack.c.l.bf16 %v2642_v5  ;;  %v2816_v62 = vadd.f32 %v4993_v22, %v2815_v6  ;;  %v4939_v5 = vld [vmem:[#allocation10 + $0x110] sm:$0xff] }
 0x896   :  { %3167 = vmatpush.bf16.msrb.mxu1 %v4939_v5  ;;  %v4592_v22 = vld [vmem:[%s5884_s6 + $0x4] sm:$0x1] }
 0x897   :  { %5052 = vrcp.f32 %v2643_v7 }
 0x898   :  { %5054 = vrcp.f32 %v2644_v8  ;;  %v4591_v8 = vld [vmem:[%s5883_s5 + $0x4] sm:$0x1] }
 0x89a   :  { %3168 = vmatpush.bf16.msrb.mxu1 %v4938_v14 }
 0x89c   :  { %v2817_v10 = vpop.f32.mrf.mxu1 }
 0x89d   :  { %v5053_v11 = vpop.eup %5052 }
 0x89e   :  { %v5055_v12 = vpop.eup %5054  ;;  %v2646_v13 = vmul.f32 %v5053_v11, %v5622_v23 }
 0x89f   :  { %v2648_v16 = vmul.f32 %v5055_v12, %v5625_v25 }
 0x8a1   :  { %v2649_v18 = vpack.c.bf16 %v2646_v13, %v2648_v16 }
 0x8a3   :  { %v2651_v20 = vunpack.c.l.bf16 %v2649_v18  ;;  %v3232_v18 = vpack.c.bf16 %v4591_v8, %v4591_v8 }
 0x8a5   :  { %v2653_v21 = vmul.f32 %v2652_v19, %v2651_v20 }
 0x8a7   :  { %v2654_v24 = vpack.c.bf16 %v2653_v21, %v2653_v21 }
 0x8a9   :  { %v2655_v26 = vunpack.c.l.bf16 %v2654_v24 }
 0x8ab   :  { %v2819_v28 = vadd.f32 %v2816_v62, %v2655_v26  ;;  %v4937_v26 = vld [vmem:[#allocation10 + $0x100] sm:$0xff] }
 0x8ac   :  { %3169 = vmatpush.bf16.msrb.mxu1 %v4937_v26 }
 0x8ad   :  { %v2855_v30 = vpack.c.bf16 %v2819_v28, %v2819_v28  ;;  %v3234_v28 = vpack.i.b16 %v3232_v18, %v3232_v18 }
 0x8af   :  { %2999 = vmatmul.bf16.vlgmr.msra.gmra.mxu2 %v2855_v30  ;;  %3012 = vmatmul.bf16.vlgmr.msra.gmra.mxu3 %v2855_v30 }
 0x8b0   :  { %3025 = vmatmul.bf16.vlgmr.msrb.gmra.mxu0 %v2855_v30  ;;  %v3241_v30 = vpack.c.bf16 %v4592_v22, %v4592_v22 }
 0x92d   :  { %v3026_v32 = vpop.f32.mrf.mxu0 }
 0x92e   :  { %v3027_v33 = vadd.f32 %v3026_v32, %v2859_v31 }
 0x930   :  { %v3031_v27 = vmul.f32 0.044715, %v3027_v33  ;;  %v3030_v50 = vmul.f32 0.5, %v3027_v33 }
 0x932   :  { %v3000_v36 = vpop.f32.mrf.mxu2  ;;  %v5798_v29 = vpop.f32.mrf.mxu3  ;;  %v3032_v37 = vmul.f32 %v3031_v27, %v3027_v33 }
 0x933   :  { %v3001_v38 = vadd.f32 %v3000_v36, %v2857_v15 }
 0x934   :  { %v3033_v39 = vmul.f32 %v3032_v37, %v3027_v33  ;;  %v3243_v37 = vpack.i.b16 %v3241_v30, %v3241_v30 }
 0x935   :  { %v3028_v40 = vpop.f32.mrf.mxu0  ;;  %3201 = vadd.xlane.f32.xlu1 %v3001_v38  ;;  %v3204_v41 = vmul.f32 %v3001_v38, %v3001_v38  ;;  %v3221_v2 = vpack.c.bf16 %v3001_v38, %v3001_v38 }
 0x936   :  { %v3034_v34 = vadd.f32 %v3033_v39, %v3027_v33  ;;  %v3236_v33 = vperm.slane %v3234_v28, 0  ;;  %v4952_v40 = vld [vmem:[%s5885_s7 + $0x138] sm:$0xff] }
 0x937   :  { %3205 = vadd.xlane.f32.xlu2 %v3204_v41  ;;  %v3223_v10 = vunpack.c.l.bf16 %v3221_v2  ;;  %3347 = vmatpush.bf16.msrb.mxu2 %v4952_v40 }
 0x938   :  { %v3035_v42 = vmul.f32 0.7978846, %v3034_v34  ;;  %v3238_v34 = vunpack.c.l.bf16 %v3236_v33 }
 0x93a   :  { %v3002_v46 = vpop.f32.mrf.mxu2  ;;  %v3015_v48 = vpop.f32.mrf.mxu3  ;;  %5056 = vtanh.f32 %v3035_v42 }
 0x93b   :  { %v4951_v48 = vld [vmem:[%s5885_s7 + $0x130] sm:$0xff] }
 0x93c   :  { %3348 = vmatpush.bf16.msrb.mxu2 %v4951_v48 }
 0x940   :  { %v5057_v49 = vpop.eup %5056  ;;  %3349 = vmatpush.bf16.msrb.mxu2 %v4950_v47 }
 0x941   :  { %v3037_v35 = vadd.f32 1.0, %v5057_v49 }
 0x943   :  { %v5800_v51 = vmul.f32 %v3037_v35, %v3030_v50  ;;  %v3040_v50 = vld [vmem:[#allocation7 + $0x4] sm:$0x1]  ;;  %v3245_v35 = vperm.slane %v3243_v37, 0 }
 0x945   :  { %3043 = vadd.xlane.f32.xlu0 %v5800_v51  ;;  %v3046_v52 = vmul.f32 %v5800_v51, %v5800_v51  ;;  %v3063_v39 = vpack.c.bf16 %v5800_v51, %v5800_v51 }
 0x947   :  { %3047 = vadd.xlane.f32.xlu1 %v3046_v52  ;;  %v3065_v53 = vunpack.c.l.bf16 %v3063_v39 }
 0x9a8   :  { %v3202_v44 = vpop.xlane.xlu1 %3201 }
 0x9a9   :  { %v3203_v54 = vmul.f32 %v3202_v44, %v5583_v56 }
 0x9aa   :  { %v3206_v55 = vpop.xlane.xlu2 %3205 }
 0x9ab   :  { %v3208_v43 = vmul.f32 %v3203_v54, %v3203_v54  ;;  %v3207_v57 = vmul.f32 %v3206_v55, %v5583_v56  ;;  %v3222_v63 = vpack.c.bf16 %v3203_v54, %v3203_v54  ;;  %v3074_v55 = vpack.c.bf16 %v3040_v50, %v3040_v50 }
 0x9ad   :  { %v3209_v58 = vsub.f32 %v3207_v57, %v3208_v43  ;;  %v3224_v6 = vunpack.c.l.bf16 %v3222_v63  ;;  %v3247_v57 = vunpack.c.l.bf16 %v3245_v35  ;;  %v3076_v0 = vpack.i.b16 %v3074_v55, %v3074_v55 }
 0x9af   :  { %v3210_v60 = vadd.f32 1e-05, %v3209_v58  ;;  %v3225_v16 = vsub.f32 %v3223_v10, %v3224_v6 }
 0x9b1   :  { %5058 = vrsqrt.f32 %v3210_v60  ;;  %vm3217_vm10 = vweird.f32 %v3210_v60  ;;  %v3226_v62 = vpack.c.bf16 %v3225_v16, %v3225_v16  ;;  %v4947_v16 = vld [vmem:[%s5885_s7 + $0x110] sm:$0xff] }
 0x9b3   :  { %v3228_v32 = vunpack.c.l.bf16 %v3226_v62 }
 0x9b7   :  { %v5059_v1 = vpop.eup %5058 }
 0x9b8   :  { %v3212_v3 = vmul.f32 %v5059_v1, %v3210_v60  ;;  %v3044_v4 = vpop.xlane.xlu0 %3043  ;;  %vm3218_vm9 = vweird.f32 %v5059_v1  ;;  %v3042_v60 = vld [vmem:[#allocation8 + $0x4] sm:$0x1] }
 0x9b9   :  { %v3045_v7 = vmul.f32 %v3044_v4, %v5583_v56  ;;  %vm3219_vm11 = vmor %vm3217_vm10, %vm3218_vm9  ;;  %v3083_v5 = vpack.c.bf16 %v3042_v60, %v3042_v60  ;;  %v4957_v60 = vld [vmem:[%s5891_s13 + $0x20] sm:$0xff] }
 0x9ba   :  { %v3213_v9 = vmul.f32 %v5059_v1, %v3212_v3  ;;  %v3048_v45 = vpop.xlane.xlu1 %3047 }
 0x9bb   :  { %v3050_v11 = vmul.f32 %v3045_v7, %v3045_v7  ;;  %v3049_v12 = vmul.f32 %v3048_v45, %v5583_v56  ;;  %v3064_v27 = vpack.c.bf16 %v3045_v7, %v3045_v7  ;;  %v4948_v45 = vld [vmem:[%s5885_s7 + $0x118] sm:$0xff] }
 0x9bc   :  { %v3214_v13 = vmul.f32 0.5, %v3213_v9  ;;  %v3078_v9 = vperm.slane %v3076_v0, 0  ;;  %v4956_v0 = vld [vmem:[%s5891_s13 + $0x18] sm:$0xff] }
 0x9bd   :  { %v3051_v19 = vsub.f32 %v3049_v12, %v3050_v11  ;;  %v3066_v46 = vunpack.c.l.bf16 %v3064_v27  ;;  %v3085_v12 = vpack.i.b16 %v3083_v5, %v3083_v5 }
 0x9be   :  { %v3215_v20 = vsub.f32 1.5, %v3214_v13  ;;  %v3080_v14 = vunpack.c.l.bf16 %v3078_v9 }
 0x9bf   :  { %v3052_v21 = vadd.f32 1e-05, %v3051_v19  ;;  %v3067_v54 = vsub.f32 %v3065_v53, %v3066_v46 }
 0x9c0   :  { %v3216_v24 = vmul.f32 %v5059_v1, %v3215_v20  ;;  %v3087_v20 = vperm.slane %v3085_v12, 0 }
 0x9c1   :  { %5060 = vrsqrt.f32 %v3052_v21  ;;  %vm3059_vm13 = vweird.f32 %v3052_v21  ;;  %v3068_v63 = vpack.c.bf16 %v3067_v54, %v3067_v54 }
 0x9c2   :  { %v3220_v56 = vsel %vm3219_vm11, %v5059_v1, %v3216_v24  ;;  %v4949_v1 = vld [vmem:[%s5885_s7 + $0x120] sm:$0xff]  ;;  %v4946_v24 = vld [vmem:[%s5885_s7 + $0x108] sm:$0xff]  ;;  %v3089_v28 = vunpack.c.l.bf16 %v3087_v20 }
 0x9c3   :  { %v3227_v31 = vpack.c.bf16 %v3220_v56, %v3220_v56  ;;  %v3070_v7 = vunpack.c.l.bf16 %v3068_v63  ;;  %3350 = vmatpush.bf16.msrb.mxu2 %v4949_v1 }
 0x9c5   :  { %v3229_v15 = vunpack.c.l.bf16 %v3227_v31  ;;  %v4945_v31 = vld [vmem:[%s5885_s7 + $0x100] sm:$0xff] }
 0x9c7   :  { %v5061_v36 = vpop.eup %5060  ;;  %v3230_v38 = vmul.f32 %v3229_v15, %v3228_v32  ;;  %3351 = vmatpush.bf16.msrb.mxu2 %v4948_v45 }
 0x9c8   :  { %v3054_v41 = vmul.f32 %v5061_v36, %v3052_v21  ;;  %vm3060_vm12 = vweird.f32 %v5061_v36 }
 0x9c9   :  { %v3231_v42 = vpack.c.bf16 %v3230_v38, %v3230_v38  ;;  %vm3061_vm14 = vmor %vm3059_vm13, %vm3060_vm12 }
 0x9ca   :  { %v3055_v49 = vmul.f32 %v5061_v36, %v3054_v41 }
 0x9cb   :  { %v3237_v52 = vunpack.c.l.bf16 %v3231_v42  ;;  %3352 = vmatpush.bf16.msrb.mxu2 %v4947_v16  ;;  %v2858_v16 = vperm.slane %v5794_v17, 1 }
 0x9cc   :  { %v3056_v44 = vmul.f32 0.5, %v3055_v49 }
 0x9cd   :  { %v3239_v51 = vmul.f32 %v3238_v34, %v3237_v52 }
 0x9ce   :  { %v3057_v43 = vsub.f32 1.5, %v3056_v44 }
 0x9cf   :  { %v3240_v58 = vpack.c.bf16 %v3239_v51, %v3239_v51  ;;  %3353 = vmatpush.bf16.msrb.mxu2 %v4946_v24 }
 0x9d0   :  { %v3058_v59 = vmul.f32 %v5061_v36, %v3057_v43  ;;  %v4960_v43 = vld [vmem:[%s5891_s13 + $0x38] sm:$0xff] }
 0x9d1   :  { %v3246_v61 = vunpack.c.l.bf16 %v3240_v58  ;;  %3430 = vmatpush.bf16.msrb.mxu3 %v4960_v43  ;;  %v4958_v58 = vld [vmem:[%s5891_s13 + $0x28] sm:$0xff] }
 0x9d2   :  { %v3062_v2 = vsel %vm3061_vm14, %v5061_v36, %v3058_v59  ;;  %v4994_v59 = vld [vmem:[#allocation11 + $0x4] ss:$0 sm:$0xff] }
 0x9d3   :  { %v3248_v3 = vadd.f32 %v3247_v57, %v3246_v61  ;;  %v3069_v4 = vpack.c.bf16 %v3062_v2, %v3062_v2  ;;  %3354 = vmatpush.bf16.msrb.mxu2 %v4945_v31  ;;  %v4959_v57 = vld [vmem:[%s5891_s13 + $0x30] sm:$0xff] }
 0x9d5   :  { %v3249_v6 = vpack.c.bf16 %v3248_v3, %v3248_v3  ;;  %v3071_v8 = vunpack.c.l.bf16 %v3069_v4  ;;  %3431 = vmatpush.bf16.msrb.mxu3 %v4959_v57  ;;  %v4955_v3 = vld [vmem:[%s5891_s13 + $0x10] sm:$0xff] }
 0x9d7   :  { %v3250_v10 = vunpack.c.l.bf16 %v3249_v6  ;;  %v3072_v11 = vmul.f32 %v3071_v8, %v3070_v7  ;;  %v4954_v7 = vld [vmem:[%s5891_s13 + $0x8] sm:$0xff]  ;;  %v4953_v8 = vld [vmem:[%s5891_s13] sm:$0xff] }
 0x9d9   :  { %v3073_v13 = vpack.c.bf16 %v3072_v11, %v3072_v11  ;;  %v3253_v18 = vmul.f32 0.044677734, %v3250_v10  ;;  %v3251_v49 = vmul.f32 0.5, %v3250_v10  ;;  %3432 = vmatpush.bf16.msrb.mxu3 %v4958_v58 }
 0x9db   :  { %v3079_v19 = vunpack.c.l.bf16 %v3073_v13  ;;  %v3254_v21 = vpack.c.bf16 %v3253_v18, %v3253_v18  ;;  %v3252_v52 = vpack.c.bf16 %v3251_v49, %v3251_v49  ;;  %v3014_v18 = vadd.f32 %v5798_v29, %v2858_v16  ;;  %v4968_v29 = vld [vmem:[#allocation13 + $0x38] sm:$0xff] }
 0x9dc   :  { %3539 = vmatpush.bf16.msra.mxu0 %v4968_v29 }
 0x9dd   :  { %v3081_v22 = vmul.f32 %v3080_v14, %v3079_v19  ;;  %v3255_v26 = vunpack.c.l.bf16 %v3254_v21  ;;  %v3273_v51 = vunpack.c.l.bf16 %v3252_v52  ;;  %3433 = vmatpush.bf16.msrb.mxu3 %v4957_v60 }
 0x9df   :  { %v3082_v62 = vpack.c.bf16 %v3081_v22, %v3081_v22  ;;  %v3256_v56 = vmul.f32 %v3255_v26, %v3250_v10  ;;  %v3191_v22 = vpack.c.bf16 %v3014_v18, %v3014_v18 }
 0x9e1   :  { %v3088_v30 = vunpack.c.l.bf16 %v3082_v62  ;;  %v3257_v32 = vpack.c.bf16 %v3256_v56, %v3256_v56  ;;  %3434 = vmatpush.bf16.msrb.mxu3 %v4956_v0  ;;  %v3193_v62 = vunpack.c.l.bf16 %v3191_v22  ;;  %v4995_v56 = vld [vmem:[#allocation5 + $0x4] ss:$0 sm:$0xff] }
 0x9e3   :  { %v3090_v33 = vadd.f32 %v3089_v28, %v3088_v30  ;;  %v3258_v15 = vunpack.c.l.bf16 %v3257_v32 }
 0x9e5   :  { %v3091_v27 = vpack.c.bf16 %v3090_v33, %v3090_v33  ;;  %v3259_v36 = vmul.f32 %v3258_v15, %v3250_v10  ;;  %3435 = vmatpush.bf16.msrb.mxu3 %v4955_v3 }
 0x9e7   :  { %3170 = vmatmul.bf16.vlgmr.msrb.gmra.mxu1 %v3091_v27  ;;  %v3260_v37 = vpack.c.bf16 %v3259_v36, %v3259_v36 }
 0x9e9   :  { %v3261_v38 = vunpack.c.l.bf16 %v3260_v37  ;;  %3436 = vmatpush.bf16.msrb.mxu3 %v4954_v7  ;;  %v4966_v37 = vld [vmem:[#allocation13 + $0x28] sm:$0xff] }
 0x9eb   :  { %v3262_v39 = vadd.f32 %v3261_v38, %v3250_v10 }
 0x9ed   :  { %v3263_v40 = vpack.c.bf16 %v3262_v39, %v3262_v39  ;;  %3437 = vmatpush.bf16.msrb.mxu3 %v4953_v8 }
 0x9ef   :  { %v3264_v41 = vunpack.c.l.bf16 %v3263_v40 }
 0x9f1   :  { %v3265_v34 = vmul.f32 0.796875, %v3264_v41  ;;  %v4965_v41 = vld [vmem:[#allocation13 + $0x20] sm:$0xff] }
 0x9f3   :  { %v3266_v42 = vpack.c.bf16 %v3265_v34, %v3265_v34 }
 0x9f5   :  { %v3267_v46 = vunpack.c.l.bf16 %v3266_v42 }
 0x9f7   :  { %5062 = vtanh.f32 %v3267_v46  ;;  %v4964_v46 = vld [vmem:[#allocation13 + $0x18] sm:$0xff] }
 0x9fd   :  { %v5063_v48 = vpop.eup %5062 }
 0x9fe   :  { %v3269_v50 = vpack.c.bf16 %v5063_v48, %v5063_v48 }
 0xa00   :  { %v3270_v35 = vunpack.c.l.bf16 %v3269_v50 }
 0xa02   :  { %v3271_v53 = vadd.f32 1.0, %v3270_v35  ;;  %v4963_v35 = vld [vmem:[#allocation13 + $0x10] sm:$0xff] }
 0xa04   :  { %v3272_v44 = vpack.c.bf16 %v3271_v53, %v3271_v53 }
 0xa06   :  { %v3274_v54 = vunpack.c.l.bf16 %v3272_v44  ;;  %v4962_v44 = vld [vmem:[#allocation13 + $0x8] sm:$0xff] }
 0xa08   :  { %v3275_v55 = vmul.f32 %v3274_v54, %v3273_v51 }
 0xa0a   :  { %v3276_v47 = vpack.c.bf16 %v3275_v55, %v3275_v55  ;;  %v4961_v55 = vld [vmem:[#allocation13] sm:$0xff] }
 0xa0c   :  { %3355 = vmatmul.bf16.vlgmr.msrb.gmra.mxu2 %v3276_v47 }
 0xa64   :  { %v3171_v61 = vpop.f32.mrf.mxu1 }
 0xa65   :  { %v3172_v63 = vadd.f32 %v4994_v59, %v3171_v61 }
 0xa67   :  { %v3175_v1 = vpack.c.bf16 %v3172_v63, %v3172_v63 }
 0xa69   :  { %v3176_v2 = vxor.u32 2147516416, %v3175_v1 }
 0xa6b   :  { %v3177_v4 = vunpack.c.l.bf16 %v3176_v2 }
 0xa6c   :  { %v3173_v5 = vpop.f32.mrf.mxu1 }
 0xa6d   :  { %v3178_v6 = vmul.f32 1.442695, %v3177_v4 }
 0xa6f   :  { %5064 = vpow2.f32 %v3178_v6 }
 0xa75   :  { %v5065_v9 = vpop.eup %5064 }
 0xa76   :  { %v3180_v45 = vpack.c.bf16 %v5065_v9, %v5065_v9 }
 0xa78   :  { %v3181_v10 = vunpack.c.l.bf16 %v3180_v45 }
 0xa7a   :  { %v3182_v11 = vadd.f32 1.0, %v3181_v10  ;;  %v4997_v10 = vld [vmem:[%s5894_s16] ss:$0 sm:$0xff] }
 0xa7c   :  { %v3183_v12 = vpack.c.bf16 %v3182_v11, %v3182_v11 }
 0xa7e   :  { %v3184_v13 = vunpack.c.h.bf16 %v3183_v12  ;;  %v3185_v14 = vunpack.c.l.bf16 %v3183_v12 }
 0xa80   :  { %5066 = vrcp.f32 %v3184_v13 }
 0xa81   :  { %5068 = vrcp.f32 %v3185_v14 }
 0xa86   :  { %v5067_v19 = vpop.eup %5066 }
 0xa87   :  { %v5069_v20 = vpop.eup %5068  ;;  %v3187_v21 = vmul.f32 %v5067_v19, %v5622_v23  ;;  %v4996_v23 = vld [vmem:[%s5892_s14] ss:$0 sm:$0xff] }
 0xa88   :  { %v3189_v24 = vmul.f32 %v5069_v20, %v5625_v25  ;;  %v4967_v25 = vld [vmem:[#allocation13 + $0x30] sm:$0xff] }
 0xa89   :  { %3540 = vmatpush.bf16.msra.mxu0 %v4967_v25 }
 0xa8a   :  { %v3190_v26 = vpack.c.bf16 %v3187_v21, %v3189_v24 }
 0xa8c   :  { %v3192_v28 = vunpack.c.l.bf16 %v3190_v26 }
 0xa8d   :  { %3541 = vmatpush.bf16.msra.mxu0 %v4966_v37 }
 0xa8e   :  { %v3194_v30 = vmul.f32 %v3193_v62, %v3192_v28 }
 0xa8f   :  { %v3356_v31 = vpop.f32.mrf.mxu2 }
 0xa90   :  { %v3195_v32 = vpack.c.bf16 %v3194_v30, %v3194_v30  ;;  %v3357_v33 = vadd.f32 %v4995_v56, %v3356_v31 }
 0xa91   :  { %3542 = vmatpush.bf16.msra.mxu0 %v4965_v41 }
 0xa92   :  { %v3196_v17 = vunpack.c.l.bf16 %v3195_v32 }
 0xa94   :  { %v3360_v15 = vadd.f32 %v3357_v33, %v3196_v17 }
 0xa95   :  { %3543 = vmatpush.bf16.msra.mxu0 %v4964_v46 }
 0xa96   :  { %v3378_v27 = vpack.c.bf16 %v3360_v15, %v3360_v15 }
 0xa97   :  { %v3358_v36 = vpop.f32.mrf.mxu2 }
 0xa98   :  { %3438 = vmatmul.bf16.vlgmr.msrb.gmra.mxu3 %v3378_v27 }
 0xa99   :  { %3544 = vmatpush.bf16.msra.mxu0 %v4963_v35 }
 0xa9d   :  { %3545 = vmatpush.bf16.msra.mxu0 %v4962_v44 }
 0xaa1   :  { %3546 = vmatpush.bf16.msra.mxu0 %v4961_v55 }
 0xb1b   :  { %v3439_v38 = vpop.f32.mrf.mxu3 }
 0xb1c   :  { %v3440_v39 = vadd.f32 %v4996_v23, %v3439_v38 }
 0xb1e   :  { %v3443_v40 = vpack.c.bf16 %v3440_v39, %v3440_v39 }
 0xb20   :  { %v3444_v34 = vunpack.c.l.bf16 %v3443_v40 }
 0xb22   :  { %v3447_v42 = vmul.f32 0.044677734, %v3444_v34  ;;  %v3445_v1 = vmul.f32 0.5, %v3444_v34 }
 0xb23   :  { %v3441_v48 = vpop.f32.mrf.mxu3 }
 0xb24   :  { %v3448_v49 = vpack.c.bf16 %v3447_v42, %v3447_v42  ;;  %v3446_v4 = vpack.c.bf16 %v3445_v1, %v3445_v1 }
 0xb26   :  { %v3449_v50 = vunpack.c.l.bf16 %v3448_v49  ;;  %v3467_v7 = vunpack.c.l.bf16 %v3446_v4 }
 0xb28   :  { %v3450_v52 = vmul.f32 %v3449_v50, %v3444_v34 }
 0xb2a   :  { %v3451_v53 = vpack.c.bf16 %v3450_v52, %v3450_v52 }
 0xb2c   :  { %v3452_v51 = vunpack.c.l.bf16 %v3451_v53 }
 0xb2e   :  { %v3453_v54 = vmul.f32 %v3452_v51, %v3444_v34 }
 0xb30   :  { %v3454_v47 = vpack.c.bf16 %v3453_v54, %v3453_v54 }
 0xb32   :  { %v3455_v43 = vunpack.c.l.bf16 %v3454_v47 }
 0xb34   :  { %v3456_v57 = vadd.f32 %v3455_v43, %v3444_v34 }
 0xb36   :  { %v3457_v58 = vpack.c.bf16 %v3456_v57, %v3456_v57 }
 0xb38   :  { %v3458_v59 = vunpack.c.l.bf16 %v3457_v58 }
 0xb3a   :  { %v3459_v60 = vmul.f32 0.796875, %v3458_v59 }
 0xb3c   :  { %v3460_v61 = vpack.c.bf16 %v3459_v60, %v3459_v60 }
 0xb3e   :  { %v3461_v63 = vunpack.c.l.bf16 %v3460_v61 }
 0xb40   :  { %5070 = vtanh.f32 %v3461_v63 }
 0xb46   :  { %v5071_v0 = vpop.eup %5070 }
 0xb47   :  { %v3463_v2 = vpack.c.bf16 %v5071_v0, %v5071_v0 }
 0xb49   :  { %v3464_v3 = vunpack.c.l.bf16 %v3463_v2 }
 0xb4b   :  { %v3465_v5 = vadd.f32 1.0, %v3464_v3 }
 0xb4d   :  { %v3466_v6 = vpack.c.bf16 %v3465_v5, %v3465_v5 }
 0xb4f   :  { %v3468_v8 = vunpack.c.l.bf16 %v3466_v6 }
 0xb51   :  { %v3469_v9 = vmul.f32 %v3468_v8, %v3467_v7 }
 0xb53   :  { %v3470_v45 = vpack.c.bf16 %v3469_v9, %v3469_v9 }
 0xb55   :  { %3547 = vmatmul.bf16.vlgmr.msra.gmra.mxu0 %v3470_v45 }
 0xbd2   :  { %v3548_v11 = vpop.f32.mrf.mxu0 }
 0xbd3   :  { %v3549_v12 = vadd.f32 %v4997_v10, %v3548_v11 }
 0xbd5   :  { %3552 = vst [vmem:[#allocation14] sm:$0xff] %v3549_v12 }
 0xbd6   :  { %3563 = dma.vmem_to_hbm [thread:$0]  %s3559_s1, 128, %s3561_s21, [#allocation4]  }
 0xbda   :  { %v3550_v13 = vpop.f32.mrf.mxu0 }
 0xbdb   :  { %5272 = dma.done.wait [#allocation4], 128  }
 0xbdc   :  { %5273 = vsyncadd [#allocation4], 4294967168 }
 0xbdd   :  { %3568 = vsyncpa [#allocation3], 1 }
 0xbde   :  { %3569 = vsyncpa [#allocation6], 1 }
 0xbdf   :  { %3570 = vsyncpa [#allocation9], 1 }
 0xbe0   :  { %3571 = vsyncpa [#allocation12], 1 }
 0xbe1   :  { %3572 = vsyncpa [#allocation4], 1 }

</bundles_post_ra>
